<compile_context>
chip_gen: v7x
topology: tpu7x:2x2x1
jax: 0.10.0
libtpu: 0.0.40
codegen_flags: <defaults>
</compile_context>

<pallas_src>
import jax
import jax.numpy as jnp
from jax import lax
from jax.experimental import pallas as pl
from jax.experimental.pallas import tpu as pltpu


# ---------------------------------------------------------------------------
# Fully fused kernel:
#   out = feat [+ ReLU(BN1(conv3x3(skip)))]
#   y   = ReLU(BN2(conv3x3(out)))
#   z   = bilinear 2x along H (rows interleaved in-kernel)
#   even/odd output columns (bilinear 2x along W) -> conv1x1 + bias + ReLU
#   stored channels-major: (Cout, 2H*W) each  -> lane-dense stores
# ---------------------------------------------------------------------------
def _make_fused_kernel(H, W, C, Cout, has_skip):

    def conv3x3(x, w_ref, pad_ref):
        """3x3 SAME conv via 9 shifted MXU matmuls on a zero-padded VMEM scratch."""
        pad_ref[1:H + 1, 1:W + 1, :] = x.astype(jnp.float32)
        xp = pad_ref[...]                              # (H+2, W+2, C), border is 0
        w = w_ref[...]                                 # (3, 3, C, C)
        acc = None
        for dy in range(3):
            for dx in range(3):
                patch = xp[dy:dy + H, dx:dx + W, :].reshape(H * W, C)
                contrib = jnp.dot(patch, w[dy, dx], preferred_element_type=jnp.float32)
                acc = contrib if acc is None else acc + contrib
        return acc                                     # (H*W, C) float32

    def kernel(*refs):
        if has_skip:
            (feat_ref, skip_ref, w1_ref, s1_ref, t1_ref, w2_ref, s2_ref, t2_ref,
             wo_ref, bo_ref, oe_ref, oo_ref, pad_ref, zpad_ref) = refs
        else:
            (feat_ref, w2_ref, s2_ref, t2_ref,
             wo_ref, bo_ref, oe_ref, oo_ref, pad_ref, zpad_ref) = refs

        # Zero the halo scratch once; both convs rewrite the interior, border stays 0.
        pad_ref[...] = jnp.zeros((H + 2, W + 2, C), jnp.float32)

        feat = feat_ref[0].astype(jnp.float32)          # (H, W, C)
        if has_skip:
            y1 = conv3x3(skip_ref[0], w1_ref, pad_ref)  # (H*W, C)
            y1 = jnp.maximum(y1 * s1_ref[...] + t1_ref[...], 0.0)   # conv bias + BN + ReLU
            out = feat + y1.reshape(H, W, C)            # residual add (post-ReLU)
        else:
            out = feat

        y2 = conv3x3(out, w2_ref, pad_ref)              # (H*W, C)
        y2 = jnp.maximum(y2 * s2_ref[...] + t2_ref[...], 0.0).reshape(H, W, C)

        # --- bilinear 2x along H (align_corners=False): rows interleaved in-kernel ---
        up = jnp.concatenate([y2[:1], y2[:-1]], axis=0)     # y2[clamp(i-1)]
        dn = jnp.concatenate([y2[1:], y2[-1:]], axis=0)     # y2[clamp(i+1)]
        even_h = 0.75 * y2 + 0.25 * up                      # -> output row 2i
        odd_h = 0.75 * y2 + 0.25 * dn                       # -> output row 2i+1
        z = jnp.stack([even_h, odd_h], axis=1).reshape(2 * H, W, C)

        # --- bilinear 2x along W: edge-clamped neighbours via a padded VMEM scratch ---
        zpad_ref[:, 1:W + 1, :] = z
        zpad_ref[:, 0:1, :] = z[:, 0:1, :]                  # clamp left edge
        zpad_ref[:, W + 1:W + 2, :] = z[:, W - 1:W, :]      # clamp right edge
        zp = zpad_ref[...]
        ze = 0.75 * z + 0.25 * zp[:, 0:W, :]                # -> output columns 2w
        zo = 0.75 * z + 0.25 * zp[:, 2:W + 2, :]            # -> output columns 2w+1

        # --- 1x1 conv + bias + ReLU, channels-major so the stores are lane-dense ---
        wo_t = wo_ref[...]                                  # (Cout, C)
        bo = bo_ref[...]                                    # (Cout, 1)
        dnums = (((1,), (1,)), ((), ()))                    # contract channel dim of both
        re = lax.dot_general(wo_t, ze.reshape(2 * H * W, C), dnums,
                             preferred_element_type=jnp.float32)
        ro = lax.dot_general(wo_t, zo.reshape(2 * H * W, C), dnums,
                             preferred_element_type=jnp.float32)
        oe_ref[0] = jnp.maximum(re + bo, 0.0).astype(oe_ref.dtype)   # (Cout, 2H*W)
        oo_ref[0] = jnp.maximum(ro + bo, 0.0).astype(oo_ref.dtype)   # (Cout, 2H*W)

    return kernel


# ---------------------------------------------------------------------------
# Forward (NCHW in / NCHW out, like the PyTorch module)
# ---------------------------------------------------------------------------
def upsampler_block_forward(feat_nchw, skip_nchw, params):
    B, C, H, W = feat_nchw.shape
    Cout = params["w_out"].shape[1]
    dtype = feat_nchw.dtype
    has_skip = skip_nchw is not None

    # Inputs go NHWC (conv matmuls contract the channel dim); the output side is
    # produced channels-major in-kernel, so no output transpose is needed.
    feat = jnp.transpose(feat_nchw, (0, 2, 3, 1))

    spec_img = pl.BlockSpec((1, H, W, C), lambda b: (b, 0, 0, 0))
    spec_w33 = pl.BlockSpec((3, 3, C, C), lambda b: (0, 0, 0, 0))
    spec_vec = pl.BlockSpec((1, C), lambda b: (0, 0))

    args, in_specs = [feat], [spec_img]
    if has_skip:
        skip = jnp.transpose(skip_nchw, (0, 2, 3, 1))
        args += [skip, params["w1"],
                 params["scale1"].reshape(1, C), params["shift1"].reshape(1, C)]
        in_specs += [spec_img, spec_w33, spec_vec, spec_vec]
    args += [params["w2"],
             params["scale2"].reshape(1, C), params["shift2"].reshape(1, C),
             params["w_out"].T,                      # (Cout, C) for channels-major 1x1
             params["b_out"].reshape(Cout, 1)]
    in_specs += [spec_w33, spec_vec, spec_vec,
                 pl.BlockSpec((Cout, C), lambda b: (0, 0)),
                 pl.BlockSpec((Cout, 1), lambda b: (0, 0))]

    out_shapes = (jax.ShapeDtypeStruct((B, Cout, 2 * H * W), dtype),
                  jax.ShapeDtypeStruct((B, Cout, 2 * H * W), dtype))
    out_specs = (pl.BlockSpec((1, Cout, 2 * H * W), lambda b: (b, 0, 0)),
                 pl.BlockSpec((1, Cout, 2 * H * W), lambda b: (b, 0, 0)))
    scratch_shapes = [
        pltpu.VMEM((H + 2, W + 2, C), jnp.float32),      # conv 3x3 halo buffer
        pltpu.VMEM((2 * H, W + 2, C), jnp.float32),      # W-upsample clamp buffer
    ]

    even, odd = pl.pallas_call(
        _make_fused_kernel(H, W, C, Cout, has_skip),
        out_shape=out_shapes,
        grid=(B,),
        in_specs=in_specs,
        out_specs=out_specs,
        scratch_shapes=scratch_shapes,
        compiler_params=pltpu.CompilerParams(
            dimension_semantics=("parallel",),            # shard batch over TCs (v7x)
            vmem_limit_bytes=48 * 1024 * 1024,
        ),
    )(*args)

    # even/odd hold output columns 2w / 2w+1, channels-major -> already NCHW.
    even = even.reshape(B, Cout, 2 * H, W)
    odd = odd.reshape(B, Cout, 2 * H, W)
    return jnp.stack([even, odd], axis=-1).reshape(B, Cout, 2 * H, 2 * W)


# ---------------------------------------------------------------------------
# Parameter init (deterministic, mirrors the module's __init__ shapes)
# ---------------------------------------------------------------------------
def init_params(key, in_channels, out_channels, use_bn=True, eps=1e-5):
    ks = jax.random.split(key, 6)

    def conv_w(k, kh, kw, cin, cout):
        bound = 1.0 / jnp.sqrt(float(cin * kh * kw))
        # weights generated directly in HWIO layout (synthetic init, not a checkpoint)
        return jax.random.uniform(k, (kh, kw, cin, cout), jnp.float32, -bound, bound)

    params = {
        "w1": conv_w(ks[0], 3, 3, in_channels, in_channels),
        "b1": jax.random.uniform(ks[1], (in_channels,), jnp.float32, -0.1, 0.1),
        "w2": conv_w(ks[2], 3, 3, in_channels, in_channels),
        "b2": jax.random.uniform(ks[3], (in_channels,), jnp.float32, -0.1, 0.1),
        "w_out": conv_w(ks[4], 1, 1, in_channels, out_channels).reshape(in_channels, out_channels),
        "b_out": jax.random.uniform(ks[5], (out_channels,), jnp.float32, -0.1, 0.1),
    }
    if use_bn:
        gamma = jnp.ones((in_channels,), jnp.float32)
        beta = jnp.zeros((in_channels,), jnp.float32)
        mean = jnp.zeros((in_channels,), jnp.float32)
        var = jnp.ones((in_channels,), jnp.float32)
        s = gamma / jnp.sqrt(var + eps)
        params["scale1"], params["shift1"] = s, (params["b1"] - mean) * s + beta
        params["scale2"], params["shift2"] = s, (params["b2"] - mean) * s + beta
    else:
        ones = jnp.ones((in_channels,), jnp.float32)
        params["scale1"], params["shift1"] = ones, params["b1"]
        params["scale2"], params["shift2"] = ones, params["b2"]
    return params


# ---------------------------------------------------------------------------
# Pure-JAX reference (NCHW) for validation
# ---------------------------------------------------------------------------
def _upsample2x_axis_ref(x, axis):
    n = x.shape[axis]
    i = jnp.arange(n)
    prev = jnp.take(x, jnp.maximum(i - 1, 0), axis=axis)
    nxt = jnp.take(x, jnp.minimum(i + 1, n - 1), axis=axis)
    even = 0.25 * prev + 0.75 * x
    odd = 0.75 * x + 0.25 * nxt
    y = jnp.stack([even, odd], axis=axis + 1)
    new_shape = list(x.shape)
    new_shape[axis] = 2 * n
    return y.reshape(new_shape)


def reference_forward(feat, skip, params, eps=1e-5):
    def conv(x, w, b, padding):
        y = lax.conv_general_dilated(x, w, (1, 1), padding,
                                     dimension_numbers=("NCHW", "HWIO", "NCHW"))
        return y + b[None, :, None, None]

    def bn(x):  # fresh BN, eval mode: mean=0, var=1, gamma=1, beta=0
        return x / jnp.sqrt(1.0 + eps)

    out = feat
    if skip is not None:
        s = jax.nn.relu(bn(conv(skip, params["w1"], params["b1"], "SAME")))
        out = feat + s
    out = jax.nn.relu(bn(conv(out, params["w2"], params["b2"], "SAME")))
    out = _upsample2x_axis_ref(out, 2)
    out = _upsample2x_axis_ref(out, 3)
    w_out = params["w_out"].reshape(1, 1, *params["w_out"].shape)
    out = jax.nn.relu(conv(out, w_out, params["b_out"], "VALID"))
    return out


if __name__ == "__main__":
    B, Cin, Cout, H, W = 2, 4, 8, 16, 16
    key = jax.random.PRNGKey(0)
    kf, ks, kp = jax.random.split(key, 3)
    feat = jax.random.normal(kf, (B, Cin, H, W), jnp.float32)
    skip = jax.random.normal(ks, (B, Cin, H, W), jnp.float32)
    params = init_params(kp, Cin, Cout, use_bn=True)

    fwd = jax.jit(upsampler_block_forward)

    out = jax.block_until_ready(fwd(feat, skip, params))
    assert out.shape == (B, Cout, 2 * H, 2 * W), out.shape
    ref = reference_forward(feat, skip, params)
    assert jnp.max(jnp.abs(out - ref)) < 1e-4

    # also exercise the skip_feat=None path
    out2 = jax.block_until_ready(fwd(feat, None, params))
    ref2 = reference_forward(feat, None, params)
    assert out2.shape == (B, Cout, 2 * H, 2 * W)
    assert jnp.max(jnp.abs(out2 - ref2)) < 1e-4

    print("KERNEL_OK")
</pallas_src>

<mosaic_0001>
module attributes {stable_mosaic.version = 11 : i64} {
  func.func @kernel(%arg0: i32, %arg1: memref<1x16x16x4xf32, #tpu.memory_space<vmem>>, %arg2: memref<1x16x16x4xf32, #tpu.memory_space<vmem>>, %arg3: memref<3x3x4x4xf32, #tpu.memory_space<vmem>>, %arg4: memref<1x4xf32, #tpu.memory_space<vmem>>, %arg5: memref<1x4xf32, #tpu.memory_space<vmem>>, %arg6: memref<3x3x4x4xf32, #tpu.memory_space<vmem>>, %arg7: memref<1x4xf32, #tpu.memory_space<vmem>>, %arg8: memref<1x4xf32, #tpu.memory_space<vmem>>, %arg9: memref<8x4xf32, #tpu.memory_space<vmem>>, %arg10: memref<8x1xf32, #tpu.memory_space<vmem>>, %arg11: memref<1x8x512xf32, #tpu.memory_space<vmem>>, %arg12: memref<1x8x512xf32, #tpu.memory_space<vmem>>, %arg13: memref<18x18x4xf32, #tpu.memory_space<vmem>>, %arg14: memref<32x18x4xf32, #tpu.memory_space<vmem>>) attributes {dimension_semantics = [#tpu.dimension_semantics<parallel>], iteration_bounds = array<i64: 2>, scalar_prefetch = 0 : i64, scratch_operands = 2 : i64, tpu.core_type = #tpu.core_type<tc>, window_params = [{transform_indices = @transform_0, window_bounds = array<i64: 1, 16, 16, 4>}, {transform_indices = @transform_1, window_bounds = array<i64: 1, 16, 16, 4>}, {pipeline_mode = #tpu.pipeline_mode<synchronous>, transform_indices = @transform_2, window_bounds = array<i64: 3, 3, 4, 4>}, {pipeline_mode = #tpu.pipeline_mode<synchronous>, transform_indices = @transform_3, window_bounds = array<i64: 1, 4>}, {pipeline_mode = #tpu.pipeline_mode<synchronous>, transform_indices = @transform_4, window_bounds = array<i64: 1, 4>}, {pipeline_mode = #tpu.pipeline_mode<synchronous>, transform_indices = @transform_5, window_bounds = array<i64: 3, 3, 4, 4>}, {pipeline_mode = #tpu.pipeline_mode<synchronous>, transform_indices = @transform_6, window_bounds = array<i64: 1, 4>}, {pipeline_mode = #tpu.pipeline_mode<synchronous>, transform_indices = @transform_7, window_bounds = array<i64: 1, 4>}, {pipeline_mode = #tpu.pipeline_mode<synchronous>, transform_indices = @transform_8, window_bounds = array<i64: 8, 4>}, {pipeline_mode = #tpu.pipeline_mode<synchronous>, transform_indices = @transform_9, window_bounds = array<i64: 8, 1>}, {transform_indices = @transform_10, window_bounds = array<i64: 1, 8, 512>}, {transform_indices = @transform_11, window_bounds = array<i64: 1, 8, 512>}]} {
    %cst = arith.constant 0.000000e+00 : f32
    %0 = vector.broadcast %cst : f32 to vector<18x18x4xf32>
    %c0 = arith.constant 0 : index
    %c0_0 = arith.constant 0 : index
    %c0_1 = arith.constant 0 : index
    %1 = vector.load %arg13[%c0, %c0_0, %c0_1] : memref<18x18x4xf32, #tpu.memory_space<vmem>>, vector<18x18x4xf32>
    tpu.vector_store %arg13[%c0, %c0_0, %c0_1], %0 {strides = array<i32>} : memref<18x18x4xf32, #tpu.memory_space<vmem>>, vector<18x18x4xf32>,
    %c0_2 = arith.constant 0 : index
    %c0_3 = arith.constant 0 : index
    %c0_4 = arith.constant 0 : index
    %c0_5 = arith.constant 0 : index
    %2 = vector.load %arg1[%c0_2, %c0_3, %c0_4, %c0_5] : memref<1x16x16x4xf32, #tpu.memory_space<vmem>>, vector<1x16x16x4xf32>
    %3 = vector.shape_cast %2 : vector<1x16x16x4xf32> to vector<16x16x4xf32>
    %c0_6 = arith.constant 0 : index
    %c0_7 = arith.constant 0 : index
    %c0_8 = arith.constant 0 : index
    %c0_9 = arith.constant 0 : index
    %4 = vector.load %arg2[%c0_6, %c0_7, %c0_8, %c0_9] : memref<1x16x16x4xf32, #tpu.memory_space<vmem>>, vector<1x16x16x4xf32>
    %5 = vector.shape_cast %4 : vector<1x16x16x4xf32> to vector<16x16x4xf32>
    %c1 = arith.constant 1 : index
    %c1_10 = arith.constant 1 : index
    %c0_11 = arith.constant 0 : index
    %6 = vector.load %arg13[%c1, %c1_10, %c0_11] : memref<18x18x4xf32, #tpu.memory_space<vmem>>, vector<16x16x4xf32>
    tpu.vector_store %arg13[%c1, %c1_10, %c0_11], %5 {strides = array<i32>} : memref<18x18x4xf32, #tpu.memory_space<vmem>>, vector<16x16x4xf32>,
    %c0_12 = arith.constant 0 : index
    %c0_13 = arith.constant 0 : index
    %c0_14 = arith.constant 0 : index
    %7 = vector.load %arg13[%c0_12, %c0_13, %c0_14] : memref<18x18x4xf32, #tpu.memory_space<vmem>>, vector<18x18x4xf32>
    %c0_15 = arith.constant 0 : index
    %c0_16 = arith.constant 0 : index
    %c0_17 = arith.constant 0 : index
    %c0_18 = arith.constant 0 : index
    %8 = vector.load %arg3[%c0_15, %c0_16, %c0_17, %c0_18] : memref<3x3x4x4xf32, #tpu.memory_space<vmem>>, vector<3x3x4x4xf32>
    %9 = vector.extract_strided_slice %7 {offsets = [0, 0, 0], sizes = [16, 16, 4], strides = [1, 1, 1]} : vector<18x18x4xf32> to vector<16x16x4xf32>
    %10 = vector.shape_cast %9 : vector<16x16x4xf32> to vector<256x4xf32>
    %11 = vector.extract_strided_slice %8 {offsets = [0, 0, 0, 0], sizes = [1, 1, 4, 4], strides = [1, 1, 1, 1]} : vector<3x3x4x4xf32> to vector<1x1x4x4xf32>
    %12 = vector.shape_cast %11 : vector<1x1x4x4xf32> to vector<4x4xf32>
    %cst_19 = arith.constant dense<0.000000e+00> : vector<256x4xf32>
    %13 = tpu.matmul %10, %12, %cst_19 {dimension_numbers = #tpu.dot_dimension_numbers<[1], [0], [0], [1], [0, 0, 1, 1], [], []>} : vector<256x4xf32>, vector<4x4xf32>, vector<256x4xf32> -> vector<256x4xf32>
    %14 = vector.extract_strided_slice %7 {offsets = [0, 1, 0], sizes = [16, 16, 4], strides = [1, 1, 1]} : vector<18x18x4xf32> to vector<16x16x4xf32>
    %15 = vector.shape_cast %14 : vector<16x16x4xf32> to vector<256x4xf32>
    %16 = vector.extract_strided_slice %8 {offsets = [0, 1, 0, 0], sizes = [1, 1, 4, 4], strides = [1, 1, 1, 1]} : vector<3x3x4x4xf32> to vector<1x1x4x4xf32>
    %17 = vector.shape_cast %16 : vector<1x1x4x4xf32> to vector<4x4xf32>
    %cst_20 = arith.constant dense<0.000000e+00> : vector<256x4xf32>
    %18 = tpu.matmul %15, %17, %cst_20 {dimension_numbers = #tpu.dot_dimension_numbers<[1], [0], [0], [1], [0, 0, 1, 1], [], []>} : vector<256x4xf32>, vector<4x4xf32>, vector<256x4xf32> -> vector<256x4xf32>
    %19 = arith.addf %13, %18 : vector<256x4xf32>
    %20 = vector.extract_strided_slice %7 {offsets = [0, 2, 0], sizes = [16, 16, 4], strides = [1, 1, 1]} : vector<18x18x4xf32> to vector<16x16x4xf32>
    %21 = vector.shape_cast %20 : vector<16x16x4xf32> to vector<256x4xf32>
    %22 = vector.extract_strided_slice %8 {offsets = [0, 2, 0, 0], sizes = [1, 1, 4, 4], strides = [1, 1, 1, 1]} : vector<3x3x4x4xf32> to vector<1x1x4x4xf32>
    %23 = vector.shape_cast %22 : vector<1x1x4x4xf32> to vector<4x4xf32>
    %cst_21 = arith.constant dense<0.000000e+00> : vector<256x4xf32>
    %24 = tpu.matmul %21, %23, %cst_21 {dimension_numbers = #tpu.dot_dimension_numbers<[1], [0], [0], [1], [0, 0, 1, 1], [], []>} : vector<256x4xf32>, vector<4x4xf32>, vector<256x4xf32> -> vector<256x4xf32>
    %25 = arith.addf %19, %24 : vector<256x4xf32>
    %26 = vector.extract_strided_slice %7 {offsets = [1, 0, 0], sizes = [16, 16, 4], strides = [1, 1, 1]} : vector<18x18x4xf32> to vector<16x16x4xf32>
    %27 = vector.shape_cast %26 : vector<16x16x4xf32> to vector<256x4xf32>
    %28 = vector.extract_strided_slice %8 {offsets = [1, 0, 0, 0], sizes = [1, 1, 4, 4], strides = [1, 1, 1, 1]} : vector<3x3x4x4xf32> to vector<1x1x4x4xf32>
    %29 = vector.shape_cast %28 : vector<1x1x4x4xf32> to vector<4x4xf32>
    %cst_22 = arith.constant dense<0.000000e+00> : vector<256x4xf32>
    %30 = tpu.matmul %27, %29, %cst_22 {dimension_numbers = #tpu.dot_dimension_numbers<[1], [0], [0], [1], [0, 0, 1, 1], [], []>} : vector<256x4xf32>, vector<4x4xf32>, vector<256x4xf32> -> vector<256x4xf32>
    %31 = arith.addf %25, %30 : vector<256x4xf32>
    %32 = vector.extract_strided_slice %7 {offsets = [1, 1, 0], sizes = [16, 16, 4], strides = [1, 1, 1]} : vector<18x18x4xf32> to vector<16x16x4xf32>
    %33 = vector.shape_cast %32 : vector<16x16x4xf32> to vector<256x4xf32>
    %34 = vector.extract_strided_slice %8 {offsets = [1, 1, 0, 0], sizes = [1, 1, 4, 4], strides = [1, 1, 1, 1]} : vector<3x3x4x4xf32> to vector<1x1x4x4xf32>
    %35 = vector.shape_cast %34 : vector<1x1x4x4xf32> to vector<4x4xf32>
    %cst_23 = arith.constant dense<0.000000e+00> : vector<256x4xf32>
    %36 = tpu.matmul %33, %35, %cst_23 {dimension_numbers = #tpu.dot_dimension_numbers<[1], [0], [0], [1], [0, 0, 1, 1], [], []>} : vector<256x4xf32>, vector<4x4xf32>, vector<256x4xf32> -> vector<256x4xf32>
    %37 = arith.addf %31, %36 : vector<256x4xf32>
    %38 = vector.extract_strided_slice %7 {offsets = [1, 2, 0], sizes = [16, 16, 4], strides = [1, 1, 1]} : vector<18x18x4xf32> to vector<16x16x4xf32>
    %39 = vector.shape_cast %38 : vector<16x16x4xf32> to vector<256x4xf32>
    %40 = vector.extract_strided_slice %8 {offsets = [1, 2, 0, 0], sizes = [1, 1, 4, 4], strides = [1, 1, 1, 1]} : vector<3x3x4x4xf32> to vector<1x1x4x4xf32>
    %41 = vector.shape_cast %40 : vector<1x1x4x4xf32> to vector<4x4xf32>
    %cst_24 = arith.constant dense<0.000000e+00> : vector<256x4xf32>
    %42 = tpu.matmul %39, %41, %cst_24 {dimension_numbers = #tpu.dot_dimension_numbers<[1], [0], [0], [1], [0, 0, 1, 1], [], []>} : vector<256x4xf32>, vector<4x4xf32>, vector<256x4xf32> -> vector<256x4xf32>
    %43 = arith.addf %37, %42 : vector<256x4xf32>
    %44 = vector.extract_strided_slice %7 {offsets = [2, 0, 0], sizes = [16, 16, 4], strides = [1, 1, 1]} : vector<18x18x4xf32> to vector<16x16x4xf32>
    %45 = vector.shape_cast %44 : vector<16x16x4xf32> to vector<256x4xf32>
    %46 = vector.extract_strided_slice %8 {offsets = [2, 0, 0, 0], sizes = [1, 1, 4, 4], strides = [1, 1, 1, 1]} : vector<3x3x4x4xf32> to vector<1x1x4x4xf32>
    %47 = vector.shape_cast %46 : vector<1x1x4x4xf32> to vector<4x4xf32>
    %cst_25 = arith.constant dense<0.000000e+00> : vector<256x4xf32>
    %48 = tpu.matmul %45, %47, %cst_25 {dimension_numbers = #tpu.dot_dimension_numbers<[1], [0], [0], [1], [0, 0, 1, 1], [], []>} : vector<256x4xf32>, vector<4x4xf32>, vector<256x4xf32> -> vector<256x4xf32>
    %49 = arith.addf %43, %48 : vector<256x4xf32>
    %50 = vector.extract_strided_slice %7 {offsets = [2, 1, 0], sizes = [16, 16, 4], strides = [1, 1, 1]} : vector<18x18x4xf32> to vector<16x16x4xf32>
    %51 = vector.shape_cast %50 : vector<16x16x4xf32> to vector<256x4xf32>
    %52 = vector.extract_strided_slice %8 {offsets = [2, 1, 0, 0], sizes = [1, 1, 4, 4], strides = [1, 1, 1, 1]} : vector<3x3x4x4xf32> to vector<1x1x4x4xf32>
    %53 = vector.shape_cast %52 : vector<1x1x4x4xf32> to vector<4x4xf32>
    %cst_26 = arith.constant dense<0.000000e+00> : vector<256x4xf32>
    %54 = tpu.matmul %51, %53, %cst_26 {dimension_numbers = #tpu.dot_dimension_numbers<[1], [0], [0], [1], [0, 0, 1, 1], [], []>} : vector<256x4xf32>, vector<4x4xf32>, vector<256x4xf32> -> vector<256x4xf32>
    %55 = arith.addf %49, %54 : vector<256x4xf32>
    %56 = vector.extract_strided_slice %7 {offsets = [2, 2, 0], sizes = [16, 16, 4], strides = [1, 1, 1]} : vector<18x18x4xf32> to vector<16x16x4xf32>
    %57 = vector.shape_cast %56 : vector<16x16x4xf32> to vector<256x4xf32>
    %58 = vector.extract_strided_slice %8 {offsets = [2, 2, 0, 0], sizes = [1, 1, 4, 4], strides = [1, 1, 1, 1]} : vector<3x3x4x4xf32> to vector<1x1x4x4xf32>
    %59 = vector.shape_cast %58 : vector<1x1x4x4xf32> to vector<4x4xf32>
    %cst_27 = arith.constant dense<0.000000e+00> : vector<256x4xf32>
    %60 = tpu.matmul %57, %59, %cst_27 {dimension_numbers = #tpu.dot_dimension_numbers<[1], [0], [0], [1], [0, 0, 1, 1], [], []>} : vector<256x4xf32>, vector<4x4xf32>, vector<256x4xf32> -> vector<256x4xf32>
    %61 = arith.addf %55, %60 : vector<256x4xf32>
    %c0_28 = arith.constant 0 : index
    %c0_29 = arith.constant 0 : index
    %62 = vector.load %arg4[%c0_28, %c0_29] : memref<1x4xf32, #tpu.memory_space<vmem>>, vector<1x4xf32>
    %63 = vector.broadcast %62 : vector<1x4xf32> to vector<256x4xf32>
    %64 = arith.mulf %61, %63 : vector<256x4xf32>
    %c0_30 = arith.constant 0 : index
    %c0_31 = arith.constant 0 : index
    %65 = vector.load %arg5[%c0_30, %c0_31] : memref<1x4xf32, #tpu.memory_space<vmem>>, vector<1x4xf32>
    %66 = vector.broadcast %65 : vector<1x4xf32> to vector<256x4xf32>
    %67 = arith.addf %64, %66 : vector<256x4xf32>
    %cst_32 = arith.constant 0.000000e+00 : f32
    %68 = vector.broadcast %cst_32 : f32 to vector<256x4xf32>
    %69 = arith.maximumf %67, %68 : vector<256x4xf32>
    %70 = vector.shape_cast %69 : vector<256x4xf32> to vector<16x16x4xf32>
    %71 = arith.addf %3, %70 : vector<16x16x4xf32>
    %c1_33 = arith.constant 1 : index
    %c1_34 = arith.constant 1 : index
    %c0_35 = arith.constant 0 : index
    %72 = vector.load %arg13[%c1_33, %c1_34, %c0_35] : memref<18x18x4xf32, #tpu.memory_space<vmem>>, vector<16x16x4xf32>
    tpu.vector_store %arg13[%c1_33, %c1_34, %c0_35], %71 {strides = array<i32>} : memref<18x18x4xf32, #tpu.memory_space<vmem>>, vector<16x16x4xf32>,
    %c0_36 = arith.constant 0 : index
    %c0_37 = arith.constant 0 : index
    %c0_38 = arith.constant 0 : index
    %73 = vector.load %arg13[%c0_36, %c0_37, %c0_38] : memref<18x18x4xf32, #tpu.memory_space<vmem>>, vector<18x18x4xf32>
    %c0_39 = arith.constant 0 : index
    %c0_40 = arith.constant 0 : index
    %c0_41 = arith.constant 0 : index
    %c0_42 = arith.constant 0 : index
    %74 = vector.load %arg6[%c0_39, %c0_40, %c0_41, %c0_42] : memref<3x3x4x4xf32, #tpu.memory_space<vmem>>, vector<3x3x4x4xf32>
    %75 = vector.extract_strided_slice %73 {offsets = [0, 0, 0], sizes = [16, 16, 4], strides = [1, 1, 1]} : vector<18x18x4xf32> to vector<16x16x4xf32>
    %76 = vector.shape_cast %75 : vector<16x16x4xf32> to vector<256x4xf32>
    %77 = vector.extract_strided_slice %74 {offsets = [0, 0, 0, 0], sizes = [1, 1, 4, 4], strides = [1, 1, 1, 1]} : vector<3x3x4x4xf32> to vector<1x1x4x4xf32>
    %78 = vector.shape_cast %77 : vector<1x1x4x4xf32> to vector<4x4xf32>
    %cst_43 = arith.constant dense<0.000000e+00> : vector<256x4xf32>
    %79 = tpu.matmul %76, %78, %cst_43 {dimension_numbers = #tpu.dot_dimension_numbers<[1], [0], [0], [1], [0, 0, 1, 1], [], []>} : vector<256x4xf32>, vector<4x4xf32>, vector<256x4xf32> -> vector<256x4xf32>
    %80 = vector.extract_strided_slice %73 {offsets = [0, 1, 0], sizes = [16, 16, 4], strides = [1, 1, 1]} : vector<18x18x4xf32> to vector<16x16x4xf32>
    %81 = vector.shape_cast %80 : vector<16x16x4xf32> to vector<256x4xf32>
    %82 = vector.extract_strided_slice %74 {offsets = [0, 1, 0, 0], sizes = [1, 1, 4, 4], strides = [1, 1, 1, 1]} : vector<3x3x4x4xf32> to vector<1x1x4x4xf32>
    %83 = vector.shape_cast %82 : vector<1x1x4x4xf32> to vector<4x4xf32>
    %cst_44 = arith.constant dense<0.000000e+00> : vector<256x4xf32>
    %84 = tpu.matmul %81, %83, %cst_44 {dimension_numbers = #tpu.dot_dimension_numbers<[1], [0], [0], [1], [0, 0, 1, 1], [], []>} : vector<256x4xf32>, vector<4x4xf32>, vector<256x4xf32> -> vector<256x4xf32>
    %85 = arith.addf %79, %84 : vector<256x4xf32>
    %86 = vector.extract_strided_slice %73 {offsets = [0, 2, 0], sizes = [16, 16, 4], strides = [1, 1, 1]} : vector<18x18x4xf32> to vector<16x16x4xf32>
    %87 = vector.shape_cast %86 : vector<16x16x4xf32> to vector<256x4xf32>
    %88 = vector.extract_strided_slice %74 {offsets = [0, 2, 0, 0], sizes = [1, 1, 4, 4], strides = [1, 1, 1, 1]} : vector<3x3x4x4xf32> to vector<1x1x4x4xf32>
    %89 = vector.shape_cast %88 : vector<1x1x4x4xf32> to vector<4x4xf32>
    %cst_45 = arith.constant dense<0.000000e+00> : vector<256x4xf32>
    %90 = tpu.matmul %87, %89, %cst_45 {dimension_numbers = #tpu.dot_dimension_numbers<[1], [0], [0], [1], [0, 0, 1, 1], [], []>} : vector<256x4xf32>, vector<4x4xf32>, vector<256x4xf32> -> vector<256x4xf32>
    %91 = arith.addf %85, %90 : vector<256x4xf32>
    %92 = vector.extract_strided_slice %73 {offsets = [1, 0, 0], sizes = [16, 16, 4], strides = [1, 1, 1]} : vector<18x18x4xf32> to vector<16x16x4xf32>
    %93 = vector.shape_cast %92 : vector<16x16x4xf32> to vector<256x4xf32>
    %94 = vector.extract_strided_slice %74 {offsets = [1, 0, 0, 0], sizes = [1, 1, 4, 4], strides = [1, 1, 1, 1]} : vector<3x3x4x4xf32> to vector<1x1x4x4xf32>
    %95 = vector.shape_cast %94 : vector<1x1x4x4xf32> to vector<4x4xf32>
    %cst_46 = arith.constant dense<0.000000e+00> : vector<256x4xf32>
    %96 = tpu.matmul %93, %95, %cst_46 {dimension_numbers = #tpu.dot_dimension_numbers<[1], [0], [0], [1], [0, 0, 1, 1], [], []>} : vector<256x4xf32>, vector<4x4xf32>, vector<256x4xf32> -> vector<256x4xf32>
    %97 = arith.addf %91, %96 : vector<256x4xf32>
    %98 = vector.extract_strided_slice %73 {offsets = [1, 1, 0], sizes = [16, 16, 4], strides = [1, 1, 1]} : vector<18x18x4xf32> to vector<16x16x4xf32>
    %99 = vector.shape_cast %98 : vector<16x16x4xf32> to vector<256x4xf32>
    %100 = vector.extract_strided_slice %74 {offsets = [1, 1, 0, 0], sizes = [1, 1, 4, 4], strides = [1, 1, 1, 1]} : vector<3x3x4x4xf32> to vector<1x1x4x4xf32>
    %101 = vector.shape_cast %100 : vector<1x1x4x4xf32> to vector<4x4xf32>
    %cst_47 = arith.constant dense<0.000000e+00> : vector<256x4xf32>
    %102 = tpu.matmul %99, %101, %cst_47 {dimension_numbers = #tpu.dot_dimension_numbers<[1], [0], [0], [1], [0, 0, 1, 1], [], []>} : vector<256x4xf32>, vector<4x4xf32>, vector<256x4xf32> -> vector<256x4xf32>
    %103 = arith.addf %97, %102 : vector<256x4xf32>
    %104 = vector.extract_strided_slice %73 {offsets = [1, 2, 0], sizes = [16, 16, 4], strides = [1, 1, 1]} : vector<18x18x4xf32> to vector<16x16x4xf32>
    %105 = vector.shape_cast %104 : vector<16x16x4xf32> to vector<256x4xf32>
    %106 = vector.extract_strided_slice %74 {offsets = [1, 2, 0, 0], sizes = [1, 1, 4, 4], strides = [1, 1, 1, 1]} : vector<3x3x4x4xf32> to vector<1x1x4x4xf32>
    %107 = vector.shape_cast %106 : vector<1x1x4x4xf32> to vector<4x4xf32>
    %cst_48 = arith.constant dense<0.000000e+00> : vector<256x4xf32>
    %108 = tpu.matmul %105, %107, %cst_48 {dimension_numbers = #tpu.dot_dimension_numbers<[1], [0], [0], [1], [0, 0, 1, 1], [], []>} : vector<256x4xf32>, vector<4x4xf32>, vector<256x4xf32> -> vector<256x4xf32>
    %109 = arith.addf %103, %108 : vector<256x4xf32>
    %110 = vector.extract_strided_slice %73 {offsets = [2, 0, 0], sizes = [16, 16, 4], strides = [1, 1, 1]} : vector<18x18x4xf32> to vector<16x16x4xf32>
    %111 = vector.shape_cast %110 : vector<16x16x4xf32> to vector<256x4xf32>
    %112 = vector.extract_strided_slice %74 {offsets = [2, 0, 0, 0], sizes = [1, 1, 4, 4], strides = [1, 1, 1, 1]} : vector<3x3x4x4xf32> to vector<1x1x4x4xf32>
    %113 = vector.shape_cast %112 : vector<1x1x4x4xf32> to vector<4x4xf32>
    %cst_49 = arith.constant dense<0.000000e+00> : vector<256x4xf32>
    %114 = tpu.matmul %111, %113, %cst_49 {dimension_numbers = #tpu.dot_dimension_numbers<[1], [0], [0], [1], [0, 0, 1, 1], [], []>} : vector<256x4xf32>, vector<4x4xf32>, vector<256x4xf32> -> vector<256x4xf32>
    %115 = arith.addf %109, %114 : vector<256x4xf32>
    %116 = vector.extract_strided_slice %73 {offsets = [2, 1, 0], sizes = [16, 16, 4], strides = [1, 1, 1]} : vector<18x18x4xf32> to vector<16x16x4xf32>
    %117 = vector.shape_cast %116 : vector<16x16x4xf32> to vector<256x4xf32>
    %118 = vector.extract_strided_slice %74 {offsets = [2, 1, 0, 0], sizes = [1, 1, 4, 4], strides = [1, 1, 1, 1]} : vector<3x3x4x4xf32> to vector<1x1x4x4xf32>
    %119 = vector.shape_cast %118 : vector<1x1x4x4xf32> to vector<4x4xf32>
    %cst_50 = arith.constant dense<0.000000e+00> : vector<256x4xf32>
    %120 = tpu.matmul %117, %119, %cst_50 {dimension_numbers = #tpu.dot_dimension_numbers<[1], [0], [0], [1], [0, 0, 1, 1], [], []>} : vector<256x4xf32>, vector<4x4xf32>, vector<256x4xf32> -> vector<256x4xf32>
    %121 = arith.addf %115, %120 : vector<256x4xf32>
    %122 = vector.extract_strided_slice %73 {offsets = [2, 2, 0], sizes = [16, 16, 4], strides = [1, 1, 1]} : vector<18x18x4xf32> to vector<16x16x4xf32>
    %123 = vector.shape_cast %122 : vector<16x16x4xf32> to vector<256x4xf32>
    %124 = vector.extract_strided_slice %74 {offsets = [2, 2, 0, 0], sizes = [1, 1, 4, 4], strides = [1, 1, 1, 1]} : vector<3x3x4x4xf32> to vector<1x1x4x4xf32>
    %125 = vector.shape_cast %124 : vector<1x1x4x4xf32> to vector<4x4xf32>
    %cst_51 = arith.constant dense<0.000000e+00> : vector<256x4xf32>
    %126 = tpu.matmul %123, %125, %cst_51 {dimension_numbers = #tpu.dot_dimension_numbers<[1], [0], [0], [1], [0, 0, 1, 1], [], []>} : vector<256x4xf32>, vector<4x4xf32>, vector<256x4xf32> -> vector<256x4xf32>
    %127 = arith.addf %121, %126 : vector<256x4xf32>
    %c0_52 = arith.constant 0 : index
    %c0_53 = arith.constant 0 : index
    %128 = vector.load %arg7[%c0_52, %c0_53] : memref<1x4xf32, #tpu.memory_space<vmem>>, vector<1x4xf32>
    %129 = vector.broadcast %128 : vector<1x4xf32> to vector<256x4xf32>
    %130 = arith.mulf %127, %129 : vector<256x4xf32>
    %c0_54 = arith.constant 0 : index
    %c0_55 = arith.constant 0 : index
    %131 = vector.load %arg8[%c0_54, %c0_55] : memref<1x4xf32, #tpu.memory_space<vmem>>, vector<1x4xf32>
    %132 = vector.broadcast %131 : vector<1x4xf32> to vector<256x4xf32>
    %133 = arith.addf %130, %132 : vector<256x4xf32>
    %cst_56 = arith.constant 0.000000e+00 : f32
    %134 = vector.broadcast %cst_56 : f32 to vector<256x4xf32>
    %135 = arith.maximumf %133, %134 : vector<256x4xf32>
    %136 = vector.shape_cast %135 : vector<256x4xf32> to vector<16x16x4xf32>
    %137 = vector.extract_strided_slice %136 {offsets = [0, 0, 0], sizes = [1, 16, 4], strides = [1, 1, 1]} : vector<16x16x4xf32> to vector<1x16x4xf32>
    %138 = vector.extract_strided_slice %136 {offsets = [0, 0, 0], sizes = [15, 16, 4], strides = [1, 1, 1]} : vector<16x16x4xf32> to vector<15x16x4xf32>
    %139 = tpu.concatenate %137, %138 in 0 : vector<1x16x4xf32>, vector<15x16x4xf32> -> vector<16x16x4xf32>
    %140 = vector.extract_strided_slice %136 {offsets = [1, 0, 0], sizes = [15, 16, 4], strides = [1, 1, 1]} : vector<16x16x4xf32> to vector<15x16x4xf32>
    %141 = vector.extract_strided_slice %136 {offsets = [15, 0, 0], sizes = [1, 16, 4], strides = [1, 1, 1]} : vector<16x16x4xf32> to vector<1x16x4xf32>
    %142 = tpu.concatenate %140, %141 in 0 : vector<15x16x4xf32>, vector<1x16x4xf32> -> vector<16x16x4xf32>
    %cst_57 = arith.constant 7.500000e-01 : f32
    %143 = vector.broadcast %cst_57 : f32 to vector<16x16x4xf32>
    %144 = arith.mulf %143, %136 : vector<16x16x4xf32>
    %cst_58 = arith.constant 2.500000e-01 : f32
    %145 = vector.broadcast %cst_58 : f32 to vector<16x16x4xf32>
    %146 = arith.mulf %145, %139 : vector<16x16x4xf32>
    %147 = arith.addf %144, %146 : vector<16x16x4xf32>
    %cst_59 = arith.constant 7.500000e-01 : f32
    %148 = vector.broadcast %cst_59 : f32 to vector<16x16x4xf32>
    %149 = arith.mulf %148, %136 : vector<16x16x4xf32>
    %cst_60 = arith.constant 2.500000e-01 : f32
    %150 = vector.broadcast %cst_60 : f32 to vector<16x16x4xf32>
    %151 = arith.mulf %150, %142 : vector<16x16x4xf32>
    %152 = arith.addf %149, %151 : vector<16x16x4xf32>
    %153 = vector.shape_cast %147 : vector<16x16x4xf32> to vector<16x1x16x4xf32>
    %154 = vector.shape_cast %152 : vector<16x16x4xf32> to vector<16x1x16x4xf32>
    %155 = tpu.concatenate %153, %154 in 1 : vector<16x1x16x4xf32>, vector<16x1x16x4xf32> -> vector<16x2x16x4xf32>
    %156 = vector.shape_cast %155 : vector<16x2x16x4xf32> to vector<32x16x4xf32>
    %c0_61 = arith.constant 0 : index
    %c1_62 = arith.constant 1 : index
    %c0_63 = arith.constant 0 : index
    %157 = vector.load %arg14[%c0_61, %c1_62, %c0_63] : memref<32x18x4xf32, #tpu.memory_space<vmem>>, vector<32x16x4xf32>
    tpu.vector_store %arg14[%c0_61, %c1_62, %c0_63], %156 {strides = array<i32>} : memref<32x18x4xf32, #tpu.memory_space<vmem>>, vector<32x16x4xf32>,
    %158 = vector.extract_strided_slice %156 {offsets = [0, 0, 0], sizes = [32, 1, 4], strides = [1, 1, 1]} : vector<32x16x4xf32> to vector<32x1x4xf32>
    %c0_64 = arith.constant 0 : index
    %c0_65 = arith.constant 0 : index
    %c0_66 = arith.constant 0 : index
    %159 = vector.load %arg14[%c0_64, %c0_65, %c0_66] : memref<32x18x4xf32, #tpu.memory_space<vmem>>, vector<32x1x4xf32>
    tpu.vector_store %arg14[%c0_64, %c0_65, %c0_66], %158 {strides = array<i32>} : memref<32x18x4xf32, #tpu.memory_space<vmem>>, vector<32x1x4xf32>,
    %160 = vector.extract_strided_slice %156 {offsets = [0, 15, 0], sizes = [32, 1, 4], strides = [1, 1, 1]} : vector<32x16x4xf32> to vector<32x1x4xf32>
    %c0_67 = arith.constant 0 : index
    %c17 = arith.constant 17 : index
    %c0_68 = arith.constant 0 : index
    %161 = vector.load %arg14[%c0_67, %c17, %c0_68] : memref<32x18x4xf32, #tpu.memory_space<vmem>>, vector<32x1x4xf32>
    tpu.vector_store %arg14[%c0_67, %c17, %c0_68], %160 {strides = array<i32>} : memref<32x18x4xf32, #tpu.memory_space<vmem>>, vector<32x1x4xf32>,
    %c0_69 = arith.constant 0 : index
    %c0_70 = arith.constant 0 : index
    %c0_71 = arith.constant 0 : index
    %162 = vector.load %arg14[%c0_69, %c0_70, %c0_71] : memref<32x18x4xf32, #tpu.memory_space<vmem>>, vector<32x18x4xf32>
    %cst_72 = arith.constant 7.500000e-01 : f32
    %163 = vector.broadcast %cst_72 : f32 to vector<32x16x4xf32>
    %164 = arith.mulf %163, %156 : vector<32x16x4xf32>
    %165 = vector.extract_strided_slice %162 {offsets = [0, 0, 0], sizes = [32, 16, 4], strides = [1, 1, 1]} : vector<32x18x4xf32> to vector<32x16x4xf32>
    %cst_73 = arith.constant 2.500000e-01 : f32
    %166 = vector.broadcast %cst_73 : f32 to vector<32x16x4xf32>
    %167 = arith.mulf %166, %165 : vector<32x16x4xf32>
    %168 = arith.addf %164, %167 : vector<32x16x4xf32>
    %cst_74 = arith.constant 7.500000e-01 : f32
    %169 = vector.broadcast %cst_74 : f32 to vector<32x16x4xf32>
    %170 = arith.mulf %169, %156 : vector<32x16x4xf32>
    %171 = vector.extract_strided_slice %162 {offsets = [0, 2, 0], sizes = [32, 16, 4], strides = [1, 1, 1]} : vector<32x18x4xf32> to vector<32x16x4xf32>
    %cst_75 = arith.constant 2.500000e-01 : f32
    %172 = vector.broadcast %cst_75 : f32 to vector<32x16x4xf32>
    %173 = arith.mulf %172, %171 : vector<32x16x4xf32>
    %174 = arith.addf %170, %173 : vector<32x16x4xf32>
    %c0_76 = arith.constant 0 : index
    %c0_77 = arith.constant 0 : index
    %175 = vector.load %arg9[%c0_76, %c0_77] : memref<8x4xf32, #tpu.memory_space<vmem>>, vector<8x4xf32>
    %c0_78 = arith.constant 0 : index
    %c0_79 = arith.constant 0 : index
    %176 = vector.load %arg10[%c0_78, %c0_79] : memref<8x1xf32, #tpu.memory_space<vmem>>, vector<8x1xf32>
    %177 = vector.shape_cast %168 : vector<32x16x4xf32> to vector<512x4xf32>
    %cst_80 = arith.constant dense<0.000000e+00> : vector<8x512xf32>
    %178 = tpu.matmul %175, %177, %cst_80 {dimension_numbers = #tpu.dot_dimension_numbers<[1], [1], [0], [0], [0, 0, 1, 0], [], []>} : vector<8x4xf32>, vector<512x4xf32>, vector<8x512xf32> -> vector<8x512xf32>
    %179 = vector.shape_cast %174 : vector<32x16x4xf32> to vector<512x4xf32>
    %cst_81 = arith.constant dense<0.000000e+00> : vector<8x512xf32>
    %180 = tpu.matmul %175, %179, %cst_81 {dimension_numbers = #tpu.dot_dimension_numbers<[1], [1], [0], [0], [0, 0, 1, 0], [], []>} : vector<8x4xf32>, vector<512x4xf32>, vector<8x512xf32> -> vector<8x512xf32>
    %181 = vector.broadcast %176 : vector<8x1xf32> to vector<8x512xf32>
    %182 = arith.addf %178, %181 : vector<8x512xf32>
    %cst_82 = arith.constant 0.000000e+00 : f32
    %183 = vector.broadcast %cst_82 : f32 to vector<8x512xf32>
    %184 = arith.maximumf %182, %183 : vector<8x512xf32>
    %c0_83 = arith.constant 0 : index
    %c0_84 = arith.constant 0 : index
    %c0_85 = arith.constant 0 : index
    %185 = vector.load %arg11[%c0_83, %c0_84, %c0_85] : memref<1x8x512xf32, #tpu.memory_space<vmem>>, vector<1x8x512xf32>
    %186 = vector.shape_cast %185 : vector<1x8x512xf32> to vector<8x512xf32>
    %187 = vector.shape_cast %184 : vector<8x512xf32> to vector<1x8x512xf32>
    tpu.vector_store %arg11[%c0_83, %c0_84, %c0_85], %187 {strides = array<i32>} : memref<1x8x512xf32, #tpu.memory_space<vmem>>, vector<1x8x512xf32>,
    %188 = vector.broadcast %176 : vector<8x1xf32> to vector<8x512xf32>
    %189 = arith.addf %180, %188 : vector<8x512xf32>
    %cst_86 = arith.constant 0.000000e+00 : f32
    %190 = vector.broadcast %cst_86 : f32 to vector<8x512xf32>
    %191 = arith.maximumf %189, %190 : vector<8x512xf32>
    %c0_87 = arith.constant 0 : index
    %c0_88 = arith.constant 0 : index
    %c0_89 = arith.constant 0 : index
    %192 = vector.load %arg12[%c0_87, %c0_88, %c0_89] : memref<1x8x512xf32, #tpu.memory_space<vmem>>, vector<1x8x512xf32>
    %193 = vector.shape_cast %192 : vector<1x8x512xf32> to vector<8x512xf32>
    %194 = vector.shape_cast %191 : vector<8x512xf32> to vector<1x8x512xf32>
    tpu.vector_store %arg12[%c0_87, %c0_88, %c0_89], %194 {strides = array<i32>} : memref<1x8x512xf32, #tpu.memory_space<vmem>>, vector<1x8x512xf32>,
    return
  }
  func.func @transform_0(%arg0: i32) -> (i32, i32, i32, i32) {
    %c0_i32 = arith.constant 0 : i32
    %c0_i32_0 = arith.constant 0 : i32
    %c0_i32_1 = arith.constant 0 : i32
    %c0_i32_2 = arith.constant 0 : i32
    return %arg0, %c0_i32, %c0_i32_0, %c0_i32_1 : i32, i32, i32, i32
  }
  func.func @transform_1(%arg0: i32) -> (i32, i32, i32, i32) {
    %c0_i32 = arith.constant 0 : i32
    %c0_i32_0 = arith.constant 0 : i32
    %c0_i32_1 = arith.constant 0 : i32
    %c0_i32_2 = arith.constant 0 : i32
    return %arg0, %c0_i32, %c0_i32_0, %c0_i32_1 : i32, i32, i32, i32
  }
  func.func @transform_2(%arg0: i32) -> (i32, i32, i32, i32) {
    %c0_i32 = arith.constant 0 : i32
    %c0_i32_0 = arith.constant 0 : i32
    %c0_i32_1 = arith.constant 0 : i32
    %c0_i32_2 = arith.constant 0 : i32
    %c0_i32_3 = arith.constant 0 : i32
    return %c0_i32, %c0_i32_0, %c0_i32_1, %c0_i32_2 : i32, i32, i32, i32
  }
  func.func @transform_3(%arg0: i32) -> (i32, i32) {
    %c0_i32 = arith.constant 0 : i32
    %c0_i32_0 = arith.constant 0 : i32
    %c0_i32_1 = arith.constant 0 : i32
    return %c0_i32, %c0_i32_0 : i32, i32
  }
  func.func @transform_4(%arg0: i32) -> (i32, i32) {
    %c0_i32 = arith.constant 0 : i32
    %c0_i32_0 = arith.constant 0 : i32
    %c0_i32_1 = arith.constant 0 : i32
    return %c0_i32, %c0_i32_0 : i32, i32
  }
  func.func @transform_5(%arg0: i32) -> (i32, i32, i32, i32) {
    %c0_i32 = arith.constant 0 : i32
    %c0_i32_0 = arith.constant 0 : i32
    %c0_i32_1 = arith.constant 0 : i32
    %c0_i32_2 = arith.constant 0 : i32
    %c0_i32_3 = arith.constant 0 : i32
    return %c0_i32, %c0_i32_0, %c0_i32_1, %c0_i32_2 : i32, i32, i32, i32
  }
  func.func @transform_6(%arg0: i32) -> (i32, i32) {
    %c0_i32 = arith.constant 0 : i32
    %c0_i32_0 = arith.constant 0 : i32
    %c0_i32_1 = arith.constant 0 : i32
    return %c0_i32, %c0_i32_0 : i32, i32
  }
  func.func @transform_7(%arg0: i32) -> (i32, i32) {
    %c0_i32 = arith.constant 0 : i32
    %c0_i32_0 = arith.constant 0 : i32
    %c0_i32_1 = arith.constant 0 : i32
    return %c0_i32, %c0_i32_0 : i32, i32
  }
  func.func @transform_8(%arg0: i32) -> (i32, i32) {
    %c0_i32 = arith.constant 0 : i32
    %c0_i32_0 = arith.constant 0 : i32
    %c0_i32_1 = arith.constant 0 : i32
    return %c0_i32, %c0_i32_0 : i32, i32
  }
  func.func @transform_9(%arg0: i32) -> (i32, i32) {
    %c0_i32 = arith.constant 0 : i32
    %c0_i32_0 = arith.constant 0 : i32
    %c0_i32_1 = arith.constant 0 : i32
    return %c0_i32, %c0_i32_0 : i32, i32
  }
  func.func @transform_10(%arg0: i32) -> (i32, i32, i32) {
    %c0_i32 = arith.constant 0 : i32
    %c0_i32_0 = arith.constant 0 : i32
    %c0_i32_1 = arith.constant 0 : i32
    return %arg0, %c0_i32, %c0_i32_0 : i32, i32, i32
  }
  func.func @transform_11(%arg0: i32) -> (i32, i32, i32) {
    %c0_i32 = arith.constant 0 : i32
    %c0_i32_0 = arith.constant 0 : i32
    %c0_i32_1 = arith.constant 0 : i32
    return %arg0, %c0_i32, %c0_i32_0 : i32, i32, i32
  }
}

</mosaic_0001>

<bundles_post_ra>
// kernel: upsampler_block_forward.1
= control target key start
LH: loop header
LB: loop body
LE: loop exit
PB: predicated region body
PF: predicated region fallthrough
CT: control target
= control target key end

     0   :  { %s11367_s17 = smov 0   ;;  %s15347_s0 = inlined_call_operand.vmem [shape: f32[2,16,16,4], index: 0, kind: input, shape index: {}]   ;;  %s15348_s1 = inlined_call_operand.vmem [shape: f32[2,16,16,4], index: 1, kind: input, shape index: {}]   ;;  %s15349_s2 = inlined_call_operand.vmem [shape: f32[3,3,4,4], index: 2, kind: input, shape index: {}]   ;;  %s15350_s3 = inlined_call_operand.vmem [shape: f32[1,4], index: 3, kind: input, shape index: {}]   ;;  %s15351_s4 = inlined_call_operand.vmem [shape: f32[1,4], index: 4, kind: input, shape index: {}]   ;;  %s15352_s5 = inlined_call_operand.vmem [shape: f32[3,3,4,4], index: 5, kind: input, shape index: {}]   ;;  %s15353_s6 = inlined_call_operand.vmem [shape: f32[1,4], index: 6, kind: input, shape index: {}]   ;;  %s15354_s7 = inlined_call_operand.vmem [shape: f32[1,4], index: 7, kind: input, shape index: {}]   ;;  %s15355_s8 = inlined_call_operand.vmem [shape: f32[8,4], index: 8, kind: input, shape index: {}]   ;;  %s15356_s9 = inlined_call_operand.vmem [shape: f32[8,1], index: 9, kind: input, shape index: {}]   ;;  %s15357_s10 = inlined_call_operand.vmem [shape: f32[2,8,512], index: 10, kind: output, shape index: {0}]   ;;  %s15358_s11 = inlined_call_operand.vmem [shape: f32[2,8,512], index: 11, kind: output, shape index: {1}]  }
   0x1 LB: > { %s8194_s18 = sadd.s32 4294967295, %s11303_s17   ;;  %p8198_p0 = scmp.ge.s32.totalorder %s11303_s17, 1  ;;  %s11303_s17 = sphi %s11367_s17, %s22_s17  }
   0x2   : > { %p350_p1 = scmp.lt.s32.totalorder %s11303_s17, 3 }
   0x4   : > { %p351_p2 = pnand %p8198_p0, %p350_p1 }
   0x6   : > { %354 = sbr.rel (%p351_p2) target bundleno = 2004 (0x7d4), region = 60 }
   0xd   : > { %v628_v0 = vld [vmem:[%s15349_s2 + $0x4] sm:$0xf]  ;;  %vm829_vm0 = vcmask 1043456   ;;  %vm420_vm1 = vcmask 31744   ;;  %v11305_v1 = vmov 0.0   ;;  %vm423_vm2 = vcmask 25600  }
   0xe   : > { %9673 = vmatprep.subr.msk.mxu0 %vm829_vm0, %v628_v0  ;;  %421 = vst.msk [vmem:[#allocation2] sm:$0xff] %vm420_vm1, %v11305_v1  ;;  %422 = vst.msk [vmem:[#allocation2 + $0x8] sm:$0xff] %vm420_vm1, %v11305_v1  ;;  %v11418_v2 = vld [vmem:[%s15349_s2] sm:$0xf]  ;;  %p11422_p3 = scmp.lt.s32.totalorder %s8194_s18, 1  ;;  %vm684_vm3 = vcmask 1046528  }
   0xf   : > { %425 = vst.msk [vmem:[#allocation2 + $0x18] sm:$0xff] %vm420_vm1, %v11305_v1  ;;  %426 = vst.msk [vmem:[#allocation2 + $0x20] sm:$0xff] %vm420_vm1, %v11305_v1  ;;  %9674 = vmatpush3.msk.msra.mxu0 %vm829_vm0, %v628_v0  ;;  %v11488_v18 = vld [vmem:[%s15349_s2 + $0x8] sm:$0xf]  ;;  %vm1350_vm4 = vcmask 1045504   ;;  %vm6663_vm5 = vcmask 31751  }
  0x10   : > { %428 = vst.msk [vmem:[#allocation2 + $0x30] sm:$0xff] %vm420_vm1, %v11305_v1  ;;  %429 = vst.msk [vmem:[#allocation2 + $0x38] sm:$0xff] %vm420_vm1, %v11305_v1  ;;  %9723 = vmatprep.subr.msk.mxu0 %vm829_vm0, %v11418_v2  ;;  %s16100_s18 = smov (!%p11422_p3, %s8194_s18), 1  ;;  %vm6630_vm6 = vcmask 24576  }
  0x11   : > { %431 = vst.msk [vmem:[#allocation2 + $0x48] sm:$0xff] %vm420_vm1, %v11305_v1  ;;  %432 = vst.msk [vmem:[#allocation2 + $0x50] sm:$0xff] %vm420_vm1, %v11305_v1  ;;  %s8939_s24 = sshll.u32 %s16100_s18, 8  ;;  %s8941_s12 = sshll.u32 %s16100_s18, 5 }
  0x12   : > { %434 = vst.msk [vmem:[#allocation2 + $0x60] sm:$0xff] %vm420_vm1, %v11305_v1  ;;  %435 = vst.msk [vmem:[#allocation2 + $0x68] sm:$0xff] %vm420_vm1, %v11305_v1  ;;  %s11459_s27 = scalar_lea.vmem %s15348_s1, %s8939_s24  ;;  %s12591_s21 = scalar_lea.vmem %s15347_s0, %s8939_s24 }
  0x13   : > { %437 = vst.msk [vmem:[#allocation2 + $0x78] sm:$0xff] %vm420_vm1, %v11305_v1  ;;  %438 = vst.msk [vmem:[#allocation2 + $0x80] sm:$0xff] %vm420_vm1, %v11305_v1  ;;  %v508_v3 = vld [vmem:[%s11459_s27] sm:$0xff]  ;;  %v509_v4 = vld [vmem:[%s11459_s27 + $0x8] sm:$0xff]  ;;  %s414_s15 = scalar_lea.vmem %s15357_s10, %s8941_s12  ;;  %s419_s19 = scalar_lea.vmem %s15358_s11, %s8941_s12 }
  0x14   : > { %440 = vst.msk [vmem:[#allocation2 + $0x90] sm:$0xff] %vm420_vm1, %v11305_v1  ;;  %441 = vst.msk [vmem:[#allocation2 + $0x98] sm:$0xff] %vm420_vm1, %v11305_v1  ;;  %v510_v5 = vld [vmem:[%s11459_s27 + $0x10] sm:$0xff]  ;;  %v511_v8 = vld [vmem:[%s11459_s27 + $0x18] sm:$0xff] }
  0x15   : > { %443 = vst.msk [vmem:[#allocation2 + $0xa8] sm:$0xff] %vm420_vm1, %v11305_v1  ;;  %444 = vst.msk [vmem:[#allocation2 + $0xb0] sm:$0xff] %vm420_vm1, %v11305_v1  ;;  %v11464_v6 = vld [vmem:[#allocation2] sm:$0xff]  ;;  %v11466_v7 = vld [vmem:[#allocation2 + $0x8] sm:$0xff] }
  0x16   : > { %446 = vst.msk [vmem:[#allocation2 + $0xc0] sm:$0xff] %vm420_vm1, %v11305_v1  ;;  %447 = vst.msk [vmem:[#allocation2 + $0xc8] sm:$0xff] %vm420_vm1, %v11305_v1  ;;  %v685_v9 = vrot.slane %v11464_v6, 1  ;;  %v686_v10 = vrot.slane %v11466_v7, 1  ;;  %v512_v12 = vld [vmem:[%s11459_s27 + $0x20] sm:$0xff]  ;;  %v513_v13 = vld [vmem:[%s11459_s27 + $0x28] sm:$0xff] }
  0x17   : > { %449 = vst.msk [vmem:[#allocation2 + $0xd8] sm:$0xff] %vm420_vm1, %v11305_v1  ;;  %450 = vst.msk [vmem:[#allocation2 + $0xe0] sm:$0xff] %vm420_vm1, %v11305_v1  ;;  %v514_v15 = vld [vmem:[%s11459_s27 + $0x30] sm:$0xff]  ;;  %v515_v16 = vld [vmem:[%s11459_s27 + $0x38] sm:$0xff] }
  0x18   : > { %452 = vst.msk [vmem:[#allocation2 + $0xf0] sm:$0xff] %vm420_vm1, %v11305_v1  ;;  %453 = vst.msk [vmem:[#allocation2 + $0xf8] sm:$0xff] %vm420_vm1, %v11305_v1  ;;  %v516_v17 = vld [vmem:[%s11459_s27 + $0x40] sm:$0xff]  ;;  %v687_v19 = vsel %vm684_vm3, %v685_v9, %v686_v10  ;;  %v517_v20 = vld [vmem:[%s11459_s27 + $0x48] sm:$0xff] }
  0x19   : > { %455 = vst.msk [vmem:[#allocation2 + $0x108] sm:$0xff] %vm420_vm1, %v11305_v1  ;;  %456 = vst.msk [vmem:[#allocation2 + $0x110] sm:$0xff] %vm420_vm1, %v11305_v1  ;;  %v518_v21 = vld [vmem:[%s11459_s27 + $0x50] sm:$0xff]  ;;  %v519_v22 = vld [vmem:[%s11459_s27 + $0x58] sm:$0xff]  ;;  %9675 = vmatprep.mubr.msk.f32.mxu0 %vm420_vm1, %v687_v19 }
  0x1a   : > { %458 = vst.msk [vmem:[#allocation2 + $0x120] sm:$0xff] %vm420_vm1, %v11305_v1  ;;  %459 = vst.msk [vmem:[#allocation2 + $0x128] sm:$0xff] %vm420_vm1, %v11305_v1  ;;  %v520_v24 = vld [vmem:[%s11459_s27 + $0x60] sm:$0xff]  ;;  %v521_v25 = vld [vmem:[%s11459_s27 + $0x68] sm:$0xff] }
  0x1b   : > { %461 = vst.msk [vmem:[#allocation2 + $0x138] sm:$0xff] %vm420_vm1, %v11305_v1  ;;  %462 = vst.msk [vmem:[#allocation2 + $0x140] sm:$0xff] %vm420_vm1, %v11305_v1  ;;  %v522_v26 = vld [vmem:[%s11459_s27 + $0x70] sm:$0xff]  ;;  %v523_v27 = vld [vmem:[%s11459_s27 + $0x78] sm:$0xff] }
  0x1c   : > { %464 = vst.msk [vmem:[#allocation2 + $0x150] sm:$0xff] %vm420_vm1, %v11305_v1  ;;  %465 = vst.msk [vmem:[#allocation2 + $0x158] sm:$0xff] %vm420_vm1, %v11305_v1  ;;  %v524_v28 = vld [vmem:[%s11459_s27 + $0x80] sm:$0xff]  ;;  %v525_v29 = vld [vmem:[%s11459_s27 + $0x88] sm:$0xff] }
  0x1d   : > { %467 = vst.msk [vmem:[#allocation2 + $0x168] sm:$0xff] %vm420_vm1, %v11305_v1  ;;  %468 = vst.msk [vmem:[#allocation2 + $0x170] sm:$0xff] %vm420_vm1, %v11305_v1  ;;  %v526_v30 = vld [vmem:[%s11459_s27 + $0x90] sm:$0xff]  ;;  %v527_v31 = vld [vmem:[%s11459_s27 + $0x98] sm:$0xff] }
  0x1e   : > { %470 = vst.msk [vmem:[#allocation2 + $0x180] sm:$0xff] %vm420_vm1, %v11305_v1  ;;  %471 = vst.msk [vmem:[#allocation2 + $0x188] sm:$0xff] %vm420_vm1, %v11305_v1  ;;  %v528_v32 = vld [vmem:[%s11459_s27 + $0xa0] sm:$0xff]  ;;  %v529_v41 = vld [vmem:[%s11459_s27 + $0xa8] sm:$0xff] }
  0x1f   : > { %473 = vst.msk [vmem:[#allocation2 + $0x198] sm:$0xff] %vm420_vm1, %v11305_v1  ;;  %474 = vst.msk [vmem:[#allocation2 + $0x1a0] sm:$0xff] %vm420_vm1, %v11305_v1  ;;  %v535_v19 = vld [vmem:[%s11459_s27 + $0xd8] sm:$0xff] }
  0x20   : > { %424 = vst.msk [vmem:[#allocation2 + $0x10] sm:$0x3] %vm423_vm2, %v11305_v1  ;;  %427 = vst.msk [vmem:[#allocation2 + $0x28] sm:$0x3] %vm423_vm2, %v11305_v1 }
  0x21   : > { %430 = vst.msk [vmem:[#allocation2 + $0x40] sm:$0x3] %vm423_vm2, %v11305_v1  ;;  %433 = vst.msk [vmem:[#allocation2 + $0x58] sm:$0x3] %vm423_vm2, %v11305_v1 }
  0x22   : > { %436 = vst.msk [vmem:[#allocation2 + $0x70] sm:$0x3] %vm423_vm2, %v11305_v1  ;;  %439 = vst.msk [vmem:[#allocation2 + $0x88] sm:$0x3] %vm423_vm2, %v11305_v1 }
  0x23   : > { %442 = vst.msk [vmem:[#allocation2 + $0xa0] sm:$0x3] %vm423_vm2, %v11305_v1  ;;  %445 = vst.msk [vmem:[#allocation2 + $0xb8] sm:$0x3] %vm423_vm2, %v11305_v1 }
  0x24   : > { %448 = vst.msk [vmem:[#allocation2 + $0xd0] sm:$0x3] %vm423_vm2, %v11305_v1  ;;  %451 = vst.msk [vmem:[#allocation2 + $0xe8] sm:$0x3] %vm423_vm2, %v11305_v1 }
  0x25   : > { %454 = vst.msk [vmem:[#allocation2 + $0x100] sm:$0x3] %vm423_vm2, %v11305_v1  ;;  %457 = vst.msk [vmem:[#allocation2 + $0x118] sm:$0x3] %vm423_vm2, %v11305_v1 }
  0x26   : > { %460 = vst.msk [vmem:[#allocation2 + $0x130] sm:$0x3] %vm423_vm2, %v11305_v1  ;;  %463 = vst.msk [vmem:[#allocation2 + $0x148] sm:$0x3] %vm423_vm2, %v11305_v1 }
  0x27   : > { %466 = vst.msk [vmem:[#allocation2 + $0x160] sm:$0x3] %vm423_vm2, %v11305_v1  ;;  %469 = vst.msk [vmem:[#allocation2 + $0x178] sm:$0x3] %vm423_vm2, %v11305_v1  ;;  %v11474_v11 = vld [vmem:[#allocation2 + $0x10] sm:$0x3] }
  0x28   : > { %472 = vst.msk [vmem:[#allocation2 + $0x190] sm:$0x3] %vm423_vm2, %v11305_v1  ;;  %475 = vst.msk [vmem:[#allocation2 + $0x1a8] sm:$0x3] %vm423_vm2, %v11305_v1  ;;  %v688_v14 = vrot.slane %v11474_v11, 1 }
  0x29   : > { %541 = vst.msk [vmem:[#allocation2 + $0x19] sm:$0xff] %vm420_vm1, %v508_v3  ;;  %542 = vst.msk [vmem:[#allocation2 + $0x21] sm:$0xff] %vm420_vm1, %v509_v4 }
  0x2a   : > { %543 = vst.msk [vmem:[#allocation2 + $0x31] sm:$0xff] %vm420_vm1, %v510_v5  ;;  %544 = vst.msk [vmem:[#allocation2 + $0x39] sm:$0xff] %vm420_vm1, %v511_v8  ;;  %v689_v23 = vsel %vm684_vm3, %v686_v10, %v688_v14  ;;  %v530_v10 = vld [vmem:[%s11459_s27 + $0xb0] sm:$0xff]  ;;  %v533_v14 = vld [vmem:[%s11459_s27 + $0xc8] sm:$0xff] }
  0x2b   : > { %545 = vst.msk [vmem:[#allocation2 + $0x49] sm:$0xff] %vm420_vm1, %v512_v12  ;;  %546 = vst.msk [vmem:[#allocation2 + $0x51] sm:$0xff] %vm420_vm1, %v513_v13  ;;  %9676 = vmatmul.mubr.msk.f32.vlgmr.msra.gmra.mrb[0].mxu0 %vm420_vm1, %v689_v23  ;;  %v531_v12 = vld [vmem:[%s11459_s27 + $0xb8] sm:$0xff]  ;;  %v532_v13 = vld [vmem:[%s11459_s27 + $0xc0] sm:$0xff] }
  0x2c   : > { %547 = vst.msk [vmem:[#allocation2 + $0x61] sm:$0xff] %vm420_vm1, %v514_v15  ;;  %548 = vst.msk [vmem:[#allocation2 + $0x69] sm:$0xff] %vm420_vm1, %v515_v16  ;;  %9724 = vmatpush3.msk.msra.mxu0 %vm829_vm0, %v11418_v2  ;;  %v534_v15 = vld [vmem:[%s11459_s27 + $0xd0] sm:$0xff] }
  0x2d   : > { %549 = vst.msk [vmem:[#allocation2 + $0x79] sm:$0xff] %vm420_vm1, %v516_v17  ;;  %550 = vst.msk [vmem:[#allocation2 + $0x81] sm:$0xff] %vm420_vm1, %v517_v20  ;;  %9773 = vmatprep.subr.msk.mxu0 %vm829_vm0, %v11488_v18  ;;  %v536_v20 = vld [vmem:[%s11459_s27 + $0xe0] sm:$0xff] }
  0x2e   : > { %551 = vst.msk [vmem:[#allocation2 + $0x91] sm:$0xff] %vm420_vm1, %v518_v21  ;;  %552 = vst.msk [vmem:[#allocation2 + $0x99] sm:$0xff] %vm420_vm1, %v519_v22  ;;  %v537_v21 = vld [vmem:[%s11459_s27 + $0xe8] sm:$0xff] }
  0x2f   : > { %553 = vst.msk [vmem:[#allocation2 + $0xa9] sm:$0xff] %vm420_vm1, %v520_v24  ;;  %554 = vst.msk [vmem:[#allocation2 + $0xb1] sm:$0xff] %vm420_vm1, %v521_v25 }
  0x30   : > { %555 = vst.msk [vmem:[#allocation2 + $0xc1] sm:$0xff] %vm420_vm1, %v522_v26  ;;  %556 = vst.msk [vmem:[#allocation2 + $0xc9] sm:$0xff] %vm420_vm1, %v523_v27  ;;  %v11520_v33 = vld [vmem:[#allocation2 + $0x18] sm:$0xff]  ;;  %v11522_v34 = vld [vmem:[#allocation2 + $0x20] sm:$0xff] }
  0x31   : > { %557 = vst.msk [vmem:[#allocation2 + $0xd9] sm:$0xff] %vm420_vm1, %v524_v28  ;;  %558 = vst.msk [vmem:[#allocation2 + $0xe1] sm:$0xff] %vm420_vm1, %v525_v29  ;;  %v11524_v35 = vld [vmem:[#allocation2 + $0x28] sm:$0x3]  ;;  %v690_v36 = vrot.slane %v11520_v33, 1  ;;  %v691_v37 = vrot.slane %v11522_v34, 1 }
  0x32   : > { %559 = vst.msk [vmem:[#allocation2 + $0xf1] sm:$0xff] %vm420_vm1, %v526_v30  ;;  %560 = vst.msk [vmem:[#allocation2 + $0xf9] sm:$0xff] %vm420_vm1, %v527_v31  ;;  %v693_v38 = vrot.slane %v11524_v35, 1  ;;  %v11534_v39 = vld [vmem:[#allocation2 + $0x30] sm:$0xff]  ;;  %v11536_v40 = vld [vmem:[#allocation2 + $0x38] sm:$0xff] }
  0x33   : > { %561 = vst.msk [vmem:[#allocation2 + $0x109] sm:$0xff] %vm420_vm1, %v528_v32  ;;  %v695_v42 = vrot.slane %v11534_v39, 1  ;;  %v696_v43 = vrot.slane %v11536_v40, 1  ;;  %v11541_v44 = vld [vmem:[#allocation2 + $0x40] sm:$0x3]  ;;  %v11543_v45 = vld [vmem:[#allocation2 + $0x48] sm:$0xff]  ;;  %v11549_v47 = vsel %vm684_vm3, %v690_v36, %v691_v37  ;;  %vm14182_vm7 = vmpackc.low %vm420_vm1, %vm420_vm1 }
  0x34   : > { %v11545_v46 = vld [vmem:[#allocation2 + $0x50] sm:$0xff]  ;;  %562 = vst.msk [vmem:[#allocation2 + $0x111] sm:$0xff] %vm420_vm1, %v529_v41  ;;  %v11552_v48 = vsel %vm684_vm3, %v691_v37, %v693_v38  ;;  %v698_v49 = vrot.slane %v11541_v44, 1  ;;  %v700_v50 = vrot.slane %v11543_v45, 1  ;;  %v11556_v51 = vld [vmem:[#allocation2 + $0x58] sm:$0x3]  ;;  %9678 = vmatprep.mubr.msk.f32.mxu0 %vm420_vm1, %v11549_v47 }
  0x35   : > { %v11561_v52 = vsel %vm684_vm3, %v695_v42, %v696_v43  ;;  %v701_v53 = vrot.slane %v11545_v46, 1  ;;  %v11564_v54 = vld [vmem:[#allocation2 + $0x60] sm:$0xff]  ;;  %v11566_v55 = vld [vmem:[#allocation2 + $0x68] sm:$0xff]  ;;  %9679 = vmatmul.mubr.msk.f32.gmra.mrb[2].mxu0 %vm420_vm1, %v11552_v48  ;;  %v703_v57 = vrot.slane %v11556_v51, 1  ;;  %v11581_v61 = vld [vmem:[#allocation2 + $0x70] sm:$0x3] }
  0x36   : > { %9681 = vmatprep.mubr.msk.f32.mxu0 %vm420_vm1, %v11561_v52  ;;  %v11573_v56 = vsel %vm684_vm3, %v696_v43, %v698_v49  ;;  %v705_v59 = vrot.slane %v11564_v54, 1  ;;  %v706_v60 = vrot.slane %v11566_v55, 1  ;;  %v11583_v62 = vld [vmem:[#allocation2 + $0x78] sm:$0xff]  ;;  %v11585_v63 = vld [vmem:[#allocation2 + $0x80] sm:$0xff]  ;;  %v708_v1 = vrot.slane %v11581_v61, 1  ;;  %v11602_v8 = vld [vmem:[#allocation2 + $0x90] sm:$0xff] }
  0x37   : > { %v11577_v58 = vsel %vm684_vm3, %v700_v50, %v701_v53  ;;  %v11592_v0 = vsel %vm684_vm3, %v701_v53, %v703_v57  ;;  %v710_v3 = vrot.slane %v11583_v62, 1  ;;  %v711_v4 = vrot.slane %v11585_v63, 1  ;;  %v11600_v5 = vld [vmem:[#allocation2 + $0x88] sm:$0x3]  ;;  %v11604_v9 = vld [vmem:[#allocation2 + $0x98] sm:$0xff]  ;;  %563 = vst.msk [vmem:[#allocation2 + $0x121] sm:$0xff] %vm420_vm1, %v530_v10 }
  0x38   : > { %15608 = vst [vmem:[#allocation4_spill] sm:$0xff] %v11577_v58  ;;  %15609 = vst [vmem:[#allocation5_spill] sm:$0xff] %v11592_v0  ;;  %v11596_v2 = vsel %vm684_vm3, %v705_v59, %v706_v60  ;;  %v11618_v16 = vsel %vm684_vm3, %v706_v60, %v708_v1  ;;  %v713_v17 = vrot.slane %v11600_v5, 1  ;;  %v715_v23 = vrot.slane %v11602_v8, 1  ;;  %v11632_v25 = vld [vmem:[#allocation2 + $0xa0] sm:$0x3] }
  0x39   : > { %9682 = vmatmul.mubr.msk.f32.gmra.mrb[4].mxu0 %vm420_vm1, %v11573_v56  ;;  %15610 = vst [vmem:[#allocation6_spill] sm:$0xff] %v11596_v2  ;;  %564 = vst.msk [vmem:[#allocation2 + $0x129] sm:$0xff] %vm420_vm1, %v531_v12  ;;  %v11628_v22 = vsel %vm684_vm3, %v710_v3, %v711_v4  ;;  %v716_v24 = vrot.slane %v11604_v9, 1  ;;  %v11637_v26 = vld [vmem:[#allocation2 + $0xa8] sm:$0xff]  ;;  %v11639_v27 = vld [vmem:[#allocation2 + $0xb0] sm:$0xff]  ;;  %v718_v29 = vrot.slane %v11632_v25, 1 }
  0x3a   : > { %9684 = vmatprep.mubr.msk.f32.mxu0 %vm420_vm1, %v11577_v58  ;;  %15611 = vst [vmem:[#allocation7_spill] sm:$0xff] %v11618_v16  ;;  %565 = vst.msk [vmem:[#allocation2 + $0x139] sm:$0xff] %vm420_vm1, %v532_v13  ;;  %v11646_v28 = vsel %vm684_vm3, %v711_v4, %v713_v17  ;;  %v720_v31 = vrot.slane %v11637_v26, 1  ;;  %v721_v32 = vrot.slane %v11639_v27, 1  ;;  %v11654_v36 = vld [vmem:[#allocation2 + $0xb8] sm:$0x3] }
  0x3b   : > { %566 = vst.msk [vmem:[#allocation2 + $0x141] sm:$0xff] %vm420_vm1, %v533_v14  ;;  %567 = vst.msk [vmem:[#allocation2 + $0x151] sm:$0xff] %vm420_vm1, %v534_v15  ;;  %v11650_v30 = vsel %vm684_vm3, %v715_v23, %v716_v24  ;;  %v11656_v37 = vld [vmem:[#allocation2 + $0xc0] sm:$0xff]  ;;  %v11658_v38 = vld [vmem:[#allocation2 + $0xc8] sm:$0xff]  ;;  %v11665_v41 = vsel %vm684_vm3, %v716_v24, %v718_v29  ;;  %v723_v42 = vrot.slane %v11654_v36, 1 }
  0x3c   : > { %15612 = vst [vmem:[#allocation8_spill] sm:$0xff] %v11628_v22  ;;  %568 = vst.msk [vmem:[#allocation2 + $0x159] sm:$0xff] %vm420_vm1, %v535_v19  ;;  %v11669_v43 = vsel %vm684_vm3, %v720_v31, %v721_v32  ;;  %v725_v49 = vrot.slane %v11656_v37, 1  ;;  %v726_v50 = vrot.slane %v11658_v38, 1  ;;  %v11673_v53 = vld [vmem:[#allocation2 + $0xd0] sm:$0x3] }
  0x3d   : > { %9685 = vmatmul.mubr.msk.f32.gmra.mrb[6].mxu0 %vm420_vm1, %v11592_v0  ;;  %569 = vst.msk [vmem:[#allocation2 + $0x169] sm:$0xff] %vm420_vm1, %v536_v20  ;;  %570 = vst.msk [vmem:[#allocation2 + $0x171] sm:$0xff] %vm420_vm1, %v537_v21  ;;  %v11675_v57 = vld [vmem:[#allocation2 + $0xd8] sm:$0xff]  ;;  %v11677_v59 = vld [vmem:[#allocation2 + $0xe0] sm:$0xff]  ;;  %v11684_v60 = vsel %vm684_vm3, %v721_v32, %v723_v42  ;;  %v728_v1 = vrot.slane %v11673_v53, 1 }
  0x3e   : > { %9687 = vmatprep.mubr.msk.f32.mxu0 %vm420_vm1, %v11596_v2  ;;  %15613 = vst [vmem:[#allocation9_spill] sm:$0xff] %v11646_v28  ;;  %15614 = vst [vmem:[#allocation10_spill] sm:$0xff] %v11650_v30  ;;  %v11688_v3 = vsel %vm684_vm3, %v725_v49, %v726_v50  ;;  %v730_v4 = vrot.slane %v11675_v57, 1  ;;  %v731_v10 = vrot.slane %v11677_v59, 1  ;;  %v11692_v12 = vld [vmem:[#allocation2 + $0xe8] sm:$0x3] }
  0x3f   : > { %15615 = vst [vmem:[#allocation11_spill] sm:$0xff] %v11665_v41  ;;  %15616 = vst [vmem:[#allocation12_spill] sm:$0xff] %v11669_v43  ;;  %v11694_v13 = vld [vmem:[#allocation2 + $0xf0] sm:$0xff]  ;;  %v11696_v14 = vld [vmem:[#allocation2 + $0xf8] sm:$0xff]  ;;  %v11703_v15 = vsel %vm684_vm3, %v726_v50, %v728_v1  ;;  %v733_v17 = vrot.slane %v11692_v12, 1 }
  0x40   : > { %15617 = vst [vmem:[#allocation13_spill] sm:$0xff] %v11684_v60  ;;  %15618 = vst [vmem:[#allocation14_spill] sm:$0xff] %v11688_v3  ;;  %v11707_v19 = vsel %vm684_vm3, %v730_v4, %v731_v10  ;;  %v735_v20 = vrot.slane %v11694_v13, 1  ;;  %v736_v21 = vrot.slane %v11696_v14, 1  ;;  %v11711_v23 = vld [vmem:[#allocation2 + $0x100] sm:$0x3] }
  0x41   : > { %9688 = vmatmul.mubr.msk.f32.gmra.mrb[8].mxu0 %vm420_vm1, %v11618_v16  ;;  %15619 = vst [vmem:[#allocation15_spill] sm:$0xff] %v11703_v15  ;;  %15620 = vst [vmem:[#allocation16_spill] sm:$0xff] %v11707_v19  ;;  %v11713_v24 = vld [vmem:[#allocation2 + $0x108] sm:$0xff]  ;;  %v11715_v29 = vld [vmem:[#allocation2 + $0x110] sm:$0xff]  ;;  %v11722_v31 = vsel %vm684_vm3, %v731_v10, %v733_v17  ;;  %v738_v32 = vrot.slane %v11711_v23, 1 }
  0x42   : > { %9690 = vmatprep.mubr.msk.f32.mxu0 %vm420_vm1, %v11628_v22  ;;  %15621 = vst [vmem:[#allocation17_spill] sm:$0xff] %v11722_v31  ;;  %v11726_v42 = vsel %vm684_vm3, %v735_v20, %v736_v21  ;;  %v740_v49 = vrot.slane %v11713_v24, 1  ;;  %v741_v50 = vrot.slane %v11715_v29, 1  ;;  %v11730_v1 = vld [vmem:[#allocation2 + $0x118] sm:$0x3]  ;;  %v11732_v4 = vld [vmem:[#allocation2 + $0x120] sm:$0xff] }
  0x43   : > { %15622 = vst [vmem:[#allocation18_spill] sm:$0xff] %v11726_v42  ;;  %v11741_v10 = vsel %vm684_vm3, %v736_v21, %v738_v32  ;;  %v743_v17 = vrot.slane %v11730_v1, 1  ;;  %v11787_v16 = vld [vmem:[#allocation2 + $0x160] sm:$0x3] }
  0x44   : > { %15623 = vst [vmem:[#allocation19_spill] sm:$0xff] %v11741_v10  ;;  %v11745_v20 = vsel %vm684_vm3, %v740_v49, %v741_v50  ;;  %v11789_v2 = vld [vmem:[#allocation2 + $0x168] sm:$0xff]  ;;  %v11806_v58 = vld [vmem:[#allocation2 + $0x178] sm:$0x3] }
  0x45   : > { %9691 = vmatmul.mubr.msk.f32.gmra.mrb[10].mxu0 %vm420_vm1, %v11646_v28  ;;  %15624 = vst [vmem:[#allocation20_spill] sm:$0xff] %v11745_v20  ;;  %v11760_v21 = vsel %vm684_vm3, %v741_v50, %v743_v17  ;;  %v11770_v28 = vld [vmem:[#allocation2 + $0x150] sm:$0xff] }
  0x46   : > { %9693 = vmatprep.mubr.msk.f32.mxu0 %vm420_vm1, %v11650_v30  ;;  %15625 = vst [vmem:[#allocation21_spill] sm:$0xff] %v11760_v21  ;;  %v11768_v30 = vld [vmem:[#allocation2 + $0x148] sm:$0x3] }
  0x49   : > { %9694 = vmatmul.mubr.msk.f32.gmra.mrb[12].mxu0 %vm420_vm1, %v11665_v41 }
  0x4a   : > { %9696 = vmatprep.mubr.msk.f32.mxu0 %vm420_vm1, %v11669_v43  ;;  %v11751_v43 = vld [vmem:[#allocation2 + $0x138] sm:$0xff] }
  0x4d   : > { %9697 = vmatmul.mubr.msk.f32.gmra.mrb[14].mxu0 %vm420_vm1, %v11684_v60  ;;  %v11749_v60 = vld [vmem:[#allocation2 + $0x130] sm:$0x3] }
  0x4e   : > { %9699 = vmatprep.mubr.msk.f32.mxu0 %vm420_vm1, %v11688_v3  ;;  %v748_v32 = vrot.slane %v11749_v60, 1 }
  0x51   : > { %9700 = vmatmul.mubr.msk.f32.gmra.mrb[16].mxu0 %vm420_vm1, %v11703_v15  ;;  %v11734_v15 = vld [vmem:[#allocation2 + $0x128] sm:$0xff] }
  0x52   : > { %9702 = vmatprep.mubr.msk.f32.mxu0 %vm420_vm1, %v11707_v19  ;;  %v745_v19 = vrot.slane %v11732_v4, 1  ;;  %v746_v3 = vrot.slane %v11734_v15, 1 }
  0x54   : > { %v11764_v49 = vsel %vm684_vm3, %v745_v19, %v746_v3  ;;  %v11779_v50 = vsel %vm684_vm3, %v746_v3, %v748_v32  ;;  %v753_v19 = vrot.slane %v11768_v30, 1 }
  0x55   : > { %9703 = vmatmul.mubr.msk.f32.gmra.mrb[18].mxu0 %vm420_vm1, %v11722_v31  ;;  %v11753_v31 = vld [vmem:[#allocation2 + $0x140] sm:$0xff]  ;;  %15626 = vst [vmem:[#allocation22_spill] sm:$0xff] %v11764_v49  ;;  %15627 = vst [vmem:[#allocation23_spill] sm:$0xff] %v11779_v50 }
  0x56   : > { %9705 = vmatprep.mubr.msk.f32.mxu0 %vm420_vm1, %v11726_v42  ;;  %v750_v42 = vrot.slane %v11751_v43, 1  ;;  %v751_v41 = vrot.slane %v11753_v31, 1 }
  0x58   : > { %v11783_v17 = vsel %vm684_vm3, %v750_v42, %v751_v41  ;;  %v11798_v3 = vsel %vm684_vm3, %v751_v41, %v753_v19  ;;  %v758_v42 = vrot.slane %v11787_v16, 1  ;;  %v763_v19 = vrot.slane %v11806_v58, 1 }
  0x59   : > { %9706 = vmatmul.mubr.msk.f32.gmra.mrb[20].mxu0 %vm420_vm1, %v11741_v10  ;;  %v11772_v10 = vld [vmem:[#allocation2 + $0x158] sm:$0xff]  ;;  %15628 = vst [vmem:[#allocation24_spill] sm:$0xff] %v11783_v17 }
  0x5a   : > { %9708 = vmatprep.mubr.msk.f32.mxu0 %vm420_vm1, %v11745_v20  ;;  %v755_v20 = vrot.slane %v11770_v28, 1  ;;  %v756_v22 = vrot.slane %v11772_v10, 1 }
  0x5c   : > { %v11802_v32 = vsel %vm684_vm3, %v755_v20, %v756_v22  ;;  %v11813_v41 = vsel %vm684_vm3, %v756_v22, %v758_v42  ;;  %v630_v22 = vld [vmem:[%s15349_s2 + $0xc] sm:$0xf]  ;;  %v1352_v42 = vrot.slane %v11466_v7, 2 }
  0x5d   : > { %9709 = vmatmul.mubr.msk.f32.gmra.mrb[22].mxu0 %vm420_vm1, %v11760_v21  ;;  %v11791_v21 = vld [vmem:[#allocation2 + $0x170] sm:$0xff]  ;;  %15629 = vst [vmem:[#allocation25_spill] sm:$0xff] %v11802_v32  ;;  %15630 = vst [vmem:[#allocation26_spill] sm:$0xff] %v11813_v41 }
  0x5e   : > { %9711 = vmatprep.mubr.msk.f32.mxu0 %vm420_vm1, %v11764_v49  ;;  %v760_v49 = vrot.slane %v11789_v2, 1  ;;  %v761_v0 = vrot.slane %v11791_v21, 1 }
  0x60   : > { %v11817_v20 = vsel %vm684_vm3, %v760_v49, %v761_v0  ;;  %v1351_v49 = vrot.slane %v11464_v6, 2 }
  0x61   : > { %9712 = vmatmul.mubr.msk.f32.gmra.mrb[24].mxu0 %vm420_vm1, %v11779_v50  ;;  %15631 = vst [vmem:[#allocation27_spill] sm:$0xff] %v11817_v20 }
  0x62   : > { %9714 = vmatprep.mubr.msk.f32.mxu0 %vm420_vm1, %v11783_v17  ;;  %v11824_v17 = vsel %vm684_vm3, %v761_v0, %v763_v19  ;;  %v539_v0 = vld [vmem:[%s11459_s27 + $0xf8] sm:$0xff]  ;;  %v1354_v19 = vrot.slane %v11474_v11, 2 }
  0x63   : > { %15632 = vst [vmem:[#allocation28_spill] sm:$0xff] %v11824_v17  ;;  %572 = vst.msk [vmem:[#allocation2 + $0x189] sm:$0xff] %vm420_vm1, %v539_v0  ;;  %v1356_v0 = vrot.slane %v11520_v33, 2 }
  0x65   : > { %9715 = vmatmul.mubr.msk.f32.gmra.mrb[26].mxu0 %vm420_vm1, %v11798_v3 }
  0x66   : > { %9717 = vmatprep.mubr.msk.f32.mxu0 %vm420_vm1, %v11802_v32 }
  0x69   : > { %9718 = vmatmul.mubr.msk.f32.gmra.mrb[28].mxu0 %vm420_vm1, %v11813_v41  ;;  %v11919_v41 = vld [vmem:[%s15349_s2 + $0x10] sm:$0xf] }
  0x6a   : > { %9720 = vmatprep.mubr.msk.f32.mxu0 %vm420_vm1, %v11817_v20  ;;  %v1361_v20 = vrot.slane %v11534_v39, 2 }
  0x6d   : > { %9721 = vmatmul.mubr.msk.f32.gmra.mrb[30].mxu0 %vm420_vm1, %v11824_v17  ;;  %v1357_v17 = vrot.slane %v11522_v34, 2 }
  0x6e   : > { %9725 = vmatprep.mubr.msk.f32.mxu0 %vm420_vm1, %v11464_v6  ;;  %v1355_v6 = vsel %vm1350_vm4, %v1352_v42, %v1354_v19 }
  0x6f   : > { %v11912_v11 = vsel %vm1350_vm4, %v1356_v0, %v1357_v17  ;;  %v1367_v0 = vrot.slane %v11545_v46, 2 }
  0x71   : > { %9726 = vmatmul.mubr.msk.f32.vlgmr.msra.gmra.mrb[0].mxu0 %vm420_vm1, %v11466_v7  ;;  %v1359_v7 = vrot.slane %v11524_v35, 2 }
  0x72   : > { %9774 = vmatpush3.msk.msra.mxu0 %vm829_vm0, %v11488_v18  ;;  %9728 = vmatprep.mubr.msk.f32.mxu0 %vm420_vm1, %v11520_v33  ;;  %v538_v18 = vld [vmem:[%s11459_s27 + $0xf0] sm:$0xff] }
  0x73   : > { %9823 = vmatprep.subr.msk.mxu0 %vm829_vm0, %v630_v22  ;;  %571 = vst.msk [vmem:[#allocation2 + $0x181] sm:$0xff] %vm420_vm1, %v538_v18  ;;  %v1353_v18 = vsel %vm1350_vm4, %v1351_v49, %v1352_v42  ;;  %v1362_v49 = vrot.slane %v11536_v40, 2  ;;  %v11926_v35 = vsel %vm1350_vm4, %v1357_v17, %v1359_v7  ;;  %v1364_v42 = vrot.slane %v11541_v44, 2 }
  0x74   : > { %v1369_v44 = vrot.slane %v11556_v51, 2 }
  0x75   : > { %9729 = vmatmul.mubr.msk.f32.gmra.mrb[2].mxu0 %vm420_vm1, %v11522_v34  ;;  %v11930_v19 = vsel %vm1350_vm4, %v1361_v20, %v1362_v49  ;;  %v11941_v17 = vsel %vm1350_vm4, %v1362_v49, %v1364_v42  ;;  %v1374_v49 = vrot.slane %v11581_v61, 2  ;;  %v1376_v42 = vrot.slane %v11583_v62, 2 }
  0x76   : > { %9731 = vmatprep.mubr.msk.f32.mxu0 %vm420_vm1, %v11534_v39  ;;  %v11954_v7 = vsel %vm1350_vm4, %v1367_v0, %v1369_v44  ;;  %v1381_v44 = vrot.slane %v11602_v8, 2 }
  0x79   : > { %9732 = vmatmul.mubr.msk.f32.gmra.mrb[4].mxu0 %vm420_vm1, %v11536_v40 }
  0x7a   : > { %9734 = vmatprep.mubr.msk.f32.mxu0 %vm420_vm1, %v11543_v45 }
  0x7d   : > { %9735 = vmatmul.mubr.msk.f32.gmra.mrb[6].mxu0 %vm420_vm1, %v11545_v46 }
  0x7e   : > { %9737 = vmatprep.mubr.msk.f32.mxu0 %vm420_vm1, %v11564_v54 }
  0x81   : > { %9738 = vmatmul.mubr.msk.f32.gmra.mrb[8].mxu0 %vm420_vm1, %v11566_v55 }
  0x82   : > { %9740 = vmatprep.mubr.msk.f32.mxu0 %vm420_vm1, %v11583_v62 }
  0x85   : > { %9741 = vmatmul.mubr.msk.f32.gmra.mrb[10].mxu0 %vm420_vm1, %v11585_v63 }
  0x86   : > { %9743 = vmatprep.mubr.msk.f32.mxu0 %vm420_vm1, %v11602_v8 }
  0x89   : > { %9744 = vmatmul.mubr.msk.f32.gmra.mrb[12].mxu0 %vm420_vm1, %v11604_v9 }
  0x8a   : > { %9746 = vmatprep.mubr.msk.f32.mxu0 %vm420_vm1, %v11637_v26 }
  0x8d   : > { %9747 = vmatmul.mubr.msk.f32.gmra.mrb[14].mxu0 %vm420_vm1, %v11639_v27 }
  0x8e   : > { %9749 = vmatprep.mubr.msk.f32.mxu0 %vm420_vm1, %v11656_v37 }
  0x91   : > { %9750 = vmatmul.mubr.msk.f32.gmra.mrb[16].mxu0 %vm420_vm1, %v11658_v38 }
  0x92   : > { %9752 = vmatprep.mubr.msk.f32.mxu0 %vm420_vm1, %v11675_v57 }
  0x95   : > { %9753 = vmatmul.mubr.msk.f32.gmra.mrb[18].mxu0 %vm420_vm1, %v11677_v59 }
  0x96   : > { %9755 = vmatprep.mubr.msk.f32.mxu0 %vm420_vm1, %v11694_v13 }
  0x99   : > { %9756 = vmatmul.mubr.msk.f32.gmra.mrb[20].mxu0 %vm420_vm1, %v11696_v14 }
  0x9a   : > { %9758 = vmatprep.mubr.msk.f32.mxu0 %vm420_vm1, %v11713_v24 }
  0x9d   : > { %9759 = vmatmul.mubr.msk.f32.gmra.mrb[22].mxu0 %vm420_vm1, %v11715_v29 }
  0x9e   : > { %9761 = vmatprep.mubr.msk.f32.mxu0 %vm420_vm1, %v11732_v4 }
  0xa1   : > { %9762 = vmatmul.mubr.msk.f32.gmra.mrb[24].mxu0 %vm420_vm1, %v11734_v15 }
  0xa2   : > { %9764 = vmatprep.mubr.msk.f32.mxu0 %vm420_vm1, %v11751_v43 }
  0xa5   : > { %9765 = vmatmul.mubr.msk.f32.gmra.mrb[26].mxu0 %vm420_vm1, %v11753_v31 }
  0xa6   : > { %9767 = vmatprep.mubr.msk.f32.mxu0 %vm420_vm1, %v11770_v28 }
  0xa9   : > { %9768 = vmatmul.mubr.msk.f32.gmra.mrb[28].mxu0 %vm420_vm1, %v11772_v10 }
  0xaa   : > { %9770 = vmatprep.mubr.msk.f32.mxu0 %vm420_vm1, %v11789_v2 }
  0xad   : > { %9771 = vmatmul.mubr.msk.f32.gmra.mrb[30].mxu0 %vm420_vm1, %v11791_v21 }
  0xae   : > { %9775 = vmatprep.mubr.msk.f32.mxu0 %vm420_vm1, %v1353_v18  ;;  %v1366_v18 = vrot.slane %v11543_v45, 2 }
  0xb0   : > { %v11945_v20 = vsel %vm1350_vm4, %v1366_v18, %v1367_v0  ;;  %v1377_v18 = vrot.slane %v11585_v63, 2  ;;  %v1379_v0 = vrot.slane %v11600_v5, 2 }
  0xb1   : > { %9776 = vmatmul.mubr.msk.f32.vlgmr.msra.gmra.mrb[0].mxu0 %vm420_vm1, %v1355_v6  ;;  %15633 = vst [vmem:[#allocation29_spill] sm:$0xff] %v11945_v20  ;;  %v1372_v6 = vrot.slane %v11566_v55, 2 }
  0xb2   : > { %9824 = vmatpush3.msk.msra.mxu0 %vm829_vm0, %v630_v22  ;;  %9778 = vmatprep.mubr.msk.f32.mxu0 %vm420_vm1, %v11912_v11  ;;  %v1371_v22 = vrot.slane %v11564_v54, 2  ;;  %v11971_v61 = vsel %vm1350_vm4, %v1376_v42, %v1377_v18  ;;  %v1387_v42 = vrot.slane %v11639_v27, 2 }
  0xb3   : > { %9873 = vmatprep.subr.msk.mxu0 %vm829_vm0, %v11919_v41  ;;  %15635 = vst [vmem:[#allocation31_spill] sm:$0xff] %v11971_v61 }
  0xb4   : > { %v11958_v51 = vsel %vm1350_vm4, %v1371_v22, %v1372_v6  ;;  %v1382_v22 = vrot.slane %v11604_v9, 2 }
  0xb5   : > { %9779 = vmatmul.mubr.msk.f32.gmra.mrb[2].mxu0 %vm420_vm1, %v11926_v35  ;;  %15634 = vst [vmem:[#allocation30_spill] sm:$0xff] %v11958_v51 }
  0xb6   : > { %9781 = vmatprep.mubr.msk.f32.mxu0 %vm420_vm1, %v11930_v19  ;;  %v11984_v5 = vsel %vm1350_vm4, %v1381_v44, %v1382_v22  ;;  %v1392_v44 = vrot.slane %v11658_v38, 2 }
  0xb7   : > { %15636 = vst [vmem:[#allocation32_spill] sm:$0xff] %v11984_v5 }
  0xb9   : > { %9782 = vmatmul.mubr.msk.f32.gmra.mrb[4].mxu0 %vm420_vm1, %v11941_v17 }
  0xba   : > { %9784 = vmatprep.mubr.msk.f32.mxu0 %vm420_vm1, %v11945_v20  ;;  %v11967_v20 = vsel %vm1350_vm4, %v1372_v6, %v1374_v49  ;;  %v1384_v6 = vrot.slane %v11632_v25, 2  ;;  %v1386_v49 = vrot.slane %v11637_v26, 2 }
  0xbc   : > { %v11997_v25 = vsel %vm1350_vm4, %v1386_v49, %v1387_v42  ;;  %v1397_v49 = vrot.slane %v11677_v59, 2 }
  0xbd   : > { %9785 = vmatmul.mubr.msk.f32.gmra.mrb[6].mxu0 %vm420_vm1, %v11954_v7  ;;  %15637 = vst [vmem:[#allocation33_spill] sm:$0xff] %v11997_v25 }
  0xbe   : > { %9787 = vmatprep.mubr.msk.f32.mxu0 %vm420_vm1, %v11958_v51  ;;  %v11980_v51 = vsel %vm1350_vm4, %v1377_v18, %v1379_v0  ;;  %v1389_v18 = vrot.slane %v11654_v36, 2  ;;  %v1391_v0 = vrot.slane %v11656_v37, 2 }
  0xc0   : > { %v12010_v36 = vsel %vm1350_vm4, %v1391_v0, %v1392_v44  ;;  %v1402_v0 = vrot.slane %v11696_v14, 2 }
  0xc1   : > { %9788 = vmatmul.mubr.msk.f32.gmra.mrb[8].mxu0 %vm420_vm1, %v11967_v20  ;;  %15638 = vst [vmem:[#allocation34_spill] sm:$0xff] %v12010_v36 }
  0xc2   : > { %9790 = vmatprep.mubr.msk.f32.mxu0 %vm420_vm1, %v11971_v61  ;;  %v11993_v61 = vsel %vm1350_vm4, %v1382_v22, %v1384_v6  ;;  %v1394_v22 = vrot.slane %v11673_v53, 2  ;;  %v1396_v6 = vrot.slane %v11675_v57, 2 }
  0xc4   : > { %v12023_v53 = vsel %vm1350_vm4, %v1396_v6, %v1397_v49  ;;  %v1407_v6 = vrot.slane %v11715_v29, 2 }
  0xc5   : > { %9791 = vmatmul.mubr.msk.f32.gmra.mrb[10].mxu0 %vm420_vm1, %v11980_v51  ;;  %15639 = vst [vmem:[#allocation35_spill] sm:$0xff] %v12023_v53 }
  0xc6   : > { %9793 = vmatprep.mubr.msk.f32.mxu0 %vm420_vm1, %v11984_v5  ;;  %v12006_v5 = vsel %vm1350_vm4, %v1387_v42, %v1389_v18  ;;  %v1399_v42 = vrot.slane %v11692_v12, 2  ;;  %v1401_v18 = vrot.slane %v11694_v13, 2 }
  0xc8   : > { %v12036_v12 = vsel %vm1350_vm4, %v1401_v18, %v1402_v0  ;;  %v1412_v18 = vrot.slane %v11734_v15, 2 }
  0xc9   : > { %9794 = vmatmul.mubr.msk.f32.gmra.mrb[12].mxu0 %vm420_vm1, %v11993_v61  ;;  %15640 = vst [vmem:[#allocation36_spill] sm:$0xff] %v12036_v12 }
  0xca   : > { %9796 = vmatprep.mubr.msk.f32.mxu0 %vm420_vm1, %v11997_v25  ;;  %v12019_v25 = vsel %vm1350_vm4, %v1392_v44, %v1394_v22  ;;  %v1404_v44 = vrot.slane %v11711_v23, 2  ;;  %v1406_v22 = vrot.slane %v11713_v24, 2 }
  0xcc   : > { %v12049_v23 = vsel %vm1350_vm4, %v1406_v22, %v1407_v6  ;;  %v1417_v22 = vrot.slane %v11753_v31, 2 }
  0xcd   : > { %9797 = vmatmul.mubr.msk.f32.gmra.mrb[14].mxu0 %vm420_vm1, %v12006_v5  ;;  %15642 = vst [vmem:[#allocation38_spill] sm:$0xff] %v12049_v23 }
  0xce   : > { %9799 = vmatprep.mubr.msk.f32.mxu0 %vm420_vm1, %v12010_v36  ;;  %v12032_v36 = vsel %vm1350_vm4, %v1397_v49, %v1399_v42  ;;  %v1409_v49 = vrot.slane %v11730_v1, 2  ;;  %v1411_v42 = vrot.slane %v11732_v4, 2 }
  0xd0   : > { %v12062_v1 = vsel %vm1350_vm4, %v1411_v42, %v1412_v18  ;;  %v1422_v42 = vrot.slane %v11772_v10, 2 }
  0xd1   : > { %9800 = vmatmul.mubr.msk.f32.gmra.mrb[16].mxu0 %vm420_vm1, %v12019_v25  ;;  %15643 = vst [vmem:[#allocation39_spill] sm:$0xff] %v12062_v1 }
  0xd2   : > { %9802 = vmatprep.mubr.msk.f32.mxu0 %vm420_vm1, %v12023_v53  ;;  %v12045_v53 = vsel %vm1350_vm4, %v1402_v0, %v1404_v44  ;;  %v1414_v0 = vrot.slane %v11749_v60, 2  ;;  %v1416_v44 = vrot.slane %v11751_v43, 2 }
  0xd3   : > { %15641 = vst [vmem:[#allocation37_spill] sm:$0xff] %v12045_v53 }
  0xd4   : > { %v12075_v60 = vsel %vm1350_vm4, %v1416_v44, %v1417_v22  ;;  %v1427_v44 = vrot.slane %v11791_v21, 2 }
  0xd5   : > { %9803 = vmatmul.mubr.msk.f32.gmra.mrb[18].mxu0 %vm420_vm1, %v12032_v36  ;;  %15645 = vst [vmem:[#allocation41_spill] sm:$0xff] %v12075_v60 }
  0xd6   : > { %9805 = vmatprep.mubr.msk.f32.mxu0 %vm420_vm1, %v12036_v12  ;;  %v12058_v12 = vsel %vm1350_vm4, %v1407_v6, %v1409_v49  ;;  %v1419_v6 = vrot.slane %v11768_v30, 2  ;;  %v1421_v49 = vrot.slane %v11770_v28, 2 }
  0xd8   : > { %v12088_v30 = vsel %vm1350_vm4, %v1421_v49, %v1422_v42  ;;  %v15647_v49 = vld [vmem:[#allocation4_spill] sm:$0xff] }
  0xd9   : > { %9806 = vmatmul.mubr.msk.f32.gmra.mrb[20].mxu0 %vm420_vm1, %v12045_v53  ;;  %15646 = vst [vmem:[#allocation42_spill] sm:$0xff] %v12088_v30 }
  0xda   : > { %9808 = vmatprep.mubr.msk.f32.mxu0 %vm420_vm1, %v12049_v23  ;;  %v12071_v23 = vsel %vm1350_vm4, %v1412_v18, %v1414_v0  ;;  %v1424_v18 = vrot.slane %v11787_v16, 2  ;;  %v1426_v0 = vrot.slane %v11789_v2, 2 }
  0xdb   : > { %15644 = vst [vmem:[#allocation40_spill] sm:$0xff] %v12071_v23 }
  0xdc   : > { %v12101_v16 = vsel %vm1350_vm4, %v1426_v0, %v1427_v44  ;;  %v15652_v0 = vld [vmem:[#allocation9_spill] sm:$0xff] }
  0xdd   : > { %9809 = vmatmul.mubr.msk.f32.gmra.mrb[22].mxu0 %vm420_vm1, %v12058_v12 }
  0xde   : > { %9811 = vmatprep.mubr.msk.f32.mxu0 %vm420_vm1, %v12062_v1  ;;  %v12084_v1 = vsel %vm1350_vm4, %v1417_v22, %v1419_v6  ;;  %v1429_v22 = vrot.slane %v11806_v58, 2  ;;  %v632_v58 = vld [vmem:[%s15349_s2 + $0x14] sm:$0xf] }
  0xe0   : > { %v12108_v6 = vsel %vm1350_vm4, %v1427_v44, %v1429_v22  ;;  %v15653_v44 = vld [vmem:[#allocation10_spill] sm:$0xff]  ;;  %v15654_v22 = vld [vmem:[#allocation11_spill] sm:$0xff] }
  0xe1   : > { %9812 = vmatmul.mubr.msk.f32.gmra.mrb[24].mxu0 %vm420_vm1, %v12071_v23 }
  0xe2   : > { %9814 = vmatprep.mubr.msk.f32.mxu0 %vm420_vm1, %v12075_v60  ;;  %v12097_v60 = vsel %vm1350_vm4, %v1422_v42, %v1424_v18  ;;  %v15649_v42 = vld [vmem:[#allocation6_spill] sm:$0xff]  ;;  %v15651_v18 = vld [vmem:[#allocation8_spill] sm:$0xff] }
  0xe5   : > { %9815 = vmatmul.mubr.msk.f32.gmra.mrb[26].mxu0 %vm420_vm1, %v12084_v1 }
  0xe6   : > { %9817 = vmatprep.mubr.msk.f32.mxu0 %vm420_vm1, %v12088_v30 }
  0xe9   : > { %9818 = vmatmul.mubr.msk.f32.gmra.mrb[28].mxu0 %vm420_vm1, %v12097_v60 }
  0xea   : > { %9820 = vmatprep.mubr.msk.f32.mxu0 %vm420_vm1, %v12101_v16 }
  0xed   : > { %9821 = vmatmul.mubr.msk.f32.gmra.mrb[30].mxu0 %vm420_vm1, %v12108_v6 }
  0xee   : > { %9825 = vmatprep.mubr.msk.f32.mxu0 %vm420_vm1, %v11520_v33  ;;  %v12176_v33 = vld [vmem:[#allocation2 + $0x180] sm:$0xff] }
  0xf1   : > { %9826 = vmatmul.mubr.msk.f32.vlgmr.msra.gmra.mrb[0].mxu0 %vm420_vm1, %v11522_v34  ;;  %v12182_v34 = vld [vmem:[#allocation2 + $0x188] sm:$0xff] }
  0xf2   : > { %9874 = vmatpush3.msk.msra.mxu0 %vm829_vm0, %v11919_v41  ;;  %9828 = vmatprep.mubr.msk.f32.mxu0 %vm420_vm1, %v11534_v39  ;;  %v633_v41 = vld [vmem:[%s15349_s2 + $0x18] sm:$0xf] }
  0xf3   : > { %9923 = vmatprep.subr.msk.mxu0 %vm829_vm0, %v632_v58 }
  0xf5   : > { %9829 = vmatmul.mubr.msk.f32.gmra.mrb[2].mxu0 %vm420_vm1, %v11536_v40 }
  0xf6   : > { %9831 = vmatprep.mubr.msk.f32.mxu0 %vm420_vm1, %v11543_v45 }
  0xf9   : > { %9832 = vmatmul.mubr.msk.f32.gmra.mrb[4].mxu0 %vm420_vm1, %v11545_v46 }
  0xfa   : > { %9834 = vmatprep.mubr.msk.f32.mxu0 %vm420_vm1, %v11564_v54 }
  0xfd   : > { %9835 = vmatmul.mubr.msk.f32.gmra.mrb[6].mxu0 %vm420_vm1, %v11566_v55 }
  0xfe   : > { %9837 = vmatprep.mubr.msk.f32.mxu0 %vm420_vm1, %v11583_v62 }
 0x101   : > { %9838 = vmatmul.mubr.msk.f32.gmra.mrb[8].mxu0 %vm420_vm1, %v11585_v63 }
 0x102   : > { %9840 = vmatprep.mubr.msk.f32.mxu0 %vm420_vm1, %v11602_v8 }
 0x105   : > { %9841 = vmatmul.mubr.msk.f32.gmra.mrb[10].mxu0 %vm420_vm1, %v11604_v9 }
 0x106   : > { %9843 = vmatprep.mubr.msk.f32.mxu0 %vm420_vm1, %v11637_v26 }
 0x109   : > { %9844 = vmatmul.mubr.msk.f32.gmra.mrb[12].mxu0 %vm420_vm1, %v11639_v27 }
 0x10a   : > { %9846 = vmatprep.mubr.msk.f32.mxu0 %vm420_vm1, %v11656_v37 }
 0x10d   : > { %9847 = vmatmul.mubr.msk.f32.gmra.mrb[14].mxu0 %vm420_vm1, %v11658_v38 }
 0x10e   : > { %9849 = vmatprep.mubr.msk.f32.mxu0 %vm420_vm1, %v11675_v57 }
 0x111   : > { %9850 = vmatmul.mubr.msk.f32.gmra.mrb[16].mxu0 %vm420_vm1, %v11677_v59 }
 0x112   : > { %9852 = vmatprep.mubr.msk.f32.mxu0 %vm420_vm1, %v11694_v13 }
 0x115   : > { %9853 = vmatmul.mubr.msk.f32.gmra.mrb[18].mxu0 %vm420_vm1, %v11696_v14 }
 0x116   : > { %9855 = vmatprep.mubr.msk.f32.mxu0 %vm420_vm1, %v11713_v24 }
 0x119   : > { %9856 = vmatmul.mubr.msk.f32.gmra.mrb[20].mxu0 %vm420_vm1, %v11715_v29 }
 0x11a   : > { %9858 = vmatprep.mubr.msk.f32.mxu0 %vm420_vm1, %v11732_v4 }
 0x11d   : > { %9859 = vmatmul.mubr.msk.f32.gmra.mrb[22].mxu0 %vm420_vm1, %v11734_v15 }
 0x11e   : > { %9861 = vmatprep.mubr.msk.f32.mxu0 %vm420_vm1, %v11751_v43 }
 0x121   : > { %9862 = vmatmul.mubr.msk.f32.gmra.mrb[24].mxu0 %vm420_vm1, %v11753_v31 }
 0x122   : > { %9864 = vmatprep.mubr.msk.f32.mxu0 %vm420_vm1, %v11770_v28 }
 0x125   : > { %9865 = vmatmul.mubr.msk.f32.gmra.mrb[26].mxu0 %vm420_vm1, %v11772_v10 }
 0x126   : > { %9867 = vmatprep.mubr.msk.f32.mxu0 %vm420_vm1, %v11789_v2 }
 0x129   : > { %9868 = vmatmul.mubr.msk.f32.gmra.mrb[28].mxu0 %vm420_vm1, %v11791_v21 }
 0x12a   : > { %9870 = vmatprep.mubr.msk.f32.mxu0 %vm420_vm1, %v12176_v33 }
 0x12d   : > { %9871 = vmatmul.mubr.msk.f32.gmra.mrb[30].mxu0 %vm420_vm1, %v12182_v34 }
 0x12e   : > { %9875 = vmatprep.mubr.msk.f32.mxu0 %vm420_vm1, %v11549_v47  ;;  %v15648_v47 = vld [vmem:[#allocation5_spill] sm:$0xff] }
 0x131   : > { %9876 = vmatmul.mubr.msk.f32.vlgmr.msra.gmra.mrb[0].mxu0 %vm420_vm1, %v11552_v48  ;;  %v15650_v48 = vld [vmem:[#allocation7_spill] sm:$0xff] }
 0x132   : > { %9924 = vmatpush3.msk.msra.mxu0 %vm829_vm0, %v632_v58  ;;  %9878 = vmatprep.mubr.msk.f32.mxu0 %vm420_vm1, %v11561_v52  ;;  %v15655_v58 = vld [vmem:[#allocation12_spill] sm:$0xff] }
 0x133   : > { %9973 = vmatprep.subr.msk.mxu0 %vm829_vm0, %v633_v41 }
 0x135   : > { %9879 = vmatmul.mubr.msk.f32.gmra.mrb[2].mxu0 %vm420_vm1, %v11573_v56 }
 0x136   : > { %9881 = vmatprep.mubr.msk.f32.mxu0 %vm420_vm1, %v15647_v49 }
 0x139   : > { %9882 = vmatmul.mubr.msk.f32.gmra.mrb[4].mxu0 %vm420_vm1, %v15648_v47  ;;  %v15656_v47 = vld [vmem:[#allocation13_spill] sm:$0xff] }
 0x13a   : > { %9884 = vmatprep.mubr.msk.f32.mxu0 %vm420_vm1, %v15649_v42  ;;  %v15657_v42 = vld [vmem:[#allocation14_spill] sm:$0xff] }
 0x13d   : > { %9885 = vmatmul.mubr.msk.f32.gmra.mrb[6].mxu0 %vm420_vm1, %v15650_v48  ;;  %v15658_v48 = vld [vmem:[#allocation15_spill] sm:$0xff] }
 0x13e   : > { %9887 = vmatprep.mubr.msk.f32.mxu0 %vm420_vm1, %v15651_v18  ;;  %v15659_v18 = vld [vmem:[#allocation16_spill] sm:$0xff] }
 0x141   : > { %9888 = vmatmul.mubr.msk.f32.gmra.mrb[8].mxu0 %vm420_vm1, %v15652_v0  ;;  %v15660_v0 = vld [vmem:[#allocation17_spill] sm:$0xff] }
 0x142   : > { %9890 = vmatprep.mubr.msk.f32.mxu0 %vm420_vm1, %v15653_v44  ;;  %v15661_v44 = vld [vmem:[#allocation18_spill] sm:$0xff] }
 0x145   : > { %9891 = vmatmul.mubr.msk.f32.gmra.mrb[10].mxu0 %vm420_vm1, %v15654_v22  ;;  %v15662_v22 = vld [vmem:[#allocation19_spill] sm:$0xff] }
 0x146   : > { %9893 = vmatprep.mubr.msk.f32.mxu0 %vm420_vm1, %v15655_v58  ;;  %v15663_v58 = vld [vmem:[#allocation20_spill] sm:$0xff] }
 0x149   : > { %9894 = vmatmul.mubr.msk.f32.gmra.mrb[12].mxu0 %vm420_vm1, %v15656_v47  ;;  %v15664_v47 = vld [vmem:[#allocation21_spill] sm:$0xff] }
 0x14a   : > { %9896 = vmatprep.mubr.msk.f32.mxu0 %vm420_vm1, %v15657_v42  ;;  %v15665_v42 = vld [vmem:[#allocation22_spill] sm:$0xff] }
 0x14d   : > { %9897 = vmatmul.mubr.msk.f32.gmra.mrb[14].mxu0 %vm420_vm1, %v15658_v48 }
 0x14e   : > { %9899 = vmatprep.mubr.msk.f32.mxu0 %vm420_vm1, %v15659_v18  ;;  %v15666_v18 = vld [vmem:[#allocation24_spill] sm:$0xff] }
 0x151   : > { %9900 = vmatmul.mubr.msk.f32.gmra.mrb[16].mxu0 %vm420_vm1, %v15660_v0  ;;  %v15669_v0 = vld [vmem:[#allocation28_spill] sm:$0xff] }
 0x152   : > { %9902 = vmatprep.mubr.msk.f32.mxu0 %vm420_vm1, %v15661_v44  ;;  %v15667_v44 = vld [vmem:[#allocation26_spill] sm:$0xff] }
 0x155   : > { %9903 = vmatmul.mubr.msk.f32.gmra.mrb[18].mxu0 %vm420_vm1, %v15662_v22  ;;  %v2023_v22 = vrot.slane %v12182_v34, 1 }
 0x156   : > { %9905 = vmatprep.mubr.msk.f32.mxu0 %vm420_vm1, %v15663_v58  ;;  %v2022_v58 = vrot.slane %v12176_v33, 1 }
 0x159   : > { %9906 = vmatmul.mubr.msk.f32.gmra.mrb[20].mxu0 %vm420_vm1, %v15664_v47  ;;  %v623_v47 = vld [vmem:[#allocation2 + $0x190] sm:$0x3] }
 0x15a   : > { %9908 = vmatprep.mubr.msk.f32.mxu0 %vm420_vm1, %v15665_v42  ;;  %v15668_v42 = vld [vmem:[#allocation27_spill] sm:$0xff] }
 0x15d   : > { %9909 = vmatmul.mubr.msk.f32.gmra.mrb[22].mxu0 %vm420_vm1, %v11779_v50  ;;  %v2025_v50 = vrot.slane %v623_v47, 1 }
 0x15e   : > { %9911 = vmatprep.mubr.msk.f32.mxu0 %vm420_vm1, %v15666_v18  ;;  %v12252_v18 = vsel %vm684_vm3, %v2022_v58, %v2023_v22  ;;  %v634_v58 = vld [vmem:[%s15349_s2 + $0x1c] sm:$0xf] }
 0x161   : > { %9912 = vmatmul.mubr.msk.f32.gmra.mrb[24].mxu0 %vm420_vm1, %v11798_v3 }
 0x162   : > { %9914 = vmatprep.mubr.msk.f32.mxu0 %vm420_vm1, %v11802_v32  ;;  %v12259_v32 = vsel %vm684_vm3, %v2023_v22, %v2025_v50  ;;  %v15670_v50 = vld [vmem:[#allocation29_spill] sm:$0xff] }
 0x163   : > { %v15674_v22 = vld [vmem:[#allocation33_spill] sm:$0xff] }
 0x165   : > { %9915 = vmatmul.mubr.msk.f32.gmra.mrb[26].mxu0 %vm420_vm1, %v15667_v44 }
 0x166   : > { %9917 = vmatprep.mubr.msk.f32.mxu0 %vm420_vm1, %v15668_v42 }
 0x169   : > { %9918 = vmatmul.mubr.msk.f32.gmra.mrb[28].mxu0 %vm420_vm1, %v15669_v0 }
 0x16a   : > { %9920 = vmatprep.mubr.msk.f32.mxu0 %vm420_vm1, %v12252_v18 }
 0x16d   : > { %9921 = vmatmul.mubr.msk.f32.gmra.mrb[30].mxu0 %vm420_vm1, %v12259_v32 }
 0x16e   : > { %9925 = vmatprep.mubr.msk.f32.mxu0 %vm420_vm1, %v11912_v11  ;;  %v15671_v11 = vld [vmem:[#allocation30_spill] sm:$0xff] }
 0x171   : > { %9926 = vmatmul.mubr.msk.f32.vlgmr.msra.gmra.mrb[0].mxu0 %vm420_vm1, %v11926_v35  ;;  %v15672_v35 = vld [vmem:[#allocation31_spill] sm:$0xff] }
 0x172   : > { %9974 = vmatpush3.msk.msra.mxu0 %vm829_vm0, %v633_v41  ;;  %9928 = vmatprep.mubr.msk.f32.mxu0 %vm420_vm1, %v11930_v19  ;;  %v15673_v41 = vld [vmem:[#allocation32_spill] sm:$0xff] }
 0x173   : > { %10023 = vmatprep.subr.msk.mxu0 %vm829_vm0, %v634_v58 }
 0x175   : > { %9929 = vmatmul.mubr.msk.f32.gmra.mrb[2].mxu0 %vm420_vm1, %v11941_v17 }
 0x176   : > { %9931 = vmatprep.mubr.msk.f32.mxu0 %vm420_vm1, %v15670_v50 }
 0x179   : > { %9932 = vmatmul.mubr.msk.f32.gmra.mrb[4].mxu0 %vm420_vm1, %v11954_v7 }
 0x17a   : > { %9934 = vmatprep.mubr.msk.f32.mxu0 %vm420_vm1, %v15671_v11  ;;  %v15675_v11 = vld [vmem:[#allocation34_spill] sm:$0xff] }
 0x17d   : > { %9935 = vmatmul.mubr.msk.f32.gmra.mrb[6].mxu0 %vm420_vm1, %v11967_v20 }
 0x17e   : > { %9937 = vmatprep.mubr.msk.f32.mxu0 %vm420_vm1, %v15672_v35  ;;  %v15676_v35 = vld [vmem:[#allocation35_spill] sm:$0xff] }
 0x181   : > { %9938 = vmatmul.mubr.msk.f32.gmra.mrb[8].mxu0 %vm420_vm1, %v11980_v51 }
 0x182   : > { %9940 = vmatprep.mubr.msk.f32.mxu0 %vm420_vm1, %v15673_v41  ;;  %v15677_v41 = vld [vmem:[#allocation36_spill] sm:$0xff] }
 0x185   : > { %9941 = vmatmul.mubr.msk.f32.gmra.mrb[10].mxu0 %vm420_vm1, %v11993_v61 }
 0x186   : > { %9943 = vmatprep.mubr.msk.f32.mxu0 %vm420_vm1, %v15674_v22  ;;  %v15678_v22 = vld [vmem:[#allocation38_spill] sm:$0xff] }
 0x189   : > { %9944 = vmatmul.mubr.msk.f32.gmra.mrb[12].mxu0 %vm420_vm1, %v12006_v5 }
 0x18a   : > { %9946 = vmatprep.mubr.msk.f32.mxu0 %vm420_vm1, %v15675_v11  ;;  %v15679_v11 = vld [vmem:[#allocation39_spill] sm:$0xff] }
 0x18d   : > { %9947 = vmatmul.mubr.msk.f32.gmra.mrb[14].mxu0 %vm420_vm1, %v12019_v25 }
 0x18e   : > { %9949 = vmatprep.mubr.msk.f32.mxu0 %vm420_vm1, %v15676_v35  ;;  %v15680_v35 = vld [vmem:[#allocation41_spill] sm:$0xff] }
 0x191   : > { %9950 = vmatmul.mubr.msk.f32.gmra.mrb[16].mxu0 %vm420_vm1, %v12032_v36 }
 0x192   : > { %9952 = vmatprep.mubr.msk.f32.mxu0 %vm420_vm1, %v15677_v41 }
 0x195   : > { %9953 = vmatmul.mubr.msk.f32.gmra.mrb[18].mxu0 %vm420_vm1, %v12045_v53  ;;  %v2292_v53 = vrot.slane %v12182_v34, 2 }
 0x196   : > { %9955 = vmatprep.mubr.msk.f32.mxu0 %vm420_vm1, %v15678_v22  ;;  %v2291_v22 = vrot.slane %v12176_v33, 2 }
 0x199   : > { %9956 = vmatmul.mubr.msk.f32.gmra.mrb[20].mxu0 %vm420_vm1, %v12058_v12 }
 0x19a   : > { %9958 = vmatprep.mubr.msk.f32.mxu0 %vm420_vm1, %v15679_v11  ;;  %v12329_v11 = vsel %vm1350_vm4, %v2291_v22, %v2292_v53  ;;  %v477_v22 = vld [vmem:[%s12591_s21 + $0x8] sm:$0xff] }
 0x19d   : > { %9959 = vmatmul.mubr.msk.f32.gmra.mrb[22].mxu0 %vm420_vm1, %v12071_v23  ;;  %v2294_v23 = vrot.slane %v623_v47, 2  ;;  %v635_v47 = vld [vmem:[%s15349_s2 + $0x20] sm:$0xf] }
 0x19e   : > { %9961 = vmatprep.mubr.msk.f32.mxu0 %vm420_vm1, %v15680_v35 }
 0x1a1   : > { %9962 = vmatmul.mubr.msk.f32.gmra.mrb[24].mxu0 %vm420_vm1, %v12084_v1 }
 0x1a2   : > { %9964 = vmatprep.mubr.msk.f32.mxu0 %vm420_vm1, %v12088_v30  ;;  %v12336_v30 = vsel %vm1350_vm4, %v2292_v53, %v2294_v23 }
 0x1a5   : > { %9965 = vmatmul.mubr.msk.f32.gmra.mrb[26].mxu0 %vm420_vm1, %v12097_v60 }
 0x1a6   : > { %9967 = vmatprep.mubr.msk.f32.mxu0 %vm420_vm1, %v12101_v16 }
 0x1a9   : > { %9968 = vmatmul.mubr.msk.f32.gmra.mrb[28].mxu0 %vm420_vm1, %v12108_v6 }
 0x1aa   : > { %9970 = vmatprep.mubr.msk.f32.mxu0 %vm420_vm1, %v12329_v11 }
 0x1ad   : > { %9971 = vmatmul.mubr.msk.f32.gmra.mrb[30].mxu0 %vm420_vm1, %v12336_v30 }
 0x1ae   : > { %9975 = vmatprep.mubr.msk.f32.mxu0 %vm420_vm1, %v11534_v39  ;;  %v12403_v39 = vld [vmem:[#allocation2 + $0x198] sm:$0xff] }
 0x1b1   : > { %9976 = vmatmul.mubr.msk.f32.vlgmr.msra.gmra.mrb[0].mxu0 %vm420_vm1, %v11536_v40  ;;  %v12409_v40 = vld [vmem:[#allocation2 + $0x1a0] sm:$0xff] }
 0x1b2   : > { %10024 = vmatpush3.msk.msra.mxu0 %vm829_vm0, %v634_v58  ;;  %9978 = vmatprep.mubr.msk.f32.mxu0 %vm420_vm1, %v11543_v45  ;;  %v15681_v45 = vld [vmem:[#allocation5_spill] sm:$0xff]  ;;  %v12584_v58 = vld [vmem:[%s15351_s4] ss:$0 sm:$0xff] }
 0x1b3   : > { %10073 = vmatprep.subr.msk.mxu0 %vm829_vm0, %v635_v47 }
 0x1b5   : > { %9979 = vmatmul.mubr.msk.f32.gmra.mrb[2].mxu0 %vm420_vm1, %v11545_v46  ;;  %v15682_v46 = vld [vmem:[#allocation6_spill] sm:$0xff] }
 0x1b6   : > { %9981 = vmatprep.mubr.msk.f32.mxu0 %vm420_vm1, %v11564_v54  ;;  %v15683_v54 = vld [vmem:[#allocation7_spill] sm:$0xff] }
 0x1b9   : > { %9982 = vmatmul.mubr.msk.f32.gmra.mrb[4].mxu0 %vm420_vm1, %v11566_v55  ;;  %v15684_v55 = vld [vmem:[#allocation8_spill] sm:$0xff] }
 0x1ba   : > { %9984 = vmatprep.mubr.msk.f32.mxu0 %vm420_vm1, %v11583_v62  ;;  %v15687_v62 = vld [vmem:[#allocation11_spill] sm:$0xff] }
 0x1bd   : > { %9985 = vmatmul.mubr.msk.f32.gmra.mrb[6].mxu0 %vm420_vm1, %v11585_v63  ;;  %v15688_v63 = vld [vmem:[#allocation12_spill] sm:$0xff] }
 0x1be   : > { %9987 = vmatprep.mubr.msk.f32.mxu0 %vm420_vm1, %v11602_v8  ;;  %v15690_v8 = vld [vmem:[#allocation14_spill] sm:$0xff] }
 0x1c1   : > { %9988 = vmatmul.mubr.msk.f32.gmra.mrb[8].mxu0 %vm420_vm1, %v11604_v9  ;;  %v15691_v9 = vld [vmem:[#allocation16_spill] sm:$0xff] }
 0x1c2   : > { %9990 = vmatprep.mubr.msk.f32.mxu0 %vm420_vm1, %v11637_v26  ;;  %v15692_v26 = vld [vmem:[#allocation17_spill] sm:$0xff] }
 0x1c5   : > { %9991 = vmatmul.mubr.msk.f32.gmra.mrb[10].mxu0 %vm420_vm1, %v11639_v27  ;;  %v15693_v27 = vld [vmem:[#allocation18_spill] sm:$0xff] }
 0x1c6   : > { %9993 = vmatprep.mubr.msk.f32.mxu0 %vm420_vm1, %v11656_v37  ;;  %v15695_v37 = vld [vmem:[#allocation20_spill] sm:$0xff] }
 0x1c9   : > { %9994 = vmatmul.mubr.msk.f32.gmra.mrb[12].mxu0 %vm420_vm1, %v11658_v38  ;;  %v15696_v38 = vld [vmem:[#allocation21_spill] sm:$0xff] }
 0x1ca   : > { %9996 = vmatprep.mubr.msk.f32.mxu0 %vm420_vm1, %v11675_v57  ;;  %v15698_v57 = vld [vmem:[#allocation23_spill] sm:$0xff] }
 0x1cd   : > { %9997 = vmatmul.mubr.msk.f32.gmra.mrb[14].mxu0 %vm420_vm1, %v11677_v59  ;;  %v15699_v59 = vld [vmem:[#allocation24_spill] sm:$0xff] }
 0x1ce   : > { %9999 = vmatprep.mubr.msk.f32.mxu0 %vm420_vm1, %v11694_v13  ;;  %v15700_v13 = vld [vmem:[#allocation25_spill] sm:$0xff] }
 0x1d1   : > { %10000 = vmatmul.mubr.msk.f32.gmra.mrb[16].mxu0 %vm420_vm1, %v11696_v14  ;;  %v2827_v14 = vrot.slane %v12403_v39, 1 }
 0x1d2   : > { %10002 = vmatprep.mubr.msk.f32.mxu0 %vm420_vm1, %v11713_v24  ;;  %v626_v24 = vld [vmem:[#allocation2 + $0x1a8] sm:$0x3] }
 0x1d3   : > { %v3099_v53 = vrot.slane %v626_v24, 2 }
 0x1d5   : > { %10003 = vmatmul.mubr.msk.f32.gmra.mrb[18].mxu0 %vm420_vm1, %v11715_v29  ;;  %v2830_v29 = vrot.slane %v626_v24, 1 }
 0x1d6   : > { %10005 = vmatprep.mubr.msk.f32.mxu0 %vm420_vm1, %v11732_v4 }
 0x1d9   : > { %10006 = vmatmul.mubr.msk.f32.gmra.mrb[20].mxu0 %vm420_vm1, %v11734_v15  ;;  %v2828_v15 = vrot.slane %v12409_v40, 1 }
 0x1da   : > { %10008 = vmatprep.mubr.msk.f32.mxu0 %vm420_vm1, %v11751_v43  ;;  %v15697_v43 = vld [vmem:[#allocation22_spill] sm:$0xff] }
 0x1db   : > { %v2831_v4 = vsel %vm684_vm3, %v2828_v15, %v2830_v29 }
 0x1dd   : > { %10009 = vmatmul.mubr.msk.f32.gmra.mrb[22].mxu0 %vm420_vm1, %v11753_v31  ;;  %v2829_v31 = vsel %vm684_vm3, %v2827_v14, %v2828_v15  ;;  %v481_v14 = vld [vmem:[%s12591_s21 + $0x28] sm:$0xff] }
 0x1de   : > { %10011 = vmatprep.mubr.msk.f32.mxu0 %vm420_vm1, %v11770_v28  ;;  %v15694_v28 = vld [vmem:[#allocation19_spill] sm:$0xff] }
 0x1e1   : > { %10012 = vmatmul.mubr.msk.f32.gmra.mrb[24].mxu0 %vm420_vm1, %v11772_v10  ;;  %v15701_v10 = vld [vmem:[#allocation30_spill] sm:$0xff] }
 0x1e2   : > { %10014 = vmatprep.mubr.msk.f32.mxu0 %vm420_vm1, %v11789_v2  ;;  %v15689_v2 = vld [vmem:[#allocation13_spill] sm:$0xff] }
 0x1e5   : > { %10015 = vmatmul.mubr.msk.f32.gmra.mrb[26].mxu0 %vm420_vm1, %v11791_v21  ;;  %v15702_v21 = vld [vmem:[#allocation31_spill] sm:$0xff] }
 0x1e6   : > { %10017 = vmatprep.mubr.msk.f32.mxu0 %vm420_vm1, %v12176_v33  ;;  %v12552_v33 = vld [vmem:[#allocation2 + $0x10] sm:$0x3] }
 0x1e9   : > { %10018 = vmatmul.mubr.msk.f32.gmra.mrb[28].mxu0 %vm420_vm1, %v12182_v34  ;;  %v3653_v34 = vrot.slane %v12552_v33, 1 }
 0x1ea   : > { %10020 = vmatprep.mubr.msk.f32.mxu0 %vm420_vm1, %v12403_v39 }
 0x1ed   : > { %10021 = vmatmul.mubr.msk.f32.gmra.mrb[30].mxu0 %vm420_vm1, %v12409_v40 }
 0x1ee   : > { %10025 = vmatprep.mubr.msk.f32.mxu0 %vm420_vm1, %v11561_v52  ;;  %v15685_v52 = vld [vmem:[#allocation9_spill] sm:$0xff] }
 0x1f1   : > { %10026 = vmatmul.mubr.msk.f32.vlgmr.msra.gmra.mrb[0].mxu0 %vm420_vm1, %v11573_v56  ;;  %v15686_v56 = vld [vmem:[#allocation10_spill] sm:$0xff] }
 0x1f2   : > { %10074 = vmatpush3.msk.msra.mxu0 %vm829_vm0, %v635_v47  ;;  %10028 = vmatprep.mubr.msk.f32.mxu0 %vm420_vm1, %v15647_v49 }
 0x1f5   : > { %10029 = vmatmul.mubr.msk.f32.gmra.mrb[2].mxu0 %vm420_vm1, %v15681_v45  ;;  %v476_v45 = vld [vmem:[%s12591_s21] sm:$0xff] }
 0x1f6   : > { %10031 = vmatprep.mubr.msk.f32.mxu0 %vm420_vm1, %v15682_v46 }
 0x1f9   : > { %10032 = vmatmul.mubr.msk.f32.gmra.mrb[4].mxu0 %vm420_vm1, %v15683_v54 }
 0x1fa   : > { %10034 = vmatprep.mubr.msk.f32.mxu0 %vm420_vm1, %v15684_v55 }
 0x1fd   : > { %10035 = vmatmul.mubr.msk.f32.gmra.mrb[6].mxu0 %vm420_vm1, %v15685_v52 }
 0x1fe   : > { %10037 = vmatprep.mubr.msk.f32.mxu0 %vm420_vm1, %v15686_v56 }
 0x201   : > { %10038 = vmatmul.mubr.msk.f32.gmra.mrb[8].mxu0 %vm420_vm1, %v15687_v62 }
 0x202   : > { %10040 = vmatprep.mubr.msk.f32.mxu0 %vm420_vm1, %v15688_v63 }
 0x205   : > { %10041 = vmatmul.mubr.msk.f32.gmra.mrb[10].mxu0 %vm420_vm1, %v15689_v2  ;;  %v479_v2 = vld [vmem:[%s12591_s21 + $0x18] sm:$0xff] }
 0x206   : > { %10043 = vmatprep.mubr.msk.f32.mxu0 %vm420_vm1, %v15690_v8 }
 0x209   : > { %10044 = vmatmul.mubr.msk.f32.gmra.mrb[12].mxu0 %vm420_vm1, %v15658_v48  ;;  %v3593_v48 = vld [vmem:[%s15352_s5] sm:$0xf] }
 0x20a   : > { %10046 = vmatprep.mubr.msk.f32.mxu0 %vm420_vm1, %v15691_v9 }
 0x20d   : > { %10047 = vmatmul.mubr.msk.f32.gmra.mrb[14].mxu0 %vm420_vm1, %v15692_v26 }
 0x20e   : > { %10049 = vmatprep.mubr.msk.f32.mxu0 %vm420_vm1, %v15693_v27  ;;  %v478_v27 = vld [vmem:[%s12591_s21 + $0x10] sm:$0xff] }
 0x211   : > { %10050 = vmatmul.mubr.msk.f32.gmra.mrb[16].mxu0 %vm420_vm1, %v15694_v28 }
 0x212   : > { %10052 = vmatprep.mubr.msk.f32.mxu0 %vm420_vm1, %v15695_v37 }
 0x215   : > { %10053 = vmatmul.mubr.msk.f32.gmra.mrb[18].mxu0 %vm420_vm1, %v15696_v38 }
 0x216   : > { %10055 = vmatprep.mubr.msk.f32.mxu0 %vm420_vm1, %v15697_v43 }
 0x219   : > { %10056 = vmatmul.mubr.msk.f32.gmra.mrb[20].mxu0 %vm420_vm1, %v15698_v57 }
 0x21a   : > { %10058 = vmatprep.mubr.msk.f32.mxu0 %vm420_vm1, %v15699_v59 }
 0x21d   : > { %10059 = vmatmul.mubr.msk.f32.gmra.mrb[22].mxu0 %vm420_vm1, %v11798_v3  ;;  %v15703_v3 = vld [vmem:[#allocation32_spill] sm:$0xff] }
 0x21e   : > { %10061 = vmatprep.mubr.msk.f32.mxu0 %vm420_vm1, %v15700_v13 }
 0x221   : > { %10062 = vmatmul.mubr.msk.f32.gmra.mrb[24].mxu0 %vm420_vm1, %v15667_v44 }
 0x222   : > { %10064 = vmatprep.mubr.msk.f32.mxu0 %vm420_vm1, %v15668_v42 }
 0x225   : > { %10065 = vmatmul.mubr.msk.f32.gmra.mrb[26].mxu0 %vm420_vm1, %v15669_v0  ;;  %v12579_v0 = vld [vmem:[%s15350_s3] ss:$0 sm:$0xff] }
 0x226   : > { %10067 = vmatprep.mubr.msk.f32.mxu0 %vm420_vm1, %v12252_v18  ;;  %v12572_v18 = vld [vmem:[%s15352_s5 + $0x8] sm:$0xf] }
 0x229   : > { %10068 = vmatmul.mubr.msk.f32.gmra.mrb[28].mxu0 %vm420_vm1, %v12259_v32  ;;  %v15704_v32 = vld [vmem:[#allocation33_spill] sm:$0xff] }
 0x22a   : > { %10070 = vmatprep.mubr.msk.f32.mxu0 %vm420_vm1, %v2829_v31  ;;  %v480_v31 = vld [vmem:[%s12591_s21 + $0x20] sm:$0xff] }
 0x22d   : > { %10071 = vmatmul.mubr.msk.f32.gmra.mrb[30].mxu0 %vm420_vm1, %v2831_v4 }
 0x22e   : > { %10075 = vmatprep.mubr.msk.f32.mxu0 %vm420_vm1, %v11930_v19  ;;  %v15705_v19 = vld [vmem:[#allocation34_spill] sm:$0xff] }
 0x231   : > { %10076 = vmatmul.mubr.msk.f32.vlgmr.msra.gmra.mrb[0].mxu0 %vm420_vm1, %v11941_v17  ;;  %v15706_v17 = vld [vmem:[#allocation35_spill] sm:$0xff] }
 0x232   : > { %10078 = vmatprep.mubr.msk.f32.mxu0 %vm420_vm1, %v15670_v50 }
 0x235   : > { %10079 = vmatmul.mubr.msk.f32.gmra.mrb[2].mxu0 %vm420_vm1, %v11954_v7  ;;  %v15708_v7 = vld [vmem:[#allocation38_spill] sm:$0xff] }
 0x236   : > { %10081 = vmatprep.mubr.msk.f32.mxu0 %vm420_vm1, %v15701_v10 }
 0x239   : > { %10082 = vmatmul.mubr.msk.f32.gmra.mrb[4].mxu0 %vm420_vm1, %v11967_v20  ;;  %v15707_v20 = vld [vmem:[#allocation37_spill] sm:$0xff] }
 0x23a   : > { %10084 = vmatprep.mubr.msk.f32.mxu0 %vm420_vm1, %v15702_v21 }
 0x23d   : > { %10085 = vmatmul.mubr.msk.f32.gmra.mrb[6].mxu0 %vm420_vm1, %v11980_v51  ;;  %v15709_v51 = vld [vmem:[#allocation39_spill] sm:$0xff] }
 0x23e   : > { %10087 = vmatprep.mubr.msk.f32.mxu0 %vm420_vm1, %v15703_v3 }
 0x241   : > { %10088 = vmatmul.mubr.msk.f32.gmra.mrb[8].mxu0 %vm420_vm1, %v11993_v61  ;;  %v15710_v61 = vld [vmem:[#allocation40_spill] sm:$0xff] }
 0x242   : > { %10090 = vmatprep.mubr.msk.f32.mxu0 %vm420_vm1, %v15704_v32 }
 0x245   : > { %10091 = vmatmul.mubr.msk.f32.gmra.mrb[10].mxu0 %vm420_vm1, %v12006_v5  ;;  %v15711_v5 = vld [vmem:[#allocation42_spill] sm:$0xff] }
 0x246   : > { %10093 = vmatprep.mubr.msk.f32.mxu0 %vm420_vm1, %v15705_v19 }
 0x249   : > { %10094 = vmatmul.mubr.msk.f32.gmra.mrb[12].mxu0 %vm420_vm1, %v12019_v25  ;;  %v3096_v25 = vrot.slane %v12403_v39, 2 }
 0x24a   : > { %10096 = vmatprep.mubr.msk.f32.mxu0 %vm420_vm1, %v15706_v17 }
 0x24d   : > { %10097 = vmatmul.mubr.msk.f32.gmra.mrb[14].mxu0 %vm420_vm1, %v12032_v36  ;;  %v3097_v36 = vrot.slane %v12409_v40, 2 }
 0x24e   : > { %10099 = vmatprep.mubr.msk.f32.mxu0 %vm420_vm1, %v15677_v41 }
 0x24f   : > { %v3100_v23 = vsel %vm1350_vm4, %v3097_v36, %v3099_v53 }
 0x251   : > { %10100 = vmatmul.mubr.msk.f32.gmra.mrb[16].mxu0 %vm420_vm1, %v15707_v20  ;;  %v483_v20 = vld [vmem:[%s12591_s21 + $0x38] sm:$0xff] }
 0x252   : > { %10102 = vmatprep.mubr.msk.f32.mxu0 %vm420_vm1, %v15708_v7 }
 0x255   : > { %10103 = vmatmul.mubr.msk.f32.gmra.mrb[18].mxu0 %vm420_vm1, %v12058_v12  ;;  %v3098_v12 = vsel %vm1350_vm4, %v3096_v25, %v3097_v36  ;;  %v482_v25 = vld [vmem:[%s12591_s21 + $0x30] sm:$0xff] }
 0x256   : > { %10105 = vmatprep.mubr.msk.f32.mxu0 %vm420_vm1, %v15709_v51 }
 0x259   : > { %10106 = vmatmul.mubr.msk.f32.gmra.mrb[20].mxu0 %vm420_vm1, %v15710_v61 }
 0x25a   : > { %10108 = vmatprep.mubr.msk.f32.mxu0 %vm420_vm1, %v15680_v35 }
 0x25d   : > { %10109 = vmatmul.mubr.msk.f32.gmra.mrb[22].mxu0 %vm420_vm1, %v12084_v1  ;;  %v12546_v1 = vld [vmem:[#allocation2] sm:$0xff] }
 0x25e   : > { %10111 = vmatprep.mubr.msk.f32.mxu0 %vm420_vm1, %v15711_v5 }
 0x261   : > { %10112 = vmatmul.mubr.msk.f32.gmra.mrb[24].mxu0 %vm420_vm1, %v12097_v60  ;;  %v12548_v60 = vld [vmem:[#allocation2 + $0x8] sm:$0xff] }
 0x262   : > { %10114 = vmatprep.mubr.msk.f32.mxu0 %vm420_vm1, %v12101_v16  ;;  %v3650_v16 = vrot.slane %v12546_v1, 1 }
 0x265   : > { %10115 = vmatmul.mubr.msk.f32.gmra.mrb[26].mxu0 %vm420_vm1, %v12108_v6  ;;  %v3651_v6 = vrot.slane %v12548_v60, 1 }
 0x266   : > { %10117 = vmatprep.mubr.msk.f32.mxu0 %vm420_vm1, %v12329_v11 }
 0x267   : > { %v3652_v49 = vsel %vm684_vm3, %v3650_v16, %v3651_v6  ;;  %v3654_v42 = vsel %vm684_vm3, %v3651_v6, %v3653_v34 }
 0x268   : > { %10125 = vmatprep.mubr.msk.f32.mxu1 %vm420_vm1, %v3652_v49 }
 0x269   : > { %10118 = vmatmul.mubr.msk.f32.gmra.mrb[28].mxu0 %vm420_vm1, %v12336_v30  ;;  %v3594_v30 = vld [vmem:[%s15352_s5 + $0x4] sm:$0xf] }
 0x26a   : > { %10120 = vmatprep.mubr.msk.f32.mxu0 %vm420_vm1, %v3098_v12  ;;  %10123 = vmatprep.subr.msk.mxu1 %vm829_vm0, %v3594_v30 }
 0x26b   : > { %10124 = vmatpush3.msk.msra.mxu1 %vm829_vm0, %v3594_v30 }
 0x26c   : > { %10126 = vmatmul.mubr.msk.f32.vlgmr.msra.gmra.mrb[0].mxu1 %vm420_vm1, %v3654_v42  ;;  %10173 = vmatprep.subr.msk.mxu1 %vm829_vm0, %v3593_v48 }
 0x26d   : > { %10121 = vmatmul.mubr.msk.f32.gmra.mrb[30].mxu0 %vm420_vm1, %v3100_v23  ;;  %10174 = vmatpush3.msk.msra.mxu1 %vm829_vm0, %v3593_v48 }
 0x26e   : > { %10223 = vmatprep.subr.msk.mxu1 %vm829_vm0, %v12572_v18 }
 0x304   : > { %v10077_v44 = vpop.f32.mrb[0].mxu0 }
 0x305   : > { %v3373_v50 = vmul.f32 %v10077_v44, %v12579_v0  ;;  %v3174_v11 = vpop.f32.mrb[1].mxu0 }
 0x306   : > { %v3372_v35 = vmul.f32 %v12579_v0, %v3174_v11 }
 0x307   : > { %v3412_v41 = vadd.f32 %v12584_v58, %v3373_v50  ;;  %v485_v50 = vld [vmem:[%s12591_s21 + $0x48] sm:$0xff] }
 0x308   : > { %v3411_v47 = vadd.f32 %v12584_v58, %v3372_v35  ;;  %v10080_v39 = vpop.f32.mrb[2].mxu0 }
 0x309   : > { %v3444_v40 = vmax.f32 %v3412_v41, 0.0  ;;  %v3375_v46 = vmul.f32 %v10080_v39, %v12579_v0  ;;  %v3184_v54 = vpop.f32.mrb[3].mxu0 }
 0x30a   : > { %v3443_v55 = vmax.f32 %v3411_v47, 0.0  ;;  %v3374_v52 = vmul.f32 %v12579_v0, %v3184_v54 }
 0x30b   : > { %v3476_v56 = vadd.f32 %v3444_v40, %v477_v22  ;;  %v3414_v62 = vadd.f32 %v12584_v58, %v3375_v46  ;;  %v484_v40 = vld [vmem:[%s12591_s21 + $0x40] sm:$0xff] }
 0x30c   : > { %v3475_v63 = vadd.f32 %v3443_v55, %v476_v45  ;;  %v3413_v8 = vadd.f32 %v12584_v58, %v3374_v52  ;;  %v10083_v9 = vpop.f32.mrb[4].mxu0 }
 0x30d   : > { %3508 = vst.msk [vmem:[#allocation2 + $0x21] sm:$0xff] %vm420_vm1, %v3476_v56  ;;  %v3446_v26 = vmax.f32 %v3414_v62, 0.0  ;;  %v3377_v28 = vmul.f32 %v10083_v9, %v12579_v0  ;;  %v3194_v37 = vpop.f32.mrb[5].mxu0 }
 0x30e   : > { %3507 = vst.msk [vmem:[#allocation2 + $0x19] sm:$0xff] %vm420_vm1, %v3475_v63  ;;  %v3445_v38 = vmax.f32 %v3413_v8, 0.0  ;;  %v3376_v43 = vmul.f32 %v12579_v0, %v3194_v37 }
 0x30f   : > { %v3478_v57 = vadd.f32 %v3446_v26, %v479_v2  ;;  %v3416_v59 = vadd.f32 %v12584_v58, %v3377_v28 }
 0x310   : > { %v3477_v13 = vadd.f32 %v3445_v38, %v478_v27  ;;  %v3415_v15 = vadd.f32 %v12584_v58, %v3376_v43  ;;  %v10086_v24 = vpop.f32.mrb[6].mxu0  ;;  %v487_v27 = vld [vmem:[%s12591_s21 + $0x58] sm:$0xff] }
 0x311   : > { %3510 = vst.msk [vmem:[#allocation2 + $0x39] sm:$0xff] %vm420_vm1, %v3478_v57  ;;  %v3448_v29 = vmax.f32 %v3416_v59, 0.0  ;;  %v3379_v4 = vmul.f32 %v10086_v24, %v12579_v0  ;;  %v3204_v10 = vpop.f32.mrb[7].mxu0 }
 0x312   : > { %3509 = vst.msk [vmem:[#allocation2 + $0x31] sm:$0xff] %vm420_vm1, %v3477_v13  ;;  %v3447_v21 = vmax.f32 %v3415_v15, 0.0  ;;  %v3378_v3 = vmul.f32 %v12579_v0, %v3204_v10  ;;  %v486_v13 = vld [vmem:[%s12591_s21 + $0x50] sm:$0xff] }
 0x313   : > { %v3480_v32 = vadd.f32 %v3448_v29, %v481_v14  ;;  %v3418_v19 = vadd.f32 %v12584_v58, %v3379_v4 }
 0x314   : > { %v3479_v17 = vadd.f32 %v3447_v21, %v480_v31  ;;  %v3417_v7 = vadd.f32 %v12584_v58, %v3378_v3  ;;  %v10089_v51 = vpop.f32.mrb[8].mxu0  ;;  %v12620_v61 = vld [vmem:[#allocation2 + $0x28] sm:$0x3] }
 0x315   : > { %3512 = vst.msk [vmem:[#allocation2 + $0x51] sm:$0xff] %vm420_vm1, %v3480_v32  ;;  %v3450_v5 = vmax.f32 %v3418_v19, 0.0  ;;  %v3381_v36 = vmul.f32 %v10089_v51, %v12579_v0  ;;  %v3214_v53 = vpop.f32.mrb[9].mxu0  ;;  %v12625_v12 = vld [vmem:[#allocation2 + $0x18] sm:$0xff]  ;;  %v12627_v23 = vld [vmem:[#allocation2 + $0x20] sm:$0xff]  ;;  %v3658_v16 = vrot.slane %v12620_v61, 1 }
 0x316   : > { %3511 = vst.msk [vmem:[#allocation2 + $0x49] sm:$0xff] %vm420_vm1, %v3479_v17  ;;  %v3449_v6 = vmax.f32 %v3417_v7, 0.0  ;;  %v3380_v30 = vmul.f32 %v12579_v0, %v3214_v53  ;;  %v3655_v34 = vrot.slane %v12625_v12, 1  ;;  %v3656_v49 = vrot.slane %v12627_v23, 1 }
 0x317   : > { %v3482_v42 = vadd.f32 %v3450_v5, %v483_v20  ;;  %v3420_v48 = vadd.f32 %v12584_v58, %v3381_v36  ;;  %v489_v20 = vld [vmem:[%s12591_s21 + $0x68] sm:$0xff] }
 0x318   : > { %v3481_v44 = vadd.f32 %v3449_v6, %v482_v25  ;;  %v3419_v11 = vadd.f32 %v12584_v58, %v3380_v30  ;;  %v10092_v35 = vpop.f32.mrb[10].mxu0  ;;  %v12638_v41 = vsel %vm684_vm3, %v3655_v34, %v3656_v49  ;;  %v12641_v22 = vsel %vm684_vm3, %v3656_v49, %v3658_v16  ;;  %v12643_v47 = vld [vmem:[#allocation2 + $0x40] sm:$0x3] }
 0x319   : > { %3514 = vst.msk [vmem:[#allocation2 + $0x69] sm:$0xff] %vm420_vm1, %v3482_v42  ;;  %v3452_v39 = vmax.f32 %v3420_v48, 0.0  ;;  %v3383_v45 = vmul.f32 %v10092_v35, %v12579_v0  ;;  %v3224_v46 = vpop.f32.mrb[11].mxu0  ;;  %10128 = vmatprep.mubr.msk.f32.mxu1 %vm420_vm1, %v12638_v41  ;;  %v12650_v54 = vld [vmem:[#allocation2 + $0x30] sm:$0xff]  ;;  %v12652_v55 = vld [vmem:[#allocation2 + $0x38] sm:$0xff]  ;;  %v3663_v52 = vrot.slane %v12643_v47, 1 }
 0x31a   : > { %3513 = vst.msk [vmem:[#allocation2 + $0x61] sm:$0xff] %vm420_vm1, %v3481_v44  ;;  %v3451_v56 = vmax.f32 %v3419_v11, 0.0  ;;  %v3382_v62 = vmul.f32 %v12579_v0, %v3224_v46  ;;  %10129 = vmatmul.mubr.msk.f32.gmra.mrb[2].mxu1 %vm420_vm1, %v12641_v22  ;;  %v3660_v63 = vrot.slane %v12650_v54, 1  ;;  %v3661_v2 = vrot.slane %v12652_v55, 1  ;;  %v488_v16 = vld [vmem:[%s12591_s21 + $0x60] sm:$0xff] }
 0x31b   : > { %v3484_v8 = vadd.f32 %v3452_v39, %v485_v50  ;;  %v3422_v9 = vadd.f32 %v12584_v58, %v3383_v45  ;;  %v491_v45 = vld [vmem:[%s12591_s21 + $0x78] sm:$0xff] }
 0x31c   : > { %v3483_v26 = vadd.f32 %v3451_v56, %v484_v40  ;;  %v3421_v28 = vadd.f32 %v12584_v58, %v3382_v62  ;;  %v10095_v37 = vpop.f32.mrb[12].mxu0  ;;  %v12665_v38 = vsel %vm684_vm3, %v3660_v63, %v3661_v2  ;;  %v12668_v43 = vsel %vm684_vm3, %v3661_v2, %v3663_v52  ;;  %v12670_v57 = vld [vmem:[#allocation2 + $0x58] sm:$0x3] }
 0x31d   : > { %3516 = vst.msk [vmem:[#allocation2 + $0x81] sm:$0xff] %vm420_vm1, %v3484_v8  ;;  %v3454_v59 = vmax.f32 %v3422_v9, 0.0  ;;  %v3385_v14 = vmul.f32 %v10095_v37, %v12579_v0  ;;  %v3234_v15 = vpop.f32.mrb[13].mxu0  ;;  %10131 = vmatprep.mubr.msk.f32.mxu1 %vm420_vm1, %v12665_v38  ;;  %v12677_v24 = vld [vmem:[#allocation2 + $0x48] sm:$0xff]  ;;  %v12679_v29 = vld [vmem:[#allocation2 + $0x50] sm:$0xff]  ;;  %v3668_v31 = vrot.slane %v12670_v57, 1 }
 0x31e   : > { %3515 = vst.msk [vmem:[#allocation2 + $0x79] sm:$0xff] %vm420_vm1, %v3483_v26  ;;  %v3453_v4 = vmax.f32 %v3421_v28, 0.0  ;;  %v3384_v10 = vmul.f32 %v12579_v0, %v3234_v15  ;;  %10132 = vmatmul.mubr.msk.f32.gmra.mrb[4].mxu1 %vm420_vm1, %v12668_v43  ;;  %v3665_v21 = vrot.slane %v12677_v24, 1  ;;  %v3666_v3 = vrot.slane %v12679_v29, 1  ;;  %v490_v8 = vld [vmem:[%s12591_s21 + $0x70] sm:$0xff] }
 0x31f   : > { %v3486_v32 = vadd.f32 %v3454_v59, %v487_v27  ;;  %v3424_v19 = vadd.f32 %v12584_v58, %v3385_v14 }
 0x320   : > { %v3485_v17 = vadd.f32 %v3453_v4, %v486_v13  ;;  %v3423_v7 = vadd.f32 %v12584_v58, %v3384_v10  ;;  %v10098_v51 = vpop.f32.mrb[14].mxu0  ;;  %v12692_v5 = vsel %vm684_vm3, %v3665_v21, %v3666_v3  ;;  %v12695_v25 = vsel %vm684_vm3, %v3666_v3, %v3668_v31  ;;  %v12697_v36 = vld [vmem:[#allocation2 + $0x70] sm:$0x3]  ;;  %v493_v21 = vld [vmem:[%s12591_s21 + $0x88] sm:$0xff] }
 0x321   : > { %15712 = vst [vmem:[#allocation4_spill] sm:$0xff] %v12692_v5  ;;  %15713 = vst [vmem:[#allocation15_spill] sm:$0xff] %v12695_v25  ;;  %v3456_v53 = vmax.f32 %v3424_v19, 0.0  ;;  %v3387_v6 = vmul.f32 %v10098_v51, %v12579_v0  ;;  %v3244_v30 = vpop.f32.mrb[15].mxu0  ;;  %10134 = vmatprep.mubr.msk.f32.mxu1 %vm420_vm1, %v12692_v5  ;;  %v12704_v34 = vld [vmem:[#allocation2 + $0x60] sm:$0xff]  ;;  %v12706_v49 = vld [vmem:[#allocation2 + $0x68] sm:$0xff] }
 0x322   : > { %3518 = vst.msk [vmem:[#allocation2 + $0x99] sm:$0xff] %vm420_vm1, %v3486_v32  ;;  %v3673_v42 = vrot.slane %v12697_v36, 1  ;;  %3517 = vst.msk [vmem:[#allocation2 + $0x91] sm:$0xff] %vm420_vm1, %v3485_v17  ;;  %v3455_v48 = vmax.f32 %v3423_v7, 0.0  ;;  %v3386_v44 = vmul.f32 %v12579_v0, %v3244_v30  ;;  %10135 = vmatmul.mubr.msk.f32.gmra.mrb[6].mxu1 %vm420_vm1, %v12695_v25  ;;  %v3670_v50 = vrot.slane %v12704_v34, 1  ;;  %v492_v51 = vld [vmem:[%s12591_s21 + $0x80] sm:$0xff] }
 0x323   : > { %v3671_v11 = vrot.slane %v12706_v49, 1  ;;  %v3488_v35 = vadd.f32 %v3456_v53, %v489_v20  ;;  %v3426_v39 = vadd.f32 %v12584_v58, %v3387_v6  ;;  %v504_v25 = vld [vmem:[%s12591_s21 + $0xe0] sm:$0xff] }
 0x324   : > { %v3487_v40 = vadd.f32 %v3455_v48, %v488_v16  ;;  %v3425_v46 = vadd.f32 %v12584_v58, %v3386_v44  ;;  %v10101_v52 = vpop.f32.mrb[16].mxu0  ;;  %v12724_v63 = vld [vmem:[#allocation2 + $0x88] sm:$0x3] }
 0x325   : > { %v12719_v56 = vsel %vm684_vm3, %v3670_v50, %v3671_v11  ;;  %v12722_v62 = vsel %vm684_vm3, %v3671_v11, %v3673_v42  ;;  %3520 = vst.msk [vmem:[#allocation2 + $0xb1] sm:$0xff] %vm420_vm1, %v3488_v35  ;;  %v3458_v2 = vmax.f32 %v3426_v39, 0.0  ;;  %v3389_v9 = vmul.f32 %v10101_v52, %v12579_v0  ;;  %v3254_v26 = vpop.f32.mrb[17].mxu0  ;;  %v12731_v27 = vld [vmem:[#allocation2 + $0x78] sm:$0xff]  ;;  %v12733_v28 = vld [vmem:[#allocation2 + $0x80] sm:$0xff] }
 0x326   : > { %15714 = vst [vmem:[#allocation26_spill] sm:$0xff] %v12719_v56  ;;  %15715 = vst [vmem:[#allocation27_spill] sm:$0xff] %v12722_v62  ;;  %10137 = vmatprep.mubr.msk.f32.mxu1 %vm420_vm1, %v12719_v56  ;;  %v3678_v37 = vrot.slane %v12724_v63, 1  ;;  %v3457_v59 = vmax.f32 %v3425_v46, 0.0  ;;  %v3388_v13 = vmul.f32 %v12579_v0, %v3254_v26  ;;  %v3675_v14 = vrot.slane %v12731_v27, 1 }
 0x327   : > { %3519 = vst.msk [vmem:[#allocation2 + $0xa9] sm:$0xff] %vm420_vm1, %v3487_v40  ;;  %10138 = vmatmul.mubr.msk.f32.gmra.mrb[8].mxu1 %vm420_vm1, %v12722_v62  ;;  %v3676_v15 = vrot.slane %v12733_v28, 1  ;;  %v3490_v31 = vadd.f32 %v3458_v2, %v491_v45  ;;  %v3428_v4 = vadd.f32 %v12584_v58, %v3389_v9  ;;  %v495_v45 = vld [vmem:[%s12591_s21 + $0x98] sm:$0xff] }
 0x328   : > { %v3489_v10 = vadd.f32 %v3457_v59, %v490_v8  ;;  %v3427_v3 = vadd.f32 %v12584_v58, %v3388_v13  ;;  %v10104_v32 = vpop.f32.mrb[18].mxu0 }
 0x329   : > { %v12746_v19 = vsel %vm684_vm3, %v3675_v14, %v3676_v15  ;;  %v12749_v17 = vsel %vm684_vm3, %v3676_v15, %v3678_v37  ;;  %v12751_v20 = vld [vmem:[#allocation2 + $0xa0] sm:$0x3]  ;;  %3522 = vst.msk [vmem:[#allocation2 + $0xc9] sm:$0xff] %vm420_vm1, %v3490_v31  ;;  %v3460_v7 = vmax.f32 %v3428_v4, 0.0  ;;  %v3391_v53 = vmul.f32 %v10104_v32, %v12579_v0  ;;  %v3264_v16 = vpop.f32.mrb[19].mxu0  ;;  %v12758_v6 = vld [vmem:[#allocation2 + $0x90] sm:$0xff] }
 0x32a   : > { %15716 = vst [vmem:[#allocation28_spill] sm:$0xff] %v12746_v19  ;;  %15717 = vst [vmem:[#allocation29_spill] sm:$0xff] %v12749_v17  ;;  %10140 = vmatprep.mubr.msk.f32.mxu1 %vm420_vm1, %v12746_v19  ;;  %v12760_v30 = vld [vmem:[#allocation2 + $0x98] sm:$0xff]  ;;  %v3683_v42 = vrot.slane %v12751_v20, 1  ;;  %v3459_v48 = vmax.f32 %v3427_v3, 0.0  ;;  %v3390_v44 = vmul.f32 %v12579_v0, %v3264_v16  ;;  %v3680_v50 = vrot.slane %v12758_v6, 1 }
 0x32b   : > { %3521 = vst.msk [vmem:[#allocation2 + $0xc1] sm:$0xff] %vm420_vm1, %v3489_v10  ;;  %10141 = vmatmul.mubr.msk.f32.gmra.mrb[10].mxu1 %vm420_vm1, %v12749_v17  ;;  %v3681_v11 = vrot.slane %v12760_v30, 1  ;;  %v3492_v35 = vadd.f32 %v3460_v7, %v493_v21  ;;  %v3430_v39 = vadd.f32 %v12584_v58, %v3391_v53  ;;  %v494_v37 = vld [vmem:[%s12591_s21 + $0x90] sm:$0xff]  ;;  %v497_v53 = vld [vmem:[%s12591_s21 + $0xa8] sm:$0xff] }
 0x32c   : > { %v3491_v40 = vadd.f32 %v3459_v48, %v492_v51  ;;  %v3429_v46 = vadd.f32 %v12584_v58, %v3390_v44  ;;  %v10107_v52 = vpop.f32.mrb[20].mxu0  ;;  %v12778_v9 = vld [vmem:[#allocation2 + $0xb8] sm:$0x3]  ;;  %v502_v19 = vld [vmem:[%s12591_s21 + $0xd0] sm:$0xff] }
 0x32d   : > { %v12773_v2 = vsel %vm684_vm3, %v3680_v50, %v3681_v11  ;;  %v12776_v8 = vsel %vm684_vm3, %v3681_v11, %v3683_v42  ;;  %3524 = vst.msk [vmem:[#allocation2 + $0xe1] sm:$0xff] %vm420_vm1, %v3492_v35  ;;  %v3462_v26 = vmax.f32 %v3430_v39, 0.0  ;;  %v3393_v59 = vmul.f32 %v10107_v52, %v12579_v0  ;;  %v3274_v13 = vpop.f32.mrb[21].mxu0  ;;  %v496_v35 = vld [vmem:[%s12591_s21 + $0xa0] sm:$0xff] }
 0x32e   : > { %15718 = vst [vmem:[#allocation36_spill] sm:$0xff] %v12773_v2  ;;  %15719 = vst [vmem:[#allocation41_spill] sm:$0xff] %v12776_v8  ;;  %10143 = vmatprep.mubr.msk.f32.mxu1 %vm420_vm1, %v12773_v2  ;;  %v12785_v14 = vld [vmem:[#allocation2 + $0xa8] sm:$0xff]  ;;  %v12787_v15 = vld [vmem:[#allocation2 + $0xb0] sm:$0xff]  ;;  %v3688_v31 = vrot.slane %v12778_v9, 1  ;;  %v3461_v4 = vmax.f32 %v3429_v46, 0.0  ;;  %v3392_v10 = vmul.f32 %v12579_v0, %v3274_v13 }
 0x32f   : > { %3523 = vst.msk [vmem:[#allocation2 + $0xd9] sm:$0xff] %vm420_vm1, %v3491_v40  ;;  %10144 = vmatmul.mubr.msk.f32.gmra.mrb[12].mxu1 %vm420_vm1, %v12776_v8  ;;  %v3685_v21 = vrot.slane %v12785_v14, 1  ;;  %v3686_v3 = vrot.slane %v12787_v15, 1  ;;  %v3494_v32 = vadd.f32 %v3462_v26, %v495_v45  ;;  %v3432_v7 = vadd.f32 %v12584_v58, %v3393_v59  ;;  %v500_v8 = vld [vmem:[%s12591_s21 + $0xc0] sm:$0xff] }
 0x330   : > { %v3493_v51 = vadd.f32 %v3461_v4, %v494_v37  ;;  %v3431_v16 = vadd.f32 %v12584_v58, %v3392_v10  ;;  %v10110_v42 = vpop.f32.mrb[22].mxu0  ;;  %v12805_v50 = vld [vmem:[#allocation2 + $0xd0] sm:$0x3] }
 0x331   : > { %v12800_v48 = vsel %vm684_vm3, %v3685_v21, %v3686_v3  ;;  %v12803_v44 = vsel %vm684_vm3, %v3686_v3, %v3688_v31  ;;  %3526 = vst.msk [vmem:[#allocation2 + $0xf9] sm:$0xff] %vm420_vm1, %v3494_v32  ;;  %v3464_v11 = vmax.f32 %v3432_v7, 0.0  ;;  %v3395_v39 = vmul.f32 %v10110_v42, %v12579_v0  ;;  %v3284_v40 = vpop.f32.mrb[23].mxu0  ;;  %v499_v21 = vld [vmem:[%s12591_s21 + $0xb8] sm:$0xff] }
 0x332   : > { %15720 = vst [vmem:[#allocation5_spill] sm:$0xff] %v12800_v48  ;;  %15721 = vst [vmem:[#allocation6_spill] sm:$0xff] %v12803_v44  ;;  %10146 = vmatprep.mubr.msk.f32.mxu1 %vm420_vm1, %v12800_v48  ;;  %v12812_v45 = vld [vmem:[#allocation2 + $0xc0] sm:$0xff]  ;;  %v12814_v46 = vld [vmem:[#allocation2 + $0xc8] sm:$0xff]  ;;  %v3693_v52 = vrot.slane %v12805_v50, 1  ;;  %v3463_v26 = vmax.f32 %v3431_v16, 0.0  ;;  %v3394_v37 = vmul.f32 %v12579_v0, %v3284_v40 }
 0x333   : > { %3525 = vst.msk [vmem:[#allocation2 + $0xf1] sm:$0xff] %vm420_vm1, %v3493_v51  ;;  %10147 = vmatmul.mubr.msk.f32.gmra.mrb[14].mxu1 %vm420_vm1, %v12803_v44  ;;  %v3690_v59 = vrot.slane %v12812_v45, 1  ;;  %v3691_v13 = vrot.slane %v12814_v46, 1  ;;  %v3496_v31 = vadd.f32 %v3464_v11, %v497_v53  ;;  %v3434_v4 = vadd.f32 %v12584_v58, %v3395_v39  ;;  %v498_v40 = vld [vmem:[%s12591_s21 + $0xb0] sm:$0xff] }
 0x334   : > { %v3495_v10 = vadd.f32 %v3463_v26, %v496_v35  ;;  %v3433_v3 = vadd.f32 %v12584_v58, %v3394_v37  ;;  %v10113_v32 = vpop.f32.mrb[24].mxu0  ;;  %v12832_v16 = vld [vmem:[#allocation2 + $0xe8] sm:$0x3] }
 0x335   : > { %v12827_v7 = vsel %vm684_vm3, %v3690_v59, %v3691_v13  ;;  %v12830_v51 = vsel %vm684_vm3, %v3691_v13, %v3693_v52  ;;  %3528 = vst.msk [vmem:[#allocation2 + $0x111] sm:$0xff] %vm420_vm1, %v3496_v31  ;;  %v3466_v42 = vmax.f32 %v3434_v4, 0.0  ;;  %v3397_v53 = vmul.f32 %v10113_v32, %v12579_v0  ;;  %v3294_v11 = vpop.f32.mrb[25].mxu0 }
 0x336   : > { %15722 = vst [vmem:[#allocation7_spill] sm:$0xff] %v12827_v7  ;;  %15723 = vst [vmem:[#allocation8_spill] sm:$0xff] %v12830_v51  ;;  %10149 = vmatprep.mubr.msk.f32.mxu1 %vm420_vm1, %v12827_v7  ;;  %v12839_v35 = vld [vmem:[#allocation2 + $0xd8] sm:$0xff]  ;;  %v12841_v39 = vld [vmem:[#allocation2 + $0xe0] sm:$0xff]  ;;  %v3698_v52 = vrot.slane %v12832_v16, 1  ;;  %v3465_v26 = vmax.f32 %v3433_v3, 0.0  ;;  %v3396_v37 = vmul.f32 %v12579_v0, %v3294_v11 }
 0x337   : > { %3527 = vst.msk [vmem:[#allocation2 + $0x109] sm:$0xff] %vm420_vm1, %v3495_v10  ;;  %10150 = vmatmul.mubr.msk.f32.gmra.mrb[16].mxu1 %vm420_vm1, %v12830_v51  ;;  %v3695_v59 = vrot.slane %v12839_v35, 1  ;;  %v3696_v13 = vrot.slane %v12841_v39, 1  ;;  %v3498_v31 = vadd.f32 %v3466_v42, %v499_v21  ;;  %v3436_v4 = vadd.f32 %v12584_v58, %v3397_v53  ;;  %v501_v7 = vld [vmem:[%s12591_s21 + $0xc8] sm:$0xff] }
 0x338   : > { %v3497_v32 = vadd.f32 %v3465_v26, %v498_v40  ;;  %v3435_v44 = vadd.f32 %v12584_v58, %v3396_v37  ;;  %v10116_v48 = vpop.f32.mrb[26].mxu0  ;;  %v12859_v11 = vld [vmem:[#allocation2 + $0x100] sm:$0x3] }
 0x339   : > { %v12854_v10 = vsel %vm684_vm3, %v3695_v59, %v3696_v13  ;;  %v12857_v3 = vsel %vm684_vm3, %v3696_v13, %v3698_v52  ;;  %3530 = vst.msk [vmem:[#allocation2 + $0x129] sm:$0xff] %vm420_vm1, %v3498_v31  ;;  %v3468_v51 = vmax.f32 %v3436_v4, 0.0  ;;  %v3399_v21 = vmul.f32 %v10116_v48, %v12579_v0  ;;  %v3304_v42 = vpop.f32.mrb[27].mxu0 }
 0x33a   : > { %15724 = vst [vmem:[#allocation9_spill] sm:$0xff] %v12854_v10  ;;  %15725 = vst [vmem:[#allocation10_spill] sm:$0xff] %v12857_v3  ;;  %10152 = vmatprep.mubr.msk.f32.mxu1 %vm420_vm1, %v12854_v10  ;;  %v12866_v40 = vld [vmem:[#allocation2 + $0xf0] sm:$0xff]  ;;  %v12868_v53 = vld [vmem:[#allocation2 + $0xf8] sm:$0xff]  ;;  %v3703_v52 = vrot.slane %v12859_v11, 1  ;;  %v3467_v26 = vmax.f32 %v3435_v44, 0.0  ;;  %v3398_v37 = vmul.f32 %v12579_v0, %v3304_v42 }
 0x33b   : > { %3529 = vst.msk [vmem:[#allocation2 + $0x121] sm:$0xff] %vm420_vm1, %v3497_v32  ;;  %10153 = vmatmul.mubr.msk.f32.gmra.mrb[18].mxu1 %vm420_vm1, %v12857_v3  ;;  %v3700_v48 = vrot.slane %v12866_v40, 1  ;;  %v3701_v59 = vrot.slane %v12868_v53, 1  ;;  %v3500_v13 = vadd.f32 %v3468_v51, %v501_v7  ;;  %v3438_v31 = vadd.f32 %v12584_v58, %v3399_v21  ;;  %v503_v10 = vld [vmem:[%s12591_s21 + $0xd8] sm:$0xff] }
 0x33c   : > { %v3499_v4 = vadd.f32 %v3467_v26, %v500_v8  ;;  %v3437_v2 = vadd.f32 %v12584_v58, %v3398_v37  ;;  %v10119_v17 = vpop.f32.mrb[28].mxu0  ;;  %v12886_v42 = vld [vmem:[#allocation2 + $0x118] sm:$0x3] }
 0x33d   : > { %v12881_v44 = vsel %vm684_vm3, %v3700_v48, %v3701_v59  ;;  %v12884_v32 = vsel %vm684_vm3, %v3701_v59, %v3703_v52  ;;  %3532 = vst.msk [vmem:[#allocation2 + $0x141] sm:$0xff] %vm420_vm1, %v3500_v13  ;;  %v3470_v3 = vmax.f32 %v3438_v31, 0.0  ;;  %v3401_v7 = vmul.f32 %v10119_v17, %v12579_v0  ;;  %v3314_v8 = vpop.f32.mrb[29].mxu0 }
 0x33e   : > { %15726 = vst [vmem:[#allocation11_spill] sm:$0xff] %v12881_v44  ;;  %15727 = vst [vmem:[#allocation12_spill] sm:$0xff] %v12884_v32  ;;  %10155 = vmatprep.mubr.msk.f32.mxu1 %vm420_vm1, %v12881_v44  ;;  %v12893_v51 = vld [vmem:[#allocation2 + $0x108] sm:$0xff]  ;;  %v12895_v21 = vld [vmem:[#allocation2 + $0x110] sm:$0xff]  ;;  %v3708_v52 = vrot.slane %v12886_v42, 1  ;;  %v3469_v26 = vmax.f32 %v3437_v2, 0.0  ;;  %v3400_v37 = vmul.f32 %v12579_v0, %v3314_v8 }
 0x33f   : > { %3531 = vst.msk [vmem:[#allocation2 + $0x139] sm:$0xff] %vm420_vm1, %v3499_v4  ;;  %10156 = vmatmul.mubr.msk.f32.gmra.mrb[20].mxu1 %vm420_vm1, %v12884_v32  ;;  %v3705_v17 = vrot.slane %v12893_v51, 1  ;;  %v3706_v48 = vrot.slane %v12895_v21, 1  ;;  %v3502_v59 = vadd.f32 %v3470_v3, %v503_v10  ;;  %v3440_v13 = vadd.f32 %v12584_v58, %v3401_v7  ;;  %v505_v44 = vld [vmem:[%s12591_s21 + $0xe8] sm:$0xff] }
 0x340   : > { %v3501_v31 = vadd.f32 %v3469_v26, %v502_v19  ;;  %v3439_v62 = vadd.f32 %v12584_v58, %v3400_v37  ;;  %v10122_v56 = vpop.f32.mrb[30].mxu0  ;;  %v12913_v8 = vld [vmem:[#allocation2 + $0x130] sm:$0x3] }
 0x341   : > { %v12908_v2 = vsel %vm684_vm3, %v3705_v17, %v3706_v48  ;;  %v12911_v4 = vsel %vm684_vm3, %v3706_v48, %v3708_v52  ;;  %3534 = vst.msk [vmem:[#allocation2 + $0x159] sm:$0xff] %vm420_vm1, %v3502_v59  ;;  %v3472_v32 = vmax.f32 %v3440_v13, 0.0  ;;  %v3403_v10 = vmul.f32 %v10122_v56, %v12579_v0  ;;  %v3324_v19 = vpop.f32.mrb[31].mxu0 }
 0x342   : > { %15728 = vst [vmem:[#allocation13_spill] sm:$0xff] %v12908_v2  ;;  %15729 = vst [vmem:[#allocation14_spill] sm:$0xff] %v12911_v4  ;;  %10158 = vmatprep.mubr.msk.f32.mxu1 %vm420_vm1, %v12908_v2  ;;  %v12920_v3 = vld [vmem:[#allocation2 + $0x120] sm:$0xff]  ;;  %v12922_v7 = vld [vmem:[#allocation2 + $0x128] sm:$0xff]  ;;  %v3713_v52 = vrot.slane %v12913_v8, 1  ;;  %v3471_v26 = vmax.f32 %v3439_v62, 0.0  ;;  %v3402_v37 = vmul.f32 %v12579_v0, %v3324_v19 }
 0x343   : > { %3533 = vst.msk [vmem:[#allocation2 + $0x151] sm:$0xff] %vm420_vm1, %v3501_v31  ;;  %10159 = vmatmul.mubr.msk.f32.gmra.mrb[22].mxu1 %vm420_vm1, %v12911_v4  ;;  %v3710_v56 = vrot.slane %v12920_v3, 1  ;;  %v3711_v17 = vrot.slane %v12922_v7, 1  ;;  %v3504_v48 = vadd.f32 %v3472_v32, %v505_v44  ;;  %v3442_v59 = vadd.f32 %v12584_v58, %v3403_v10  ;;  %v507_v2 = vld [vmem:[%s12591_s21 + $0xf8] sm:$0xff]  ;;  %v506_v4 = vld [vmem:[%s12591_s21 + $0xf0] sm:$0xff] }
 0x344   : > { %v3503_v13 = vadd.f32 %v3471_v26, %v504_v25  ;;  %v3441_v5 = vadd.f32 %v12584_v58, %v3402_v37  ;;  %v12940_v0 = vld [vmem:[#allocation2 + $0x148] sm:$0x3] }
 0x345   : > { %v12935_v31 = vsel %vm684_vm3, %v3710_v56, %v3711_v17  ;;  %v12938_v62 = vsel %vm684_vm3, %v3711_v17, %v3713_v52  ;;  %3536 = vst.msk [vmem:[#allocation2 + $0x171] sm:$0xff] %vm420_vm1, %v3504_v48  ;;  %v3474_v19 = vmax.f32 %v3442_v59, 0.0  ;;  %v3718_v58 = vrot.slane %v12940_v0, 1 }
 0x346   : > { %15730 = vst [vmem:[#allocation16_spill] sm:$0xff] %v12935_v31  ;;  %15731 = vst [vmem:[#allocation17_spill] sm:$0xff] %v12938_v62  ;;  %10161 = vmatprep.mubr.msk.f32.mxu1 %vm420_vm1, %v12935_v31  ;;  %v12946_v44 = vld [vmem:[#allocation2 + $0x138] sm:$0xff]  ;;  %v12948_v25 = vld [vmem:[#allocation2 + $0x140] sm:$0xff]  ;;  %v3473_v32 = vmax.f32 %v3441_v5, 0.0 }
 0x347   : > { %3535 = vst.msk [vmem:[#allocation2 + $0x169] sm:$0xff] %vm420_vm1, %v3503_v13  ;;  %10162 = vmatmul.mubr.msk.f32.gmra.mrb[24].mxu1 %vm420_vm1, %v12938_v62  ;;  %v3715_v10 = vrot.slane %v12946_v44, 1  ;;  %v3716_v52 = vrot.slane %v12948_v25, 1  ;;  %v3506_v26 = vadd.f32 %v3474_v19, %v507_v2 }
 0x348   : > { %v3505_v37 = vadd.f32 %v3473_v32, %v506_v4  ;;  %v12962_v48 = vld [vmem:[#allocation2 + $0x160] sm:$0x3] }
 0x349   : > { %v12957_v56 = vsel %vm684_vm3, %v3715_v10, %v3716_v52  ;;  %v12960_v17 = vsel %vm684_vm3, %v3716_v52, %v3718_v58  ;;  %3538 = vst.msk [vmem:[#allocation2 + $0x189] sm:$0xff] %vm420_vm1, %v3506_v26  ;;  %v3723_v2 = vrot.slane %v12962_v48, 1 }
 0x34a   : > { %15732 = vst [vmem:[#allocation18_spill] sm:$0xff] %v12960_v17  ;;  %10164 = vmatprep.mubr.msk.f32.mxu1 %vm420_vm1, %v12957_v56  ;;  %v12967_v5 = vld [vmem:[#allocation2 + $0x150] sm:$0xff]  ;;  %v12969_v59 = vld [vmem:[#allocation2 + $0x158] sm:$0xff]  ;;  %3537 = vst.msk [vmem:[#allocation2 + $0x181] sm:$0xff] %vm420_vm1, %v3505_v37 }
 0x34b   : > { %10165 = vmatmul.mubr.msk.f32.gmra.mrb[26].mxu1 %vm420_vm1, %v12960_v17  ;;  %v3720_v4 = vrot.slane %v12967_v5, 1  ;;  %v3721_v13 = vrot.slane %v12969_v59, 1  ;;  %v4325_v17 = vrot.slane %v12652_v55, 2 }
 0x34c   : > { %v12983_v32 = vld [vmem:[#allocation2 + $0x178] sm:$0x3] }
 0x34d   : > { %v12978_v19 = vsel %vm684_vm3, %v3720_v4, %v3721_v13  ;;  %v12981_v58 = vsel %vm684_vm3, %v3721_v13, %v3723_v2  ;;  %v3728_v26 = vrot.slane %v12983_v32, 1 }
 0x34e   : > { %15733 = vst [vmem:[#allocation19_spill] sm:$0xff] %v12978_v19  ;;  %15734 = vst [vmem:[#allocation20_spill] sm:$0xff] %v12981_v58  ;;  %10167 = vmatprep.mubr.msk.f32.mxu1 %vm420_vm1, %v12978_v19  ;;  %v12987_v10 = vld [vmem:[#allocation2 + $0x168] sm:$0xff]  ;;  %v12989_v52 = vld [vmem:[#allocation2 + $0x170] sm:$0xff]  ;;  %v4324_v19 = vrot.slane %v12650_v54, 2 }
 0x34f   : > { %10168 = vmatmul.mubr.msk.f32.gmra.mrb[28].mxu1 %vm420_vm1, %v12981_v58  ;;  %v3725_v37 = vrot.slane %v12987_v10, 1  ;;  %v3726_v4 = vrot.slane %v12989_v52, 1  ;;  %v3596_v58 = vld [vmem:[%s15352_s5 + $0xc] sm:$0xf] }
 0x351   : > { %v12997_v2 = vsel %vm684_vm3, %v3725_v37, %v3726_v4  ;;  %v13000_v13 = vsel %vm684_vm3, %v3726_v4, %v3728_v26  ;;  %v4315_v26 = vrot.slane %v12548_v60, 2  ;;  %v4317_v37 = vrot.slane %v12552_v33, 2  ;;  %v13088_v33 = vld [vmem:[%s15352_s5 + $0x10] sm:$0xf] }
 0x352   : > { %15735 = vst [vmem:[#allocation21_spill] sm:$0xff] %v12997_v2  ;;  %15736 = vst [vmem:[#allocation22_spill] sm:$0xff] %v13000_v13  ;;  %10170 = vmatprep.mubr.msk.f32.mxu1 %vm420_vm1, %v12997_v2  ;;  %v4320_v2 = vrot.slane %v12627_v23, 2 }
 0x353   : > { %10171 = vmatmul.mubr.msk.f32.gmra.mrb[30].mxu1 %vm420_vm1, %v13000_v13  ;;  %v4319_v13 = vrot.slane %v12625_v12, 2 }
 0x354   : > { %10175 = vmatprep.mubr.msk.f32.mxu1 %vm420_vm1, %v12546_v1 }
 0x357   : > { %10176 = vmatmul.mubr.msk.f32.vlgmr.msra.gmra.mrb[0].mxu1 %vm420_vm1, %v12548_v60  ;;  %v4322_v60 = vrot.slane %v12620_v61, 2 }
 0x358   : > { %10224 = vmatpush3.msk.msra.mxu1 %vm829_vm0, %v12572_v18  ;;  %10178 = vmatprep.mubr.msk.f32.mxu1 %vm420_vm1, %v12625_v12  ;;  %v4314_v18 = vrot.slane %v12546_v1, 2  ;;  %v4318_v1 = vsel %vm1350_vm4, %v4315_v26, %v4317_v37  ;;  %v4329_v37 = vrot.slane %v12677_v24, 2 }
 0x359   : > { %10273 = vmatprep.subr.msk.mxu1 %vm829_vm0, %v3596_v58  ;;  %v13102_v61 = vsel %vm1350_vm4, %v4320_v2, %v4322_v60 }
 0x35a   : > { %v4316_v4 = vsel %vm1350_vm4, %v4314_v18, %v4315_v26  ;;  %v13092_v18 = vsel %vm1350_vm4, %v4319_v13, %v4320_v2  ;;  %v4327_v26 = vrot.slane %v12643_v47, 2  ;;  %v13108_v13 = vsel %vm1350_vm4, %v4324_v19, %v4325_v17 }
 0x35b   : > { %10179 = vmatmul.mubr.msk.f32.gmra.mrb[2].mxu1 %vm420_vm1, %v12627_v23  ;;  %v4332_v2 = vrot.slane %v12670_v57, 2  ;;  %v4334_v19 = vrot.slane %v12704_v34, 2 }
 0x35c   : > { %10181 = vmatprep.mubr.msk.f32.mxu1 %vm420_vm1, %v12650_v54 }
 0x35f   : > { %10182 = vmatmul.mubr.msk.f32.gmra.mrb[4].mxu1 %vm420_vm1, %v12652_v55 }
 0x360   : > { %10184 = vmatprep.mubr.msk.f32.mxu1 %vm420_vm1, %v12677_v24 }
 0x363   : > { %10185 = vmatmul.mubr.msk.f32.gmra.mrb[6].mxu1 %vm420_vm1, %v12679_v29 }
 0x364   : > { %10187 = vmatprep.mubr.msk.f32.mxu1 %vm420_vm1, %v12704_v34 }
 0x367   : > { %10188 = vmatmul.mubr.msk.f32.gmra.mrb[8].mxu1 %vm420_vm1, %v12706_v49 }
 0x368   : > { %10190 = vmatprep.mubr.msk.f32.mxu1 %vm420_vm1, %v12731_v27 }
 0x36b   : > { %10191 = vmatmul.mubr.msk.f32.gmra.mrb[10].mxu1 %vm420_vm1, %v12733_v28 }
 0x36c   : > { %10193 = vmatprep.mubr.msk.f32.mxu1 %vm420_vm1, %v12758_v6 }
 0x36f   : > { %10194 = vmatmul.mubr.msk.f32.gmra.mrb[12].mxu1 %vm420_vm1, %v12760_v30 }
 0x370   : > { %10196 = vmatprep.mubr.msk.f32.mxu1 %vm420_vm1, %v12785_v14 }
 0x373   : > { %10197 = vmatmul.mubr.msk.f32.gmra.mrb[14].mxu1 %vm420_vm1, %v12787_v15 }
 0x374   : > { %10199 = vmatprep.mubr.msk.f32.mxu1 %vm420_vm1, %v12812_v45 }
 0x377   : > { %10200 = vmatmul.mubr.msk.f32.gmra.mrb[16].mxu1 %vm420_vm1, %v12814_v46 }
 0x378   : > { %10202 = vmatprep.mubr.msk.f32.mxu1 %vm420_vm1, %v12839_v35 }
 0x37b   : > { %10203 = vmatmul.mubr.msk.f32.gmra.mrb[18].mxu1 %vm420_vm1, %v12841_v39 }
 0x37c   : > { %10205 = vmatprep.mubr.msk.f32.mxu1 %vm420_vm1, %v12866_v40 }
 0x37f   : > { %10206 = vmatmul.mubr.msk.f32.gmra.mrb[20].mxu1 %vm420_vm1, %v12868_v53 }
 0x380   : > { %10208 = vmatprep.mubr.msk.f32.mxu1 %vm420_vm1, %v12893_v51 }
 0x383   : > { %10209 = vmatmul.mubr.msk.f32.gmra.mrb[22].mxu1 %vm420_vm1, %v12895_v21 }
 0x384   : > { %10211 = vmatprep.mubr.msk.f32.mxu1 %vm420_vm1, %v12920_v3 }
 0x387   : > { %10212 = vmatmul.mubr.msk.f32.gmra.mrb[24].mxu1 %vm420_vm1, %v12922_v7 }
 0x388   : > { %10214 = vmatprep.mubr.msk.f32.mxu1 %vm420_vm1, %v12946_v44 }
 0x38b   : > { %10215 = vmatmul.mubr.msk.f32.gmra.mrb[26].mxu1 %vm420_vm1, %v12948_v25 }
 0x38c   : > { %10217 = vmatprep.mubr.msk.f32.mxu1 %vm420_vm1, %v12967_v5 }
 0x38f   : > { %10218 = vmatmul.mubr.msk.f32.gmra.mrb[28].mxu1 %vm420_vm1, %v12969_v59 }
 0x390   : > { %10220 = vmatprep.mubr.msk.f32.mxu1 %vm420_vm1, %v12987_v10 }
 0x393   : > { %10221 = vmatmul.mubr.msk.f32.gmra.mrb[30].mxu1 %vm420_vm1, %v12989_v52 }
 0x394   : > { %10225 = vmatprep.mubr.msk.f32.mxu1 %vm420_vm1, %v4316_v4  ;;  %v13115_v4 = vsel %vm1350_vm4, %v4325_v17, %v4327_v26  ;;  %v4337_v17 = vrot.slane %v12697_v36, 2  ;;  %v4339_v26 = vrot.slane %v12731_v27, 2 }
 0x397   : > { %10226 = vmatmul.mubr.msk.f32.vlgmr.msra.gmra.mrb[0].mxu1 %vm420_vm1, %v4318_v1  ;;  %v4335_v1 = vrot.slane %v12706_v49, 2 }
 0x398   : > { %10274 = vmatpush3.msk.msra.mxu1 %vm829_vm0, %v3596_v58  ;;  %10228 = vmatprep.mubr.msk.f32.mxu1 %vm420_vm1, %v13092_v18  ;;  %v4330_v58 = vrot.slane %v12679_v29, 2 }
 0x399   : > { %10323 = vmatprep.subr.msk.mxu1 %vm829_vm0, %v13088_v33  ;;  %v13134_v57 = vsel %vm1350_vm4, %v4334_v19, %v4335_v1  ;;  %v4345_v19 = vrot.slane %v12760_v30, 2 }
 0x39a   : > { %v13121_v47 = vsel %vm1350_vm4, %v4329_v37, %v4330_v58  ;;  %v13128_v60 = vsel %vm1350_vm4, %v4330_v58, %v4332_v2  ;;  %15738 = vst [vmem:[#allocation24_spill] sm:$0xff] %v13134_v57  ;;  %v4340_v37 = vrot.slane %v12733_v28, 2  ;;  %v4342_v58 = vrot.slane %v12724_v63, 2 }
 0x39b   : > { %10229 = vmatmul.mubr.msk.f32.gmra.mrb[2].mxu1 %vm420_vm1, %v13102_v61  ;;  %15737 = vst [vmem:[#allocation23_spill] sm:$0xff] %v13121_v47  ;;  %v4344_v2 = vrot.slane %v12758_v6, 2 }
 0x39c   : > { %10231 = vmatprep.mubr.msk.f32.mxu1 %vm420_vm1, %v13108_v13  ;;  %v13147_v36 = vsel %vm1350_vm4, %v4339_v26, %v4340_v37  ;;  %v4350_v26 = vrot.slane %v12787_v15, 2 }
 0x39d   : > { %15739 = vst [vmem:[#allocation25_spill] sm:$0xff] %v13147_v36  ;;  %v13160_v63 = vsel %vm1350_vm4, %v4344_v2, %v4345_v19  ;;  %v4355_v2 = vrot.slane %v12814_v46, 2 }
 0x39e   : > { %15740 = vst [vmem:[#allocation30_spill] sm:$0xff] %v13160_v63 }
 0x39f   : > { %10232 = vmatmul.mubr.msk.f32.gmra.mrb[4].mxu1 %vm420_vm1, %v13115_v4 }
 0x3a0   : > { %10234 = vmatprep.mubr.msk.f32.mxu1 %vm420_vm1, %v13121_v47  ;;  %v13141_v47 = vsel %vm1350_vm4, %v4335_v1, %v4337_v17  ;;  %v4347_v1 = vrot.slane %v12751_v20, 2  ;;  %v4349_v17 = vrot.slane %v12785_v14, 2 }
 0x3a2   : > { %v13173_v20 = vsel %vm1350_vm4, %v4349_v17, %v4350_v26  ;;  %v4360_v17 = vrot.slane %v12841_v39, 2 }
 0x3a3   : > { %10235 = vmatmul.mubr.msk.f32.gmra.mrb[6].mxu1 %vm420_vm1, %v13128_v60  ;;  %15741 = vst [vmem:[#allocation31_spill] sm:$0xff] %v13173_v20 }
 0x3a4   : > { %10237 = vmatprep.mubr.msk.f32.mxu1 %vm420_vm1, %v13134_v57  ;;  %v13154_v57 = vsel %vm1350_vm4, %v4340_v37, %v4342_v58  ;;  %v4352_v37 = vrot.slane %v12778_v9, 2  ;;  %v4354_v58 = vrot.slane %v12812_v45, 2 }
 0x3a6   : > { %v13186_v9 = vsel %vm1350_vm4, %v4354_v58, %v4355_v2  ;;  %v4365_v58 = vrot.slane %v12868_v53, 2 }
 0x3a7   : > { %10238 = vmatmul.mubr.msk.f32.gmra.mrb[8].mxu1 %vm420_vm1, %v13141_v47  ;;  %15742 = vst [vmem:[#allocation32_spill] sm:$0xff] %v13186_v9 }
 0x3a8   : > { %10240 = vmatprep.mubr.msk.f32.mxu1 %vm420_vm1, %v13147_v36  ;;  %v13167_v36 = vsel %vm1350_vm4, %v4345_v19, %v4347_v1  ;;  %v4357_v19 = vrot.slane %v12805_v50, 2  ;;  %v4359_v1 = vrot.slane %v12839_v35, 2 }
 0x3aa   : > { %v13199_v50 = vsel %vm1350_vm4, %v4359_v1, %v4360_v17  ;;  %v4370_v1 = vrot.slane %v12895_v21, 2 }
 0x3ab   : > { %10241 = vmatmul.mubr.msk.f32.gmra.mrb[10].mxu1 %vm420_vm1, %v13154_v57  ;;  %15743 = vst [vmem:[#allocation33_spill] sm:$0xff] %v13199_v50 }
 0x3ac   : > { %10243 = vmatprep.mubr.msk.f32.mxu1 %vm420_vm1, %v13160_v63  ;;  %v13180_v63 = vsel %vm1350_vm4, %v4350_v26, %v4352_v37  ;;  %v4362_v26 = vrot.slane %v12832_v16, 2  ;;  %v4364_v37 = vrot.slane %v12866_v40, 2 }
 0x3ae   : > { %v13212_v16 = vsel %vm1350_vm4, %v4364_v37, %v4365_v58  ;;  %v4375_v37 = vrot.slane %v12922_v7, 2 }
 0x3af   : > { %10244 = vmatmul.mubr.msk.f32.gmra.mrb[12].mxu1 %vm420_vm1, %v13167_v36  ;;  %15744 = vst [vmem:[#allocation34_spill] sm:$0xff] %v13212_v16 }
 0x3b0   : > { %10246 = vmatprep.mubr.msk.f32.mxu1 %vm420_vm1, %v13173_v20  ;;  %v13193_v20 = vsel %vm1350_vm4, %v4355_v2, %v4357_v19  ;;  %v4367_v2 = vrot.slane %v12859_v11, 2  ;;  %v4369_v19 = vrot.slane %v12893_v51, 2 }
 0x3b2   : > { %v13225_v11 = vsel %vm1350_vm4, %v4369_v19, %v4370_v1  ;;  %v4380_v19 = vrot.slane %v12948_v25, 2 }
 0x3b3   : > { %10247 = vmatmul.mubr.msk.f32.gmra.mrb[14].mxu1 %vm420_vm1, %v13180_v63  ;;  %15746 = vst [vmem:[#allocation37_spill] sm:$0xff] %v13225_v11 }
 0x3b4   : > { %10249 = vmatprep.mubr.msk.f32.mxu1 %vm420_vm1, %v13186_v9  ;;  %v13206_v9 = vsel %vm1350_vm4, %v4360_v17, %v4362_v26  ;;  %v4372_v17 = vrot.slane %v12886_v42, 2  ;;  %v4374_v26 = vrot.slane %v12920_v3, 2 }
 0x3b6   : > { %v13238_v42 = vsel %vm1350_vm4, %v4374_v26, %v4375_v37  ;;  %v4385_v26 = vrot.slane %v12969_v59, 2 }
 0x3b7   : > { %10250 = vmatmul.mubr.msk.f32.gmra.mrb[16].mxu1 %vm420_vm1, %v13193_v20  ;;  %15747 = vst [vmem:[#allocation38_spill] sm:$0xff] %v13238_v42 }
 0x3b8   : > { %10252 = vmatprep.mubr.msk.f32.mxu1 %vm420_vm1, %v13199_v50  ;;  %v13219_v50 = vsel %vm1350_vm4, %v4365_v58, %v4367_v2  ;;  %v4377_v58 = vrot.slane %v12913_v8, 2  ;;  %v4379_v2 = vrot.slane %v12946_v44, 2 }
 0x3b9   : > { %15745 = vst [vmem:[#allocation35_spill] sm:$0xff] %v13219_v50 }
 0x3ba   : > { %v13251_v8 = vsel %vm1350_vm4, %v4379_v2, %v4380_v19  ;;  %v4390_v2 = vrot.slane %v12989_v52, 2 }
 0x3bb   : > { %10253 = vmatmul.mubr.msk.f32.gmra.mrb[18].mxu1 %vm420_vm1, %v13206_v9  ;;  %15749 = vst [vmem:[#allocation40_spill] sm:$0xff] %v13251_v8 }
 0x3bc   : > { %10255 = vmatprep.mubr.msk.f32.mxu1 %vm420_vm1, %v13212_v16  ;;  %v13232_v16 = vsel %vm1350_vm4, %v4370_v1, %v4372_v17  ;;  %v4382_v1 = vrot.slane %v12940_v0, 2  ;;  %v4384_v17 = vrot.slane %v12967_v5, 2 }
 0x3be   : > { %v13264_v0 = vsel %vm1350_vm4, %v4384_v17, %v4385_v26  ;;  %v15761_v17 = vld [vmem:[#allocation5_spill] sm:$0xff] }
 0x3bf   : > { %10256 = vmatmul.mubr.msk.f32.gmra.mrb[20].mxu1 %vm420_vm1, %v13219_v50  ;;  %15750 = vst [vmem:[#allocation42_spill] sm:$0xff] %v13264_v0 }
 0x3c0   : > { %10258 = vmatprep.mubr.msk.f32.mxu1 %vm420_vm1, %v13225_v11  ;;  %v13245_v11 = vsel %vm1350_vm4, %v4375_v37, %v4377_v58  ;;  %v4387_v37 = vrot.slane %v12962_v48, 2  ;;  %v4389_v58 = vrot.slane %v12987_v10, 2 }
 0x3c1   : > { %15748 = vst [vmem:[#allocation39_spill] sm:$0xff] %v13245_v11 }
 0x3c2   : > { %v13277_v48 = vsel %vm1350_vm4, %v4389_v58, %v4390_v2  ;;  %v15764_v58 = vld [vmem:[#allocation8_spill] sm:$0xff] }
 0x3c3   : > { %10259 = vmatmul.mubr.msk.f32.gmra.mrb[22].mxu1 %vm420_vm1, %v13232_v16 }
 0x3c4   : > { %10261 = vmatprep.mubr.msk.f32.mxu1 %vm420_vm1, %v13238_v42  ;;  %v13258_v42 = vsel %vm1350_vm4, %v4380_v19, %v4382_v1  ;;  %v4392_v19 = vrot.slane %v12983_v32, 2  ;;  %v3598_v32 = vld [vmem:[%s15352_s5 + $0x14] sm:$0xf] }
 0x3c6   : > { %v13282_v1 = vsel %vm1350_vm4, %v4390_v2, %v4392_v19  ;;  %v15765_v2 = vld [vmem:[#allocation9_spill] sm:$0xff]  ;;  %v15766_v19 = vld [vmem:[#allocation10_spill] sm:$0xff] }
 0x3c7   : > { %10262 = vmatmul.mubr.msk.f32.gmra.mrb[24].mxu1 %vm420_vm1, %v13245_v11  ;;  %15752 = vst [vmem:[#allocation44_spill] sm:$0xff] %v13282_v1 }
 0x3c8   : > { %10264 = vmatprep.mubr.msk.f32.mxu1 %vm420_vm1, %v13251_v8  ;;  %v13271_v8 = vsel %vm1350_vm4, %v4385_v26, %v4387_v37  ;;  %v15762_v26 = vld [vmem:[#allocation6_spill] sm:$0xff]  ;;  %v15763_v37 = vld [vmem:[#allocation7_spill] sm:$0xff] }
 0x3c9   : > { %15751 = vst [vmem:[#allocation43_spill] sm:$0xff] %v13271_v8 }
 0x3cb   : > { %10265 = vmatmul.mubr.msk.f32.gmra.mrb[26].mxu1 %vm420_vm1, %v13258_v42 }
 0x3cc   : > { %10267 = vmatprep.mubr.msk.f32.mxu1 %vm420_vm1, %v13264_v0 }
 0x3cf   : > { %10268 = vmatmul.mubr.msk.f32.gmra.mrb[28].mxu1 %vm420_vm1, %v13271_v8 }
 0x3d0   : > { %10270 = vmatprep.mubr.msk.f32.mxu1 %vm420_vm1, %v13277_v48 }
 0x3d3   : > { %10271 = vmatmul.mubr.msk.f32.gmra.mrb[30].mxu1 %vm420_vm1, %v13282_v1 }
 0x3d4   : > { %10275 = vmatprep.mubr.msk.f32.mxu1 %vm420_vm1, %v12625_v12  ;;  %v13352_v12 = vld [vmem:[#allocation2 + $0x180] sm:$0xff] }
 0x3d7   : > { %10276 = vmatmul.mubr.msk.f32.vlgmr.msra.gmra.mrb[0].mxu1 %vm420_vm1, %v12627_v23  ;;  %v13356_v23 = vld [vmem:[#allocation2 + $0x188] sm:$0xff] }
 0x3d8   : > { %10324 = vmatpush3.msk.msra.mxu1 %vm829_vm0, %v13088_v33  ;;  %10278 = vmatprep.mubr.msk.f32.mxu1 %vm420_vm1, %v12650_v54  ;;  %v3599_v54 = vld [vmem:[%s15352_s5 + $0x18] sm:$0xf] }
 0x3d9   : > { %10373 = vmatprep.subr.msk.mxu1 %vm829_vm0, %v3598_v32  ;;  %v15760_v33 = vld [vmem:[#allocation41_spill] sm:$0xff] }
 0x3db   : > { %10279 = vmatmul.mubr.msk.f32.gmra.mrb[2].mxu1 %vm420_vm1, %v12652_v55  ;;  %v15753_v55 = vld [vmem:[#allocation4_spill] sm:$0xff] }
 0x3dc   : > { %10281 = vmatprep.mubr.msk.f32.mxu1 %vm420_vm1, %v12677_v24  ;;  %v15755_v24 = vld [vmem:[#allocation26_spill] sm:$0xff] }
 0x3df   : > { %10282 = vmatmul.mubr.msk.f32.gmra.mrb[4].mxu1 %vm420_vm1, %v12679_v29  ;;  %v15757_v29 = vld [vmem:[#allocation28_spill] sm:$0xff] }
 0x3e0   : > { %10284 = vmatprep.mubr.msk.f32.mxu1 %vm420_vm1, %v12704_v34  ;;  %v15758_v34 = vld [vmem:[#allocation29_spill] sm:$0xff] }
 0x3e3   : > { %10285 = vmatmul.mubr.msk.f32.gmra.mrb[6].mxu1 %vm420_vm1, %v12706_v49  ;;  %v15759_v49 = vld [vmem:[#allocation36_spill] sm:$0xff] }
 0x3e4   : > { %10287 = vmatprep.mubr.msk.f32.mxu1 %vm420_vm1, %v12731_v27 }
 0x3e7   : > { %10288 = vmatmul.mubr.msk.f32.gmra.mrb[8].mxu1 %vm420_vm1, %v12733_v28 }
 0x3e8   : > { %10290 = vmatprep.mubr.msk.f32.mxu1 %vm420_vm1, %v12758_v6 }
 0x3eb   : > { %10291 = vmatmul.mubr.msk.f32.gmra.mrb[10].mxu1 %vm420_vm1, %v12760_v30 }
 0x3ec   : > { %10293 = vmatprep.mubr.msk.f32.mxu1 %vm420_vm1, %v12785_v14 }
 0x3ef   : > { %10294 = vmatmul.mubr.msk.f32.gmra.mrb[12].mxu1 %vm420_vm1, %v12787_v15 }
 0x3f0   : > { %10296 = vmatprep.mubr.msk.f32.mxu1 %vm420_vm1, %v12812_v45 }
 0x3f3   : > { %10297 = vmatmul.mubr.msk.f32.gmra.mrb[14].mxu1 %vm420_vm1, %v12814_v46 }
 0x3f4   : > { %10299 = vmatprep.mubr.msk.f32.mxu1 %vm420_vm1, %v12839_v35 }
 0x3f7   : > { %10300 = vmatmul.mubr.msk.f32.gmra.mrb[16].mxu1 %vm420_vm1, %v12841_v39 }
 0x3f8   : > { %10302 = vmatprep.mubr.msk.f32.mxu1 %vm420_vm1, %v12866_v40 }
 0x3fb   : > { %10303 = vmatmul.mubr.msk.f32.gmra.mrb[18].mxu1 %vm420_vm1, %v12868_v53 }
 0x3fc   : > { %10305 = vmatprep.mubr.msk.f32.mxu1 %vm420_vm1, %v12893_v51 }
 0x3ff   : > { %10306 = vmatmul.mubr.msk.f32.gmra.mrb[20].mxu1 %vm420_vm1, %v12895_v21 }
 0x400   : > { %10308 = vmatprep.mubr.msk.f32.mxu1 %vm420_vm1, %v12920_v3 }
 0x403   : > { %10309 = vmatmul.mubr.msk.f32.gmra.mrb[22].mxu1 %vm420_vm1, %v12922_v7 }
 0x404   : > { %10311 = vmatprep.mubr.msk.f32.mxu1 %vm420_vm1, %v12946_v44 }
 0x407   : > { %10312 = vmatmul.mubr.msk.f32.gmra.mrb[24].mxu1 %vm420_vm1, %v12948_v25 }
 0x408   : > { %10314 = vmatprep.mubr.msk.f32.mxu1 %vm420_vm1, %v12967_v5 }
 0x40b   : > { %10315 = vmatmul.mubr.msk.f32.gmra.mrb[26].mxu1 %vm420_vm1, %v12969_v59 }
 0x40c   : > { %10317 = vmatprep.mubr.msk.f32.mxu1 %vm420_vm1, %v12987_v10 }
 0x40f   : > { %10318 = vmatmul.mubr.msk.f32.gmra.mrb[28].mxu1 %vm420_vm1, %v12989_v52 }
 0x410   : > { %10320 = vmatprep.mubr.msk.f32.mxu1 %vm420_vm1, %v13352_v12 }
 0x413   : > { %10321 = vmatmul.mubr.msk.f32.gmra.mrb[30].mxu1 %vm420_vm1, %v13356_v23 }
 0x414   : > { %10325 = vmatprep.mubr.msk.f32.mxu1 %vm420_vm1, %v12638_v41  ;;  %v15754_v41 = vld [vmem:[#allocation15_spill] sm:$0xff] }
 0x417   : > { %10326 = vmatmul.mubr.msk.f32.vlgmr.msra.gmra.mrb[0].mxu1 %vm420_vm1, %v12641_v22  ;;  %v15756_v22 = vld [vmem:[#allocation27_spill] sm:$0xff] }
 0x418   : > { %10374 = vmatpush3.msk.msra.mxu1 %vm829_vm0, %v3598_v32  ;;  %10328 = vmatprep.mubr.msk.f32.mxu1 %vm420_vm1, %v12665_v38  ;;  %v15767_v32 = vld [vmem:[#allocation11_spill] sm:$0xff] }
 0x419   : > { %10423 = vmatprep.subr.msk.mxu1 %vm829_vm0, %v3599_v54 }
 0x41b   : > { %10329 = vmatmul.mubr.msk.f32.gmra.mrb[2].mxu1 %vm420_vm1, %v12668_v43 }
 0x41c   : > { %10331 = vmatprep.mubr.msk.f32.mxu1 %vm420_vm1, %v15753_v55 }
 0x41f   : > { %10332 = vmatmul.mubr.msk.f32.gmra.mrb[4].mxu1 %vm420_vm1, %v15754_v41 }
 0x420   : > { %10334 = vmatprep.mubr.msk.f32.mxu1 %vm420_vm1, %v15755_v24 }
 0x423   : > { %10335 = vmatmul.mubr.msk.f32.gmra.mrb[6].mxu1 %vm420_vm1, %v15756_v22 }
 0x424   : > { %10337 = vmatprep.mubr.msk.f32.mxu1 %vm420_vm1, %v15757_v29 }
 0x427   : > { %10338 = vmatmul.mubr.msk.f32.gmra.mrb[8].mxu1 %vm420_vm1, %v15758_v34 }
 0x428   : > { %10340 = vmatprep.mubr.msk.f32.mxu1 %vm420_vm1, %v15759_v49 }
 0x42b   : > { %10341 = vmatmul.mubr.msk.f32.gmra.mrb[10].mxu1 %vm420_vm1, %v15760_v33  ;;  %v15768_v33 = vld [vmem:[#allocation12_spill] sm:$0xff] }
 0x42c   : > { %10343 = vmatprep.mubr.msk.f32.mxu1 %vm420_vm1, %v15761_v17  ;;  %v15769_v17 = vld [vmem:[#allocation13_spill] sm:$0xff] }
 0x42f   : > { %10344 = vmatmul.mubr.msk.f32.gmra.mrb[12].mxu1 %vm420_vm1, %v15762_v26  ;;  %v15770_v26 = vld [vmem:[#allocation14_spill] sm:$0xff] }
 0x430   : > { %10346 = vmatprep.mubr.msk.f32.mxu1 %vm420_vm1, %v15763_v37 }
 0x433   : > { %10347 = vmatmul.mubr.msk.f32.gmra.mrb[14].mxu1 %vm420_vm1, %v15764_v58  ;;  %v15775_v58 = vld [vmem:[#allocation22_spill] sm:$0xff] }
 0x434   : > { %10349 = vmatprep.mubr.msk.f32.mxu1 %vm420_vm1, %v15765_v2  ;;  %v15774_v2 = vld [vmem:[#allocation21_spill] sm:$0xff] }
 0x437   : > { %10350 = vmatmul.mubr.msk.f32.gmra.mrb[16].mxu1 %vm420_vm1, %v15766_v19  ;;  %v15771_v19 = vld [vmem:[#allocation18_spill] sm:$0xff] }
 0x438   : > { %10352 = vmatprep.mubr.msk.f32.mxu1 %vm420_vm1, %v15767_v32  ;;  %v15772_v32 = vld [vmem:[#allocation19_spill] sm:$0xff] }
 0x43b   : > { %10353 = vmatmul.mubr.msk.f32.gmra.mrb[18].mxu1 %vm420_vm1, %v15768_v33  ;;  %v4986_v33 = vrot.slane %v13356_v23, 1 }
 0x43c   : > { %10355 = vmatprep.mubr.msk.f32.mxu1 %vm420_vm1, %v15769_v17  ;;  %v4985_v17 = vrot.slane %v13352_v12, 1 }
 0x43f   : > { %10356 = vmatmul.mubr.msk.f32.gmra.mrb[20].mxu1 %vm420_vm1, %v15770_v26  ;;  %v15773_v26 = vld [vmem:[#allocation20_spill] sm:$0xff] }
 0x440   : > { %10358 = vmatprep.mubr.msk.f32.mxu1 %vm420_vm1, %v12935_v31  ;;  %v3589_v31 = vld [vmem:[#allocation2 + $0x190] sm:$0x3] }
 0x443   : > { %10359 = vmatmul.mubr.msk.f32.gmra.mrb[22].mxu1 %vm420_vm1, %v12938_v62  ;;  %v4988_v62 = vrot.slane %v3589_v31, 1 }
 0x444   : > { %10361 = vmatprep.mubr.msk.f32.mxu1 %vm420_vm1, %v12957_v56 }
 0x447   : > { %10362 = vmatmul.mubr.msk.f32.gmra.mrb[24].mxu1 %vm420_vm1, %v15771_v19  ;;  %v13428_v19 = vsel %vm684_vm3, %v4985_v17, %v4986_v33  ;;  %v15781_v17 = vld [vmem:[#allocation32_spill] sm:$0xff] }
 0x448   : > { %10364 = vmatprep.mubr.msk.f32.mxu1 %vm420_vm1, %v15772_v32  ;;  %v13433_v32 = vsel %vm684_vm3, %v4986_v33, %v4988_v62  ;;  %v15776_v62 = vld [vmem:[#allocation23_spill] sm:$0xff] }
 0x449   : > { %v15780_v33 = vld [vmem:[#allocation31_spill] sm:$0xff] }
 0x44b   : > { %10365 = vmatmul.mubr.msk.f32.gmra.mrb[26].mxu1 %vm420_vm1, %v15773_v26 }
 0x44c   : > { %10367 = vmatprep.mubr.msk.f32.mxu1 %vm420_vm1, %v15774_v2  ;;  %v3600_v2 = vld [vmem:[%s15352_s5 + $0x1c] sm:$0xf] }
 0x44f   : > { %10368 = vmatmul.mubr.msk.f32.gmra.mrb[28].mxu1 %vm420_vm1, %v15775_v58 }
 0x450   : > { %10370 = vmatprep.mubr.msk.f32.mxu1 %vm420_vm1, %v13428_v19 }
 0x453   : > { %10371 = vmatmul.mubr.msk.f32.gmra.mrb[30].mxu1 %vm420_vm1, %v13433_v32 }
 0x454   : > { %10375 = vmatprep.mubr.msk.f32.mxu1 %vm420_vm1, %v13092_v18  ;;  %v15777_v18 = vld [vmem:[#allocation24_spill] sm:$0xff] }
 0x457   : > { %10376 = vmatmul.mubr.msk.f32.vlgmr.msra.gmra.mrb[0].mxu1 %vm420_vm1, %v13102_v61  ;;  %v15778_v61 = vld [vmem:[#allocation25_spill] sm:$0xff] }
 0x458   : > { %10424 = vmatpush3.msk.msra.mxu1 %vm829_vm0, %v3599_v54  ;;  %10378 = vmatprep.mubr.msk.f32.mxu1 %vm420_vm1, %v13108_v13  ;;  %v15779_v54 = vld [vmem:[#allocation30_spill] sm:$0xff] }
 0x459   : > { %10473 = vmatprep.subr.msk.mxu1 %vm829_vm0, %v3600_v2 }
 0x45b   : > { %10379 = vmatmul.mubr.msk.f32.gmra.mrb[2].mxu1 %vm420_vm1, %v13115_v4 }
 0x45c   : > { %10381 = vmatprep.mubr.msk.f32.mxu1 %vm420_vm1, %v15776_v62 }
 0x45f   : > { %10382 = vmatmul.mubr.msk.f32.gmra.mrb[4].mxu1 %vm420_vm1, %v13128_v60 }
 0x460   : > { %10384 = vmatprep.mubr.msk.f32.mxu1 %vm420_vm1, %v15777_v18 }
 0x463   : > { %10385 = vmatmul.mubr.msk.f32.gmra.mrb[6].mxu1 %vm420_vm1, %v13141_v47 }
 0x464   : > { %10387 = vmatprep.mubr.msk.f32.mxu1 %vm420_vm1, %v15778_v61  ;;  %v15782_v61 = vld [vmem:[#allocation33_spill] sm:$0xff] }
 0x467   : > { %10388 = vmatmul.mubr.msk.f32.gmra.mrb[8].mxu1 %vm420_vm1, %v13154_v57 }
 0x468   : > { %10390 = vmatprep.mubr.msk.f32.mxu1 %vm420_vm1, %v15779_v54  ;;  %v15783_v54 = vld [vmem:[#allocation34_spill] sm:$0xff] }
 0x46b   : > { %10391 = vmatmul.mubr.msk.f32.gmra.mrb[10].mxu1 %vm420_vm1, %v13167_v36 }
 0x46c   : > { %10393 = vmatprep.mubr.msk.f32.mxu1 %vm420_vm1, %v15780_v33  ;;  %v15784_v33 = vld [vmem:[#allocation37_spill] sm:$0xff] }
 0x46f   : > { %10394 = vmatmul.mubr.msk.f32.gmra.mrb[12].mxu1 %vm420_vm1, %v13180_v63 }
 0x470   : > { %10396 = vmatprep.mubr.msk.f32.mxu1 %vm420_vm1, %v15781_v17  ;;  %v15785_v17 = vld [vmem:[#allocation38_spill] sm:$0xff] }
 0x473   : > { %10397 = vmatmul.mubr.msk.f32.gmra.mrb[14].mxu1 %vm420_vm1, %v13193_v20 }
 0x474   : > { %10399 = vmatprep.mubr.msk.f32.mxu1 %vm420_vm1, %v15782_v61  ;;  %v15786_v61 = vld [vmem:[#allocation40_spill] sm:$0xff] }
 0x477   : > { %10400 = vmatmul.mubr.msk.f32.gmra.mrb[16].mxu1 %vm420_vm1, %v13206_v9 }
 0x478   : > { %10402 = vmatprep.mubr.msk.f32.mxu1 %vm420_vm1, %v15783_v54 }
 0x47b   : > { %10403 = vmatmul.mubr.msk.f32.gmra.mrb[18].mxu1 %vm420_vm1, %v13219_v50  ;;  %v5255_v50 = vrot.slane %v13356_v23, 2 }
 0x47c   : > { %10405 = vmatprep.mubr.msk.f32.mxu1 %vm420_vm1, %v15784_v33  ;;  %v5254_v33 = vrot.slane %v13352_v12, 2 }
 0x47f   : > { %10406 = vmatmul.mubr.msk.f32.gmra.mrb[20].mxu1 %vm420_vm1, %v13232_v16 }
 0x480   : > { %10408 = vmatprep.mubr.msk.f32.mxu1 %vm420_vm1, %v15785_v17 }
 0x483   : > { %10409 = vmatmul.mubr.msk.f32.gmra.mrb[22].mxu1 %vm420_vm1, %v13245_v11  ;;  %v5257_v11 = vrot.slane %v3589_v31, 2  ;;  %v3601_v31 = vld [vmem:[%s15352_s5 + $0x20] sm:$0xf] }
 0x484   : > { %10411 = vmatprep.mubr.msk.f32.mxu1 %vm420_vm1, %v15786_v61  ;;  %v13505_v61 = vsel %vm1350_vm4, %v5254_v33, %v5255_v50  ;;  %v11290_v33 = vld [vmem:[#allocation2 + $0x48] sm:$0xff] }
 0x487   : > { %10412 = vmatmul.mubr.msk.f32.gmra.mrb[24].mxu1 %vm420_vm1, %v13258_v42 }
 0x488   : > { %10414 = vmatprep.mubr.msk.f32.mxu1 %vm420_vm1, %v13264_v0  ;;  %v13510_v0 = vsel %vm1350_vm4, %v5255_v50, %v5257_v11  ;;  %v11291_v50 = vld [vmem:[#allocation2 + $0x50] sm:$0xff]  ;;  %v11292_v11 = vld [vmem:[#allocation2 + $0x60] sm:$0xff] }
 0x48b   : > { %10415 = vmatmul.mubr.msk.f32.gmra.mrb[26].mxu1 %vm420_vm1, %v13271_v8  ;;  %v11288_v8 = vld [vmem:[#allocation2 + $0x30] sm:$0xff] }
 0x48c   : > { %10417 = vmatprep.mubr.msk.f32.mxu1 %vm420_vm1, %v13277_v48 }
 0x48f   : > { %10418 = vmatmul.mubr.msk.f32.gmra.mrb[28].mxu1 %vm420_vm1, %v13282_v1  ;;  %v11289_v1 = vld [vmem:[#allocation2 + $0x38] sm:$0xff] }
 0x490   : > { %10420 = vmatprep.mubr.msk.f32.mxu1 %vm420_vm1, %v13505_v61 }
 0x493   : > { %10421 = vmatmul.mubr.msk.f32.gmra.mrb[30].mxu1 %vm420_vm1, %v13510_v0 }
 0x494   : > { %10425 = vmatprep.mubr.msk.f32.mxu1 %vm420_vm1, %v11288_v8  ;;  %v11293_v8 = vld [vmem:[#allocation2 + $0x68] sm:$0xff] }
 0x497   : > { %10426 = vmatmul.mubr.msk.f32.vlgmr.msra.gmra.mrb[0].mxu1 %vm420_vm1, %v11289_v1 }
 0x498   : > { %10474 = vmatpush3.msk.msra.mxu1 %vm829_vm0, %v3600_v2  ;;  %10428 = vmatprep.mubr.msk.f32.mxu1 %vm420_vm1, %v11290_v33 }
 0x499   : > { %10523 = vmatprep.subr.msk.mxu1 %vm829_vm0, %v3601_v31 }
 0x49b   : > { %10429 = vmatmul.mubr.msk.f32.gmra.mrb[2].mxu1 %vm420_vm1, %v11291_v50 }
 0x49c   : > { %10431 = vmatprep.mubr.msk.f32.mxu1 %vm420_vm1, %v11292_v11 }
 0x49f   : > { %10432 = vmatmul.mubr.msk.f32.gmra.mrb[4].mxu1 %vm420_vm1, %v11293_v8 }
 0x4a0   : > { %10434 = vmatprep.mubr.msk.f32.mxu1 %vm420_vm1, %v12731_v27  ;;  %v13571_v27 = vld [vmem:[#allocation2 + $0x198] sm:$0xff] }
 0x4a3   : > { %10435 = vmatmul.mubr.msk.f32.gmra.mrb[6].mxu1 %vm420_vm1, %v12733_v28  ;;  %v13577_v28 = vld [vmem:[#allocation2 + $0x1a0] sm:$0xff] }
 0x4a4   : > { %10437 = vmatprep.mubr.msk.f32.mxu1 %vm420_vm1, %v12758_v6  ;;  %v15789_v6 = vld [vmem:[#allocation6_spill] sm:$0xff]  ;;  %v6060_v1 = vrot.slane %v13577_v28, 2 }
 0x4a7   : > { %10438 = vmatmul.mubr.msk.f32.gmra.mrb[8].mxu1 %vm420_vm1, %v12760_v30  ;;  %v15790_v30 = vld [vmem:[#allocation8_spill] sm:$0xff] }
 0x4a8   : > { %10440 = vmatprep.mubr.msk.f32.mxu1 %vm420_vm1, %v12785_v14  ;;  %v15791_v14 = vld [vmem:[#allocation9_spill] sm:$0xff] }
 0x4ab   : > { %10441 = vmatmul.mubr.msk.f32.gmra.mrb[10].mxu1 %vm420_vm1, %v12787_v15  ;;  %v15792_v15 = vld [vmem:[#allocation10_spill] sm:$0xff] }
 0x4ac   : > { %10443 = vmatprep.mubr.msk.f32.mxu1 %vm420_vm1, %v12812_v45  ;;  %v15793_v45 = vld [vmem:[#allocation11_spill] sm:$0xff] }
 0x4af   : > { %10444 = vmatmul.mubr.msk.f32.gmra.mrb[12].mxu1 %vm420_vm1, %v12814_v46  ;;  %v15794_v46 = vld [vmem:[#allocation12_spill] sm:$0xff] }
 0x4b0   : > { %10446 = vmatprep.mubr.msk.f32.mxu1 %vm420_vm1, %v12839_v35  ;;  %v15795_v35 = vld [vmem:[#allocation13_spill] sm:$0xff] }
 0x4b3   : > { %10447 = vmatmul.mubr.msk.f32.gmra.mrb[14].mxu1 %vm420_vm1, %v12841_v39  ;;  %v15796_v39 = vld [vmem:[#allocation14_spill] sm:$0xff] }
 0x4b4   : > { %10449 = vmatprep.mubr.msk.f32.mxu1 %vm420_vm1, %v12866_v40  ;;  %v15797_v40 = vld [vmem:[#allocation16_spill] sm:$0xff] }
 0x4b7   : > { %10450 = vmatmul.mubr.msk.f32.gmra.mrb[16].mxu1 %vm420_vm1, %v12868_v53  ;;  %v15798_v53 = vld [vmem:[#allocation17_spill] sm:$0xff] }
 0x4b8   : > { %10452 = vmatprep.mubr.msk.f32.mxu1 %vm420_vm1, %v12893_v51  ;;  %v15799_v51 = vld [vmem:[#allocation18_spill] sm:$0xff] }
 0x4bb   : > { %10453 = vmatmul.mubr.msk.f32.gmra.mrb[18].mxu1 %vm420_vm1, %v12895_v21  ;;  %v15800_v21 = vld [vmem:[#allocation19_spill] sm:$0xff] }
 0x4bc   : > { %10455 = vmatprep.mubr.msk.f32.mxu1 %vm420_vm1, %v12920_v3  ;;  %v15801_v3 = vld [vmem:[#allocation21_spill] sm:$0xff] }
 0x4bf   : > { %10456 = vmatmul.mubr.msk.f32.gmra.mrb[20].mxu1 %vm420_vm1, %v12922_v7  ;;  %v5790_v7 = vrot.slane %v13571_v27, 1 }
 0x4c0   : > { %10458 = vmatprep.mubr.msk.f32.mxu1 %vm420_vm1, %v12946_v44  ;;  %v5791_v44 = vrot.slane %v13577_v28, 1 }
 0x4c3   : > { %10459 = vmatmul.mubr.msk.f32.gmra.mrb[22].mxu1 %vm420_vm1, %v12948_v25  ;;  %v3592_v25 = vld [vmem:[#allocation2 + $0x1a8] sm:$0x3] }
 0x4c4   : > { %10461 = vmatprep.mubr.msk.f32.mxu1 %vm420_vm1, %v12967_v5  ;;  %v5792_v5 = vsel %vm684_vm3, %v5790_v7, %v5791_v44 }
 0x4c7   : > { %10462 = vmatmul.mubr.msk.f32.gmra.mrb[24].mxu1 %vm420_vm1, %v12969_v59 }
 0x4c8   : > { %10464 = vmatprep.mubr.msk.f32.mxu1 %vm420_vm1, %v12987_v10  ;;  %v15802_v10 = vld [vmem:[#allocation25_spill] sm:$0xff] }
 0x4cb   : > { %10465 = vmatmul.mubr.msk.f32.gmra.mrb[26].mxu1 %vm420_vm1, %v12989_v52  ;;  %v15803_v52 = vld [vmem:[#allocation30_spill] sm:$0xff] }
 0x4cc   : > { %10467 = vmatprep.mubr.msk.f32.mxu1 %vm420_vm1, %v13352_v12  ;;  %v15813_v12 = vld [vmem:[#allocation44_spill] sm:$0xff] }
 0x4cf   : > { %10468 = vmatmul.mubr.msk.f32.gmra.mrb[28].mxu1 %vm420_vm1, %v13356_v23 }
 0x4d0   : > { %10470 = vmatprep.mubr.msk.f32.mxu1 %vm420_vm1, %v13571_v27 }
 0x4d3   : > { %10471 = vmatmul.mubr.msk.f32.gmra.mrb[30].mxu1 %vm420_vm1, %v13577_v28 }
 0x4d4   : > { %10475 = vmatprep.mubr.msk.f32.mxu1 %vm420_vm1, %v12665_v38  ;;  %v15787_v38 = vld [vmem:[#allocation41_spill] sm:$0xff] }
 0x4d7   : > { %10476 = vmatmul.mubr.msk.f32.vlgmr.msra.gmra.mrb[0].mxu1 %vm420_vm1, %v12668_v43  ;;  %v15788_v43 = vld [vmem:[#allocation5_spill] sm:$0xff] }
 0x4d8   : > { %10524 = vmatpush3.msk.msra.mxu1 %vm829_vm0, %v3601_v31  ;;  %10478 = vmatprep.mubr.msk.f32.mxu1 %vm420_vm1, %v15753_v55  ;;  %v13717_v55 = vld [vmem:[%s15353_s6] ss:$0 sm:$0xff] }
 0x4db   : > { %10479 = vmatmul.mubr.msk.f32.gmra.mrb[2].mxu1 %vm420_vm1, %v15754_v41 }
 0x4dc   : > { %10481 = vmatprep.mubr.msk.f32.mxu1 %vm420_vm1, %v15755_v24  ;;  %v13722_v24 = vld [vmem:[%s15354_s7] ss:$0 sm:$0xff] }
 0x4df   : > { %10482 = vmatmul.mubr.msk.f32.gmra.mrb[4].mxu1 %vm420_vm1, %v15756_v22 }
 0x4e0   : > { %10484 = vmatprep.mubr.msk.f32.mxu1 %vm420_vm1, %v15757_v29 }
 0x4e3   : > { %10485 = vmatmul.mubr.msk.f32.gmra.mrb[6].mxu1 %vm420_vm1, %v15758_v34 }
 0x4e4   : > { %10487 = vmatprep.mubr.msk.f32.mxu1 %vm420_vm1, %v15759_v49 }
 0x4e7   : > { %10488 = vmatmul.mubr.msk.f32.gmra.mrb[8].mxu1 %vm420_vm1, %v15787_v38 }
 0x4e8   : > { %10490 = vmatprep.mubr.msk.f32.mxu1 %vm420_vm1, %v15788_v43 }
 0x4eb   : > { %10491 = vmatmul.mubr.msk.f32.gmra.mrb[10].mxu1 %vm420_vm1, %v15789_v6 }
 0x4ec   : > { %10493 = vmatprep.mubr.msk.f32.mxu1 %vm420_vm1, %v15763_v37 }
 0x4ef   : > { %10494 = vmatmul.mubr.msk.f32.gmra.mrb[12].mxu1 %vm420_vm1, %v15790_v30 }
 0x4f0   : > { %10496 = vmatprep.mubr.msk.f32.mxu1 %vm420_vm1, %v15791_v14 }
 0x4f3   : > { %10497 = vmatmul.mubr.msk.f32.gmra.mrb[14].mxu1 %vm420_vm1, %v15792_v15 }
 0x4f4   : > { %10499 = vmatprep.mubr.msk.f32.mxu1 %vm420_vm1, %v15793_v45 }
 0x4f7   : > { %10500 = vmatmul.mubr.msk.f32.gmra.mrb[16].mxu1 %vm420_vm1, %v15794_v46 }
 0x4f8   : > { %10502 = vmatprep.mubr.msk.f32.mxu1 %vm420_vm1, %v15795_v35 }
 0x4fb   : > { %10503 = vmatmul.mubr.msk.f32.gmra.mrb[18].mxu1 %vm420_vm1, %v15796_v39 }
 0x4fc   : > { %10505 = vmatprep.mubr.msk.f32.mxu1 %vm420_vm1, %v15797_v40 }
 0x4ff   : > { %10506 = vmatmul.mubr.msk.f32.gmra.mrb[20].mxu1 %vm420_vm1, %v15798_v53 }
 0x500   : > { %10508 = vmatprep.mubr.msk.f32.mxu1 %vm420_vm1, %v12957_v56  ;;  %v5793_v56 = vrot.slane %v3592_v25, 1 }
 0x502   : > { %v5794_v59 = vsel %vm684_vm3, %v5791_v44, %v5793_v56 }
 0x503   : > { %10509 = vmatmul.mubr.msk.f32.gmra.mrb[22].mxu1 %vm420_vm1, %v15799_v51 }
 0x504   : > { %10511 = vmatprep.mubr.msk.f32.mxu1 %vm420_vm1, %v15800_v21 }
 0x507   : > { %10512 = vmatmul.mubr.msk.f32.gmra.mrb[24].mxu1 %vm420_vm1, %v15773_v26 }
 0x508   : > { %10514 = vmatprep.mubr.msk.f32.mxu1 %vm420_vm1, %v15801_v3 }
 0x50b   : > { %10515 = vmatmul.mubr.msk.f32.gmra.mrb[26].mxu1 %vm420_vm1, %v15775_v58 }
 0x50c   : > { %10517 = vmatprep.mubr.msk.f32.mxu1 %vm420_vm1, %v13428_v19 }
 0x50f   : > { %10518 = vmatmul.mubr.msk.f32.gmra.mrb[28].mxu1 %vm420_vm1, %v13433_v32 }
 0x510   : > { %10520 = vmatprep.mubr.msk.f32.mxu1 %vm420_vm1, %v5792_v5 }
 0x513   : > { %10521 = vmatmul.mubr.msk.f32.gmra.mrb[30].mxu1 %vm420_vm1, %v5794_v59 }
 0x514   : > { %10525 = vmatprep.mubr.msk.f32.mxu1 %vm420_vm1, %v13108_v13  ;;  %v15804_v13 = vld [vmem:[#allocation31_spill] sm:$0xff] }
 0x517   : > { %10526 = vmatmul.mubr.msk.f32.vlgmr.msra.gmra.mrb[0].mxu1 %vm420_vm1, %v13115_v4  ;;  %v15805_v4 = vld [vmem:[#allocation32_spill] sm:$0xff] }
 0x518   : > { %10528 = vmatprep.mubr.msk.f32.mxu1 %vm420_vm1, %v15776_v62 }
 0x51b   : > { %10529 = vmatmul.mubr.msk.f32.gmra.mrb[2].mxu1 %vm420_vm1, %v13128_v60  ;;  %v15807_v60 = vld [vmem:[#allocation35_spill] sm:$0xff] }
 0x51c   : > { %10531 = vmatprep.mubr.msk.f32.mxu1 %vm420_vm1, %v15777_v18 }
 0x51f   : > { %10532 = vmatmul.mubr.msk.f32.gmra.mrb[4].mxu1 %vm420_vm1, %v13141_v47  ;;  %v15806_v47 = vld [vmem:[#allocation33_spill] sm:$0xff] }
 0x520   : > { %10534 = vmatprep.mubr.msk.f32.mxu1 %vm420_vm1, %v15802_v10 }
 0x523   : > { %10535 = vmatmul.mubr.msk.f32.gmra.mrb[6].mxu1 %vm420_vm1, %v13154_v57  ;;  %v15808_v57 = vld [vmem:[#allocation37_spill] sm:$0xff] }
 0x524   : > { %10537 = vmatprep.mubr.msk.f32.mxu1 %vm420_vm1, %v15803_v52  ;;  %v7400_v52 = vld [vmem:[%s15355_s8] sm:$0xff] }
 0x525   : > { %9569 = vmatprep.mubr.msk.f32.mxu0 %vm420_vm1, %v7400_v52 }
 0x527   : > { %10538 = vmatmul.mubr.msk.f32.gmra.mrb[8].mxu1 %vm420_vm1, %v13167_v36  ;;  %v15809_v36 = vld [vmem:[#allocation39_spill] sm:$0xff] }
 0x528   : > { %10540 = vmatprep.mubr.msk.f32.mxu1 %vm420_vm1, %v15804_v13 }
 0x52b   : > { %10541 = vmatmul.mubr.msk.f32.gmra.mrb[10].mxu1 %vm420_vm1, %v13180_v63  ;;  %v15810_v63 = vld [vmem:[#allocation40_spill] sm:$0xff] }
 0x52c   : > { %10543 = vmatprep.mubr.msk.f32.mxu1 %vm420_vm1, %v15805_v4 }
 0x52f   : > { %10544 = vmatmul.mubr.msk.f32.gmra.mrb[12].mxu1 %vm420_vm1, %v13193_v20  ;;  %v15811_v20 = vld [vmem:[#allocation42_spill] sm:$0xff] }
 0x530   : > { %10546 = vmatprep.mubr.msk.f32.mxu1 %vm420_vm1, %v15806_v47 }
 0x533   : > { %10547 = vmatmul.mubr.msk.f32.gmra.mrb[14].mxu1 %vm420_vm1, %v13206_v9  ;;  %v15812_v9 = vld [vmem:[#allocation43_spill] sm:$0xff] }
 0x534   : > { %10549 = vmatprep.mubr.msk.f32.mxu1 %vm420_vm1, %v15783_v54 }
 0x537   : > { %10550 = vmatmul.mubr.msk.f32.gmra.mrb[16].mxu1 %vm420_vm1, %v15807_v60 }
 0x538   : > { %10552 = vmatprep.mubr.msk.f32.mxu1 %vm420_vm1, %v15808_v57 }
 0x53b   : > { %10553 = vmatmul.mubr.msk.f32.gmra.mrb[18].mxu1 %vm420_vm1, %v13232_v16  ;;  %v6059_v16 = vrot.slane %v13571_v27, 2 }
 0x53c   : > { %10555 = vmatprep.mubr.msk.f32.mxu1 %vm420_vm1, %v15785_v17 }
 0x53d   : > { %v6061_v23 = vsel %vm1350_vm4, %v6059_v16, %v6060_v1 }
 0x53f   : > { %10556 = vmatmul.mubr.msk.f32.gmra.mrb[20].mxu1 %vm420_vm1, %v15809_v36 }
 0x540   : > { %10558 = vmatprep.mubr.msk.f32.mxu1 %vm420_vm1, %v15810_v63 }
 0x543   : > { %10559 = vmatmul.mubr.msk.f32.gmra.mrb[22].mxu1 %vm420_vm1, %v13258_v42  ;;  %v6062_v42 = vrot.slane %v3592_v25, 2 }
 0x544   : > { %10561 = vmatprep.mubr.msk.f32.mxu1 %vm420_vm1, %v15811_v20 }
 0x547   : > { %10562 = vmatmul.mubr.msk.f32.gmra.mrb[24].mxu1 %vm420_vm1, %v15812_v9 }
 0x548   : > { %10564 = vmatprep.mubr.msk.f32.mxu1 %vm420_vm1, %v13277_v48  ;;  %v6063_v48 = vsel %vm1350_vm4, %v6060_v1, %v6062_v42 }
 0x54b   : > { %10565 = vmatmul.mubr.msk.f32.gmra.mrb[26].mxu1 %vm420_vm1, %v15813_v12 }
 0x54c   : > { %10567 = vmatprep.mubr.msk.f32.mxu1 %vm420_vm1, %v13505_v61 }
 0x54f   : > { %10568 = vmatmul.mubr.msk.f32.gmra.mrb[28].mxu1 %vm420_vm1, %v13510_v0 }
 0x550   : > { %10570 = vmatprep.mubr.msk.f32.mxu1 %vm420_vm1, %v6061_v23 }
 0x553   : > { %10571 = vmatmul.mubr.msk.f32.gmra.mrb[30].mxu1 %vm420_vm1, %v6063_v48 }
 0x554   : > { %9603 = vmatprep.mubr.msk.f32.mxu1 %vm420_vm1, %v7400_v52 }
 0x5ea   : > { %v10527_v41 = vpop.f32.mrb[0].mxu1 }
 0x5eb   : > { %v6336_v22 = vmul.f32 %v10527_v41, %v13717_v55  ;;  %v6137_v0 = vpop.f32.mrb[1].mxu1 }
 0x5ec   : > { %v6335_v29 = vmul.f32 %v13717_v55, %v6137_v0 }
 0x5ed   : > { %v6375_v34 = vadd.f32 %v13722_v24, %v6336_v22 }
 0x5ee   : > { %v6374_v49 = vadd.f32 %v13722_v24, %v6335_v29  ;;  %v10530_v26 = vpop.f32.mrb[2].mxu1 }
 0x5ef   : > { %v6407_v37 = vmax.f32 %v6375_v34, 0.0  ;;  %v6338_v58 = vmul.f32 %v10530_v26, %v13717_v55  ;;  %v6147_v2 = vpop.f32.mrb[3].mxu1 }
 0x5f0   : > { %v6406_v19 = vmax.f32 %v6374_v49, 0.0  ;;  %v6337_v32 = vmul.f32 %v13717_v55, %v6147_v2 }
 0x5f1   : > { %v6439_v62 = vmul.f32 0.75, %v6407_v37  ;;  %v6471_v18 = vmul.f32 0.25, %v6407_v37  ;;  %v6377_v61 = vadd.f32 %v13722_v24, %v6338_v58 }
 0x5f2   : > { %v6438_v54 = vmul.f32 0.75, %v6406_v19  ;;  %v6470_v17 = vmul.f32 0.25, %v6406_v19  ;;  %v6376_v31 = vadd.f32 %v13722_v24, %v6337_v32  ;;  %v10533_v33 = vpop.f32.mrb[4].mxu1 }
 0x5f3   : > { %v6501_v50 = vadd.f32 %v6471_v18, %v6439_v62  ;;  %v6409_v11 = vmax.f32 %v6377_v61, 0.0  ;;  %v6340_v8 = vmul.f32 %v10533_v33, %v13717_v55  ;;  %v6157_v27 = vpop.f32.mrb[5].mxu1 }
 0x5f4   : > { %v6500_v28 = vadd.f32 %v6470_v17, %v6438_v54  ;;  %v6408_v38 = vmax.f32 %v6376_v31, 0.0  ;;  %v6339_v43 = vmul.f32 %v13717_v55, %v6157_v27 }
 0x5f5   : > { %6567 = vst.msk [vmem:[#allocation3 + $0x9] sm:$0xff] %vm420_vm1, %v6501_v50  ;;  %v6441_v6 = vmul.f32 0.75, %v6409_v11  ;;  %v6473_v30 = vmul.f32 0.25, %v6409_v11  ;;  %v6379_v14 = vadd.f32 %v13722_v24, %v6340_v8  ;;  %v13742_v56 = vmul.f32 0.75, %v6501_v50 }
 0x5f6   : > { %6664 = vst.msk [vmem:[#allocation3 + $0xa] sm:$0x80] %vm6663_vm5, %v6501_v50  ;;  %v6440_v15 = vmul.f32 0.75, %v6408_v38  ;;  %v6472_v45 = vmul.f32 0.25, %v6408_v38  ;;  %v6378_v46 = vadd.f32 %v13722_v24, %v6339_v43  ;;  %v10536_v35 = vpop.f32.mrb[6].mxu1  ;;  %v13744_v5 = vmul.f32 0.75, %v6500_v28 }
 0x5f7   : > { %6566 = vst.msk [vmem:[#allocation3 + $0x1] sm:$0xff] %vm420_vm1, %v6500_v28  ;;  %v6503_v39 = vadd.f32 %v6471_v18, %v6441_v6  ;;  %v6535_v40 = vadd.f32 %v6473_v30, %v6439_v62  ;;  %v6411_v53 = vmax.f32 %v6379_v14, 0.0  ;;  %v6342_v51 = vmul.f32 %v10536_v35, %v13717_v55  ;;  %v6167_v21 = vpop.f32.mrb[7].mxu1  ;;  %15814 = vst [vmem:[#allocation4_spill] sm:$0xff] %v13742_v56 }
 0x5f8   : > { %6631 = vst.msk [vmem:[#allocation3] sm:$0x1] %vm6630_vm6, %v6500_v28  ;;  %v6502_v3 = vadd.f32 %v6470_v17, %v6440_v15  ;;  %v6534_v7 = vadd.f32 %v6472_v45, %v6438_v54  ;;  %v6410_v44 = vmax.f32 %v6378_v46, 0.0  ;;  %v6341_v25 = vmul.f32 %v13717_v55, %v6167_v21 }
 0x5f9   : > { %6569 = vst.msk [vmem:[#allocation3 + $0x21] sm:$0xff] %vm420_vm1, %v6535_v40  ;;  %6571 = vst.msk [vmem:[#allocation3 + $0x39] sm:$0xff] %vm420_vm1, %v6503_v39  ;;  %v6443_v59 = vmul.f32 0.75, %v6411_v53  ;;  %v6475_v10 = vmul.f32 0.25, %v6411_v53  ;;  %v13753_v13 = vmul.f32 0.75, %v6535_v40  ;;  %v13755_v4 = vmul.f32 0.75, %v6503_v39 }
 0x5fa   : > { %6665 = vst.msk [vmem:[#allocation3 + $0x22] sm:$0x80] %vm6663_vm5, %v6535_v40  ;;  %6666 = vst.msk [vmem:[#allocation3 + $0x3a] sm:$0x80] %vm6663_vm5, %v6503_v39  ;;  %v6442_v47 = vmul.f32 0.75, %v6410_v44  ;;  %v6474_v60 = vmul.f32 0.25, %v6410_v44  ;;  %v6381_v20 = vadd.f32 %v13722_v24, %v6342_v51  ;;  %v6380_v9 = vadd.f32 %v13722_v24, %v6341_v25 }
 0x5fb   : > { %15815 = vst [vmem:[#allocation15_spill] sm:$0xff] %v13755_v4  ;;  %6568 = vst.msk [vmem:[#allocation3 + $0x19] sm:$0xff] %vm420_vm1, %v6534_v7  ;;  %v10539_v57 = vpop.f32.mrb[8].mxu1  ;;  %v6505_v36 = vadd.f32 %v6473_v30, %v6443_v59  ;;  %v6537_v63 = vadd.f32 %v6475_v10, %v6441_v6  ;;  %v13765_v1 = vmul.f32 0.75, %v6534_v7  ;;  %v13767_v12 = vmul.f32 0.75, %v6502_v3 }
 0x5fc   : > { %6570 = vst.msk [vmem:[#allocation3 + $0x31] sm:$0xff] %vm420_vm1, %v6502_v3  ;;  %v6177_v16 = vpop.f32.mrb[9].mxu1  ;;  %v6504_v42 = vadd.f32 %v6472_v45, %v6442_v47  ;;  %v6536_v23 = vadd.f32 %v6474_v60, %v6440_v15  ;;  %v6413_v22 = vmax.f32 %v6381_v20, 0.0  ;;  %v6412_v0 = vmax.f32 %v6380_v9, 0.0 }
 0x5fd   : > { %6632 = vst.msk [vmem:[#allocation3 + $0x18] sm:$0x1] %vm6630_vm6, %v6534_v7  ;;  %6633 = vst.msk [vmem:[#allocation3 + $0x30] sm:$0x1] %vm6630_vm6, %v6502_v3  ;;  %v6344_v29 = vmul.f32 %v10539_v57, %v13717_v55  ;;  %v6343_v34 = vmul.f32 %v13717_v55, %v6177_v16  ;;  %v13777_v37 = vmul.f32 0.75, %v6537_v63  ;;  %v13779_v58 = vmul.f32 0.75, %v6505_v36 }
 0x5fe   : > { %v6697_v41 = vld [vmem:[#allocation3 + $0x8] sm:$0xff]  ;;  %6573 = vst.msk [vmem:[#allocation3 + $0x51] sm:$0xff] %vm420_vm1, %v6537_v63  ;;  %6575 = vst.msk [vmem:[#allocation3 + $0x69] sm:$0xff] %vm420_vm1, %v6505_v36  ;;  %v13785_v2 = vpop.f32.mrb[10].mxu1  ;;  %v13787_v19 = vmul.f32 0.75, %v6413_v22  ;;  %v13789_v32 = vmul.f32 0.25, %v6413_v22 }
 0x5ff   : > { %v6696_v48 = vld [vmem:[#allocation3] sm:$0xff]  ;;  %6667 = vst.msk [vmem:[#allocation3 + $0x52] sm:$0x80] %vm6663_vm5, %v6537_v63  ;;  %6668 = vst.msk [vmem:[#allocation3 + $0x6a] sm:$0x80] %vm6663_vm5, %v6505_v36  ;;  %v13775_v26 = vmul.f32 0.25, %v6697_v41  ;;  %v6383_v53 = vadd.f32 %v13722_v24, %v6344_v29 }
 0x600   : > { %v6856_v49 = vmul.f32 0.25, %v6696_v48  ;;  %15817 = vst [vmem:[#allocation27_spill] sm:$0xff] %v13779_v58  ;;  %6572 = vst.msk [vmem:[#allocation3 + $0x49] sm:$0xff] %vm420_vm1, %v6536_v23  ;;  %v13791_v62 = vmul.f32 0.75, %v6412_v0  ;;  %v13793_v18 = vmul.f32 0.25, %v6412_v0  ;;  %v13795_v61 = vpop.f32.mrb[11].mxu1  ;;  %v6507_v27 = vadd.f32 %v6475_v10, %v13787_v19 }
 0x601   : > { %15816 = vst [vmem:[#allocation26_spill] sm:$0xff] %v13775_v26  ;;  %6574 = vst.msk [vmem:[#allocation3 + $0x61] sm:$0xff] %vm420_vm1, %v6504_v42  ;;  %v15513_v17 = vrot.slane %v13775_v26, 2  ;;  %v13798_v31 = vmul.f32 0.75, %v6536_v23  ;;  %v13800_v33 = vmul.f32 0.75, %v6504_v42  ;;  %v6539_v28 = vadd.f32 %v13789_v32, %v6443_v59 }
 0x602   : > { %6634 = vst.msk [vmem:[#allocation3 + $0x48] sm:$0x1] %vm6630_vm6, %v6536_v23  ;;  %6635 = vst.msk [vmem:[#allocation3 + $0x60] sm:$0x1] %vm6630_vm6, %v6504_v42  ;;  %v7112_v54 = vrot.slane %v6856_v49, 2  ;;  %v6700_v11 = vld [vmem:[#allocation3 + $0x20] sm:$0xff]  ;;  %v6506_v38 = vadd.f32 %v6474_v60, %v13791_v62  ;;  %v6538_v43 = vadd.f32 %v13793_v18, %v6442_v47  ;;  %v13812_v35 = vadd.f32 %v6856_v49, %v13744_v5 }
 0x603   : > { %v6703_v30 = vld [vmem:[#allocation3 + $0x38] sm:$0xff]  ;;  %v13809_v15 = vmul.f32 0.25, %v6700_v11  ;;  %v10545_v46 = vpop.f32.mrb[12].mxu1  ;;  %6577 = vst.msk [vmem:[#allocation3 + $0x81] sm:$0xff] %vm420_vm1, %v6539_v28  ;;  %6579 = vst.msk [vmem:[#allocation3 + $0x99] sm:$0xff] %vm420_vm1, %v6507_v27  ;;  %v13831_v7 = vmul.f32 0.75, %v6539_v28  ;;  %v6382_v60 = vadd.f32 %v13722_v24, %v6343_v34 }
 0x604   : > { %v6699_v50 = vld [vmem:[#allocation3 + $0x18] sm:$0xff]  ;;  %v6702_v8 = vld [vmem:[#allocation3 + $0x30] sm:$0xff]  ;;  %v7114_v6 = vsel %vm1350_vm4, %v7112_v54, %v15513_v17  ;;  %v13817_v40 = vmul.f32 0.25, %v6703_v30  ;;  %6669 = vst.msk [vmem:[#allocation3 + $0x82] sm:$0x80] %vm6663_vm5, %v6539_v28  ;;  %v13828_v51 = vpop.f32.mrb[13].mxu1 }
 0x605   : > { %v6858_v14 = vmul.f32 0.25, %v6699_v50  ;;  %v6860_v45 = vmul.f32 0.25, %v6702_v8  ;;  %v13815_v39 = vadd.f32 %v7114_v6, %v13744_v5  ;;  %6670 = vst.msk [vmem:[#allocation3 + $0x9a] sm:$0x80] %vm6663_vm5, %v6507_v27  ;;  %v15512_v3 = vrot.slane %v13809_v15, 2  ;;  %15820 = vst [vmem:[#allocation36_spill] sm:$0xff] %v13831_v7 }
 0x606   : > { %15819 = vst [vmem:[#allocation29_spill] sm:$0xff] %v13817_v40  ;;  %6576 = vst.msk [vmem:[#allocation3 + $0x79] sm:$0xff] %vm420_vm1, %v6538_v43  ;;  %v13833_v44 = vmul.f32 0.75, %v6507_v27  ;;  %v15511_v59 = vrot.slane %v13817_v40, 2  ;;  %v13845_v16 = vpop.f32.mrb[14].mxu1  ;;  %v6802_v34 = vmul.f32 0.75, %v6538_v43 }
 0x607   : > { %15818 = vst [vmem:[#allocation28_spill] sm:$0xff] %v13815_v39  ;;  %6578 = vst.msk [vmem:[#allocation3 + $0x91] sm:$0xff] %vm420_vm1, %v6506_v38  ;;  %v7117_v21 = vrot.slane %v6858_v14, 2  ;;  %v13836_v25 = vadd.f32 %v6858_v14, %v13765_v1  ;;  %v7122_v5 = vrot.slane %v6860_v45, 2  ;;  %v6706_v52 = vld [vmem:[#allocation3 + $0x50] sm:$0xff]  ;;  %v13848_v42 = vadd.f32 %v6860_v45, %v13767_v12  ;;  %v13858_v22 = vpop.f32.mrb[15].mxu1 }
 0x608   : > { %6636 = vst.msk [vmem:[#allocation3 + $0x78] sm:$0x1] %vm6630_vm6, %v6538_v43  ;;  %6637 = vst.msk [vmem:[#allocation3 + $0x90] sm:$0x1] %vm6630_vm6, %v6506_v38  ;;  %v6709_v36 = vld [vmem:[#allocation3 + $0x68] sm:$0xff]  ;;  %v13843_v20 = vmul.f32 0.25, %v6706_v52  ;;  %v6346_v43 = vmul.f32 %v13785_v2, %v13717_v55  ;;  %v6345_v2 = vmul.f32 %v13717_v55, %v13795_v61 }
 0x609   : > { %15821 = vst [vmem:[#allocation7_spill] sm:$0xff] %v13833_v44  ;;  %v6705_v10 = vld [vmem:[#allocation3 + $0x48] sm:$0xff]  ;;  %v6708_v47 = vld [vmem:[#allocation3 + $0x60] sm:$0xff]  ;;  %v7119_v57 = vsel %vm1350_vm4, %v7117_v21, %v15512_v3  ;;  %v7124_v23 = vsel %vm1350_vm4, %v7122_v5, %v15511_v59  ;;  %v13856_v41 = vmul.f32 0.25, %v6709_v36  ;;  %v6804_v49 = vmul.f32 0.75, %v6506_v38 }
 0x60a   : > { %v6862_v63 = vmul.f32 0.25, %v6705_v10  ;;  %v6864_v9 = vmul.f32 0.25, %v6708_v47  ;;  %v13854_v48 = vadd.f32 %v7119_v57, %v13765_v1  ;;  %v13861_v0 = vadd.f32 %v7124_v23, %v13767_v12  ;;  %v13873_v38 = vpop.f32.mrb[16].mxu1 }
 0x60b   : > { %15823 = vst [vmem:[#allocation22_spill] sm:$0xff] %v13856_v41  ;;  %v15510_v54 = vrot.slane %v13843_v20, 2  ;;  %v15507_v11 = vrot.slane %v13856_v41, 2  ;;  %v6415_v8 = vmax.f32 %v6383_v53, 0.0  ;;  %v6414_v12 = vmax.f32 %v6382_v60, 0.0  ;;  %v13883_v10 = vpop.f32.mrb[17].mxu1 }
 0x60c   : > { %15822 = vst [vmem:[#allocation20_spill] sm:$0xff] %v13854_v48  ;;  %15824 = vst [vmem:[#allocation23_spill] sm:$0xff] %v13861_v0  ;;  %v7127_v29 = vrot.slane %v6862_v63, 2  ;;  %v7132_v50 = vrot.slane %v6864_v9, 2  ;;  %v13866_v27 = vadd.f32 %v6862_v63, %v13798_v31  ;;  %v13869_v1 = vadd.f32 %v6864_v9, %v13800_v33 }
 0x60d   : > { %v6712_v6 = vld [vmem:[#allocation3 + $0x80] sm:$0xff]  ;;  %v6348_v60 = vmul.f32 %v10545_v46, %v13717_v55  ;;  %v6447_v9 = vmul.f32 0.75, %v6415_v8  ;;  %v6446_v46 = vmul.f32 0.75, %v6414_v12 }
 0x60e   : > { %v7129_v14 = vsel %vm1350_vm4, %v7127_v29, %v15510_v54  ;;  %v7134_v45 = vsel %vm1350_vm4, %v7132_v50, %v15507_v11  ;;  %v6715_v53 = vld [vmem:[#allocation3 + $0x98] sm:$0xff]  ;;  %v13881_v5 = vmul.f32 0.25, %v6712_v6  ;;  %v13898_v6 = vpop.f32.mrb[18].mxu1 }
 0x60f   : > { %v6711_v28 = vld [vmem:[#allocation3 + $0x78] sm:$0xff]  ;;  %v6714_v30 = vld [vmem:[#allocation3 + $0x90] sm:$0xff]  ;;  %v13885_v47 = vmul.f32 0.25, %v6715_v53  ;;  %v13891_v57 = vadd.f32 %v7129_v14, %v13798_v31  ;;  %v13895_v23 = vadd.f32 %v7134_v45, %v13800_v33  ;;  %v13904_v31 = vadd.f32 %v13789_v32, %v6447_v9  ;;  %v13906_v14 = vpop.f32.mrb[19].mxu1 }
 0x610   : > { %v6866_v21 = vmul.f32 0.25, %v6711_v28  ;;  %15825 = vst [vmem:[#allocation24_spill] sm:$0xff] %v13881_v5  ;;  %v6868_v52 = vmul.f32 0.25, %v6714_v30  ;;  %v15509_v63 = vrot.slane %v13881_v5, 2  ;;  %v6479_v28 = vmul.f32 0.25, %v6415_v8 }
 0x611   : > { %15826 = vst [vmem:[#allocation34_spill] sm:$0xff] %v13885_v47  ;;  %15827 = vst [vmem:[#allocation38_spill] sm:$0xff] %v13891_v57  ;;  %v15508_v50 = vrot.slane %v13885_v47, 2  ;;  %v6478_v30 = vmul.f32 0.25, %v6414_v12  ;;  %v6385_v45 = vadd.f32 %v13722_v24, %v6346_v43  ;;  %v13924_v32 = vadd.f32 %v13793_v18, %v6446_v46 }
 0x612   : > { %v7137_v36 = vrot.slane %v6866_v21, 2  ;;  %15828 = vst [vmem:[#allocation41_spill] sm:$0xff] %v13895_v23  ;;  %v7142_v29 = vrot.slane %v6868_v52, 2  ;;  %v13908_v53 = vadd.f32 %v6866_v21, %v6802_v34  ;;  %v13914_v8 = vadd.f32 %v6479_v28, %v13787_v19  ;;  %6583 = vst.msk [vmem:[#allocation3 + $0xc9] sm:$0xff] %vm420_vm1, %v13904_v31 }
 0x613   : > { %v13917_v11 = vadd.f32 %v6868_v52, %v6804_v49  ;;  %6672 = vst.msk [vmem:[#allocation3 + $0xca] sm:$0x80] %vm6663_vm5, %v13904_v31  ;;  %v13927_v12 = vadd.f32 %v6478_v30, %v13791_v62  ;;  %v6384_v21 = vadd.f32 %v13722_v24, %v6345_v2  ;;  %v6417_v43 = vmax.f32 %v6385_v45, 0.0 }
 0x614   : > { %v7139_v61 = vsel %vm1350_vm4, %v7137_v36, %v15509_v63  ;;  %15829 = vst [vmem:[#allocation5_spill] sm:$0xff] %v13908_v53  ;;  %v7144_v33 = vsel %vm1350_vm4, %v7142_v29, %v15508_v50  ;;  %6581 = vst.msk [vmem:[#allocation3 + $0xb1] sm:$0xff] %vm420_vm1, %v13914_v8  ;;  %v6387_v52 = vadd.f32 %v13722_v24, %v6348_v60  ;;  %v13939_v36 = vpop.f32.mrb[20].mxu1 }
 0x615   : > { %15830 = vst [vmem:[#allocation6_spill] sm:$0xff] %v13917_v11  ;;  %v13930_v19 = vadd.f32 %v7139_v61, %v6802_v34  ;;  %6671 = vst.msk [vmem:[#allocation3 + $0xb2] sm:$0x80] %vm6663_vm5, %v13914_v8  ;;  %v6347_v18 = vmul.f32 %v13717_v55, %v13828_v51  ;;  %v13941_v62 = vadd.f32 %v7144_v33, %v6804_v49  ;;  %v6416_v34 = vmax.f32 %v6384_v21, 0.0  ;;  %v13955_v2 = vpop.f32.mrb[21].mxu1 }
 0x616   : > { %6580 = vst.msk [vmem:[#allocation3 + $0xa9] sm:$0xff] %vm420_vm1, %v13927_v12  ;;  %6582 = vst.msk [vmem:[#allocation3 + $0xc1] sm:$0xff] %vm420_vm1, %v13924_v32  ;;  %v6350_v51 = vmul.f32 %v13845_v16, %v13717_v55  ;;  %v6349_v49 = vmul.f32 %v13717_v55, %v13858_v22  ;;  %v6449_v60 = vmul.f32 0.75, %v6417_v43  ;;  %v6481_v29 = vmul.f32 0.25, %v6417_v43  ;;  %v13964_v22 = vpop.f32.mrb[22].mxu1 }
 0x617   : > { %15831 = vst [vmem:[#allocation8_spill] sm:$0xff] %v13930_v19  ;;  %15832 = vst [vmem:[#allocation9_spill] sm:$0xff] %v13941_v62  ;;  %v6419_v61 = vmax.f32 %v6387_v52, 0.0  ;;  %v6386_v33 = vadd.f32 %v13722_v24, %v6347_v18  ;;  %v6448_v45 = vmul.f32 0.75, %v6416_v34  ;;  %v6480_v50 = vmul.f32 0.25, %v6416_v34  ;;  %v13970_v62 = vpop.f32.mrb[23].mxu1 }
 0x618   : > { %6638 = vst.msk [vmem:[#allocation3 + $0xa8] sm:$0x1] %vm6630_vm6, %v13927_v12  ;;  %6639 = vst.msk [vmem:[#allocation3 + $0xc0] sm:$0x1] %vm6630_vm6, %v13924_v32  ;;  %v6389_v63 = vadd.f32 %v13722_v24, %v6350_v51  ;;  %v6388_v54 = vadd.f32 %v13722_v24, %v6349_v49  ;;  %v13960_v21 = vadd.f32 %v6479_v28, %v6449_v60 }
 0x619   : > { %v13962_v59 = vadd.f32 %v6481_v29, %v6447_v9  ;;  %v6451_v16 = vmul.f32 0.75, %v6419_v61  ;;  %v6483_v3 = vmul.f32 0.25, %v6419_v61  ;;  %v13966_v17 = vadd.f32 %v6478_v30, %v6448_v45 }
 0x61a   : > { %v13968_v43 = vadd.f32 %v6480_v50, %v6446_v46  ;;  %v6418_v52 = vmax.f32 %v6386_v33, 0.0  ;;  %v6421_v18 = vmax.f32 %v6389_v63, 0.0  ;;  %6587 = vst.msk [vmem:[#allocation3 + $0xf9] sm:$0xff] %vm420_vm1, %v13960_v21  ;;  %v6420_v46 = vmax.f32 %v6388_v54, 0.0 }
 0x61b   : > { %6585 = vst.msk [vmem:[#allocation3 + $0xe1] sm:$0xff] %vm420_vm1, %v13962_v59  ;;  %v13980_v9 = vadd.f32 %v6481_v29, %v6451_v16  ;;  %v13982_v28 = vadd.f32 %v6483_v3, %v6449_v60  ;;  %v6352_v63 = vmul.f32 %v13873_v38, %v13717_v55  ;;  %6586 = vst.msk [vmem:[#allocation3 + $0xf1] sm:$0xff] %vm420_vm1, %v13966_v17 }
 0x61c   : > { %6673 = vst.msk [vmem:[#allocation3 + $0xe2] sm:$0x80] %vm6663_vm5, %v13962_v59  ;;  %6674 = vst.msk [vmem:[#allocation3 + $0xfa] sm:$0x80] %vm6663_vm5, %v13960_v21  ;;  %v6450_v30 = vmul.f32 0.75, %v6418_v52  ;;  %v6482_v34 = vmul.f32 0.25, %v6418_v52  ;;  %v6351_v33 = vmul.f32 %v13717_v55, %v13883_v10 }
 0x61d   : > { %6584 = vst.msk [vmem:[#allocation3 + $0xd9] sm:$0xff] %vm420_vm1, %v13968_v43  ;;  %v6453_v51 = vmul.f32 0.75, %v6421_v18  ;;  %v6485_v49 = vmul.f32 0.25, %v6421_v18  ;;  %v6718_v60 = vld [vmem:[#allocation3 + $0xb0] sm:$0xff]  ;;  %6589 = vst.msk [vmem:[#allocation3 + $0x111] sm:$0xff] %vm420_vm1, %v13982_v28  ;;  %v14002_v38 = vmul.f32 0.75, %v6420_v46  ;;  %v6391_v61 = vadd.f32 %v13722_v24, %v6352_v63 }
 0x61e   : > { %6640 = vst.msk [vmem:[#allocation3 + $0xd8] sm:$0x1] %vm6630_vm6, %v13968_v43  ;;  %6641 = vst.msk [vmem:[#allocation3 + $0xf0] sm:$0x1] %vm6630_vm6, %v13966_v17  ;;  %v6484_v29 = vmul.f32 0.25, %v6420_v46  ;;  %v14007_v52 = vpop.f32.mrb[24].mxu1  ;;  %v14011_v23 = vadd.f32 %v6480_v50, %v6450_v30  ;;  %v14013_v57 = vadd.f32 %v6482_v34, %v6448_v45  ;;  %v6354_v45 = vmul.f32 %v13898_v6, %v13717_v55 }
 0x61f   : > { %v6717_v54 = vld [vmem:[#allocation3 + $0xa8] sm:$0xff]  ;;  %6591 = vst.msk [vmem:[#allocation3 + $0x129] sm:$0xff] %vm420_vm1, %v13980_v9  ;;  %v14009_v19 = vmul.f32 0.25, %v6718_v60  ;;  %v14015_v0 = vpop.f32.mrb[25].mxu1  ;;  %v14017_v48 = vadd.f32 %v6483_v3, %v6453_v51  ;;  %v14019_v39 = vadd.f32 %v6485_v49, %v6451_v16  ;;  %v14022_v46 = vadd.f32 %v6482_v34, %v14002_v38 }
 0x620   : > { %6675 = vst.msk [vmem:[#allocation3 + $0x112] sm:$0x80] %vm6663_vm5, %v13982_v28  ;;  %6676 = vst.msk [vmem:[#allocation3 + $0x12a] sm:$0x80] %vm6663_vm5, %v13980_v9  ;;  %v6870_v18 = vmul.f32 0.25, %v6717_v54  ;;  %v14024_v63 = vadd.f32 %v6484_v29, %v6450_v30  ;;  %v14027_v10 = vmul.f32 0.75, %v13914_v8  ;;  %v6390_v8 = vadd.f32 %v13722_v24, %v6351_v33 }
 0x621   : > { %15833 = vst [vmem:[#allocation10_spill] sm:$0xff] %v14009_v19  ;;  %15834 = vst [vmem:[#allocation11_spill] sm:$0xff] %v14017_v48  ;;  %v6423_v3 = vmax.f32 %v6391_v61, 0.0  ;;  %v6353_v16 = vmul.f32 %v13717_v55, %v13906_v14  ;;  %v6356_v30 = vmul.f32 %v13939_v36, %v13717_v55  ;;  %v14061_v34 = vpop.f32.mrb[26].mxu1  ;;  %v6806_v60 = vmul.f32 0.75, %v13927_v12 }
 0x622   : > { %15835 = vst [vmem:[#allocation12_spill] sm:$0xff] %v14019_v39  ;;  %15836 = vst [vmem:[#allocation13_spill] sm:$0xff] %v14022_v46  ;;  %v7147_v54 = vrot.slane %v6870_v18, 2  ;;  %v14066_v11 = vpop.f32.mrb[27].mxu1  ;;  %v15839_v33 = vrot.slane %v14009_v19, 2  ;;  %v6422_v47 = vmax.f32 %v6390_v8, 0.0  ;;  %v6393_v14 = vadd.f32 %v13722_v24, %v6354_v45 }
 0x623   : > { %15837 = vst [vmem:[#allocation14_spill] sm:$0xff] %v14024_v63  ;;  %15838 = vst [vmem:[#allocation16_spill] sm:$0xff] %v14027_v10  ;;  %v6455_v61 = vmul.f32 0.75, %v6423_v3  ;;  %v6487_v50 = vmul.f32 0.25, %v6423_v3  ;;  %v6355_v10 = vmul.f32 %v13717_v55, %v13955_v2  ;;  %v6392_v36 = vadd.f32 %v13722_v24, %v6353_v16  ;;  %v14077_v7 = vpop.f32.mrb[28].mxu1 }
 0x624   : > { %6588 = vst.msk [vmem:[#allocation3 + $0x109] sm:$0xff] %vm420_vm1, %v14013_v57  ;;  %6590 = vst.msk [vmem:[#allocation3 + $0x121] sm:$0xff] %vm420_vm1, %v14011_v23  ;;  %v7149_v6 = vsel %vm1350_vm4, %v7147_v54, %v15839_v33  ;;  %v6395_v12 = vadd.f32 %v13722_v24, %v6356_v30  ;;  %v6486_v2 = vmul.f32 0.25, %v6422_v47  ;;  %v6425_v53 = vmax.f32 %v6393_v14, 0.0 }
 0x625   : > { %6642 = vst.msk [vmem:[#allocation3 + $0x108] sm:$0x1] %vm6630_vm6, %v14013_v57  ;;  %6643 = vst.msk [vmem:[#allocation3 + $0x120] sm:$0x1] %vm6630_vm6, %v14011_v23  ;;  %v6517_v44 = vadd.f32 %v6485_v49, %v6455_v61  ;;  %v6394_v3 = vadd.f32 %v13722_v24, %v6355_v10  ;;  %v6424_v5 = vmax.f32 %v6392_v36, 0.0  ;;  %v14079_v19 = vadd.f32 %v6870_v18, %v6806_v60  ;;  %v14089_v49 = vpop.f32.mrb[29].mxu1 }
 0x626   : > { %6593 = vst.msk [vmem:[#allocation3 + $0x141] sm:$0xff] %vm420_vm1, %v14019_v39  ;;  %6595 = vst.msk [vmem:[#allocation3 + $0x159] sm:$0xff] %vm420_vm1, %v14017_v48  ;;  %v14081_v54 = vadd.f32 %v7149_v6, %v6806_v60  ;;  %v14092_v18 = vadd.f32 %v6486_v2, %v14002_v38  ;;  %v6457_v8 = vmul.f32 0.75, %v6425_v53  ;;  %v6489_v45 = vmul.f32 0.25, %v6425_v53 }
 0x627   : > { %6677 = vst.msk [vmem:[#allocation3 + $0x142] sm:$0x80] %vm6663_vm5, %v14019_v39  ;;  %6678 = vst.msk [vmem:[#allocation3 + $0x15a] sm:$0x80] %vm6663_vm5, %v14017_v48  ;;  %v14073_v48 = vadd.f32 %v6487_v50, %v6453_v51  ;;  %v6427_v51 = vmax.f32 %v6395_v12, 0.0  ;;  %v6456_v16 = vmul.f32 0.75, %v6424_v5 }
 0x628   : > { %6592 = vst.msk [vmem:[#allocation3 + $0x139] sm:$0xff] %vm420_vm1, %v14024_v63  ;;  %6594 = vst.msk [vmem:[#allocation3 + $0x151] sm:$0xff] %vm420_vm1, %v14022_v46  ;;  %v6488_v30 = vmul.f32 0.25, %v6424_v5  ;;  %v14098_v6 = vmul.f32 0.75, %v6517_v44  ;;  %v6519_v38 = vadd.f32 %v6487_v50, %v6457_v8  ;;  %v6551_v53 = vadd.f32 %v6489_v45, %v6455_v61  ;;  %v14108_v5 = vpop.f32.mrb[30].mxu1  ;;  %v6721_v61 = vld [vmem:[#allocation3 + $0xc8] sm:$0xff] }
 0x629   : > { %6644 = vst.msk [vmem:[#allocation3 + $0x138] sm:$0x1] %vm6630_vm6, %v14024_v63  ;;  %6645 = vst.msk [vmem:[#allocation3 + $0x150] sm:$0x1] %vm6630_vm6, %v14022_v46  ;;  %v6454_v46 = vmul.f32 0.75, %v6422_v47  ;;  %v6426_v47 = vmax.f32 %v6394_v3, 0.0  ;;  %v6518_v14 = vadd.f32 %v6486_v2, %v6456_v16 }
 0x62a   : > { %15840 = vst [vmem:[#allocation17_spill] sm:$0xff] %v14073_v48  ;;  %15841 = vst [vmem:[#allocation18_spill] sm:$0xff] %v14079_v19  ;;  %v14094_v60 = vmul.f32 0.75, %v6427_v51  ;;  %v14096_v33 = vmul.f32 0.25, %v6427_v51  ;;  %v6720_v3 = vld [vmem:[#allocation3 + $0xc0] sm:$0xff]  ;;  %v14112_v51 = vpop.f32.mrb[31].mxu1  ;;  %v6358_v19 = vmul.f32 %v13964_v22, %v13717_v55 }
 0x62b   : > { %15842 = vst [vmem:[#allocation19_spill] sm:$0xff] %v14081_v54  ;;  %6597 = vst.msk [vmem:[#allocation3 + $0x171] sm:$0xff] %vm420_vm1, %v14073_v48  ;;  %v6516_v10 = vadd.f32 %v6484_v29, %v6454_v46  ;;  %v14106_v29 = vmul.f32 0.75, %v6426_v47  ;;  %v6550_v36 = vadd.f32 %v6488_v30, %v6454_v46  ;;  %v14120_v50 = vmul.f32 0.25, %v6426_v47 }
 0x62c   : > { %6599 = vst.msk [vmem:[#allocation3 + $0x189] sm:$0xff] %vm420_vm1, %v6517_v44  ;;  %15843 = vst [vmem:[#allocation21_spill] sm:$0xff] %v14092_v18  ;;  %v6553_v12 = vadd.f32 %v14096_v33, %v6457_v8  ;;  %v14124_v2 = vmul.f32 0.75, %v13924_v32  ;;  %v14126_v8 = vmul.f32 0.75, %v6551_v53 }
 0x62d   : > { %6679 = vst.msk [vmem:[#allocation3 + $0x172] sm:$0x80] %vm6663_vm5, %v14073_v48  ;;  %6680 = vst.msk [vmem:[#allocation3 + $0x18a] sm:$0x80] %vm6663_vm5, %v6517_v44  ;;  %v6521_v44 = vadd.f32 %v6489_v45, %v14094_v60  ;;  %v14114_v54 = vmul.f32 0.75, %v6516_v10  ;;  %v6520_v46 = vadd.f32 %v6488_v30, %v14106_v29  ;;  %v14134_v47 = vmul.f32 0.75, %v6550_v36 }
 0x62e   : > { %15844 = vst [vmem:[#allocation25_spill] sm:$0xff] %v14098_v6  ;;  %6596 = vst.msk [vmem:[#allocation3 + $0x169] sm:$0xff] %vm420_vm1, %v14092_v18  ;;  %v14136_v45 = vmul.f32 0.75, %v6518_v14  ;;  %v14142_v32 = vmul.f32 0.75, %v6553_v12  ;;  %v6397_v48 = vadd.f32 %v13722_v24, %v6358_v19  ;;  %v14188_v19 = vmul.f32 0.75, %v13962_v59 }
 0x62f   : > { %6598 = vst.msk [vmem:[#allocation3 + $0x181] sm:$0xff] %vm420_vm1, %v6516_v10  ;;  %6601 = vst.msk [vmem:[#allocation3 + $0x1a1] sm:$0xff] %vm420_vm1, %v6551_v53  ;;  %v14144_v30 = vmul.f32 0.75, %v6521_v44 }
 0x630   : > { %6646 = vst.msk [vmem:[#allocation3 + $0x168] sm:$0x1] %vm6630_vm6, %v14092_v18  ;;  %6647 = vst.msk [vmem:[#allocation3 + $0x180] sm:$0x1] %vm6630_vm6, %v6516_v10  ;;  %v14128_v10 = vmul.f32 0.75, %v6519_v38 }
 0x631   : > { %6603 = vst.msk [vmem:[#allocation3 + $0x1b9] sm:$0xff] %vm420_vm1, %v6519_v38  ;;  %15845 = vst [vmem:[#allocation30_spill] sm:$0xff] %v14124_v2 }
 0x632   : > { %6681 = vst.msk [vmem:[#allocation3 + $0x1a2] sm:$0x80] %vm6663_vm5, %v6551_v53  ;;  %6682 = vst.msk [vmem:[#allocation3 + $0x1ba] sm:$0x80] %vm6663_vm5, %v6519_v38  ;;  %v6552_v38 = vadd.f32 %v14120_v50, %v6456_v16  ;;  %v14149_v53 = vmul.f32 0.25, %v6720_v3  ;;  %v6921_v3 = vadd.f32 %v13775_v26, %v13742_v56 }
 0x633   : > { %15846 = vst [vmem:[#allocation31_spill] sm:$0xff] %v14126_v8  ;;  %15847 = vst [vmem:[#allocation32_spill] sm:$0xff] %v14128_v10 }
 0x634   : > { %6600 = vst.msk [vmem:[#allocation3 + $0x199] sm:$0xff] %vm420_vm1, %v6550_v36  ;;  %6602 = vst.msk [vmem:[#allocation3 + $0x1b1] sm:$0xff] %vm420_vm1, %v6518_v14  ;;  %v14162_v16 = vmul.f32 0.75, %v6552_v38  ;;  %v10576_v8 = vpack.c.bf16 %v6921_v3, %v13812_v35 }
 0x635   : > { %6648 = vst.msk [vmem:[#allocation3 + $0x198] sm:$0x1] %vm6630_vm6, %v6550_v36  ;;  %6649 = vst.msk [vmem:[#allocation3 + $0x1b0] sm:$0x1] %vm6630_vm6, %v6518_v14  ;;  %v14152_v14 = vmul.f32 0.75, %v13904_v31  ;;  %v14154_v36 = vmul.f32 0.25, %v6721_v61  ;;  %v6936_v31 = vadd.f32 %v14149_v53, %v14124_v2 }
 0x636   : > { %6605 = vst.msk [vmem:[#allocation3 + $0x1d1] sm:$0xff] %vm420_vm1, %v6553_v12  ;;  %6607 = vst.msk [vmem:[#allocation3 + $0x1e9] sm:$0xff] %vm420_vm1, %v6521_v44  ;;  %v6723_v61 = vld [vmem:[#allocation3 + $0xd8] sm:$0xff]  ;;  %v6745_v22 = vld [vmem:[#allocation3 + $0x188] sm:$0xff] }
 0x637   : > { %6683 = vst.msk [vmem:[#allocation3 + $0x1d2] sm:$0x80] %vm6663_vm5, %v6553_v12  ;;  %6684 = vst.msk [vmem:[#allocation3 + $0x1ea] sm:$0x80] %vm6663_vm5, %v6521_v44  ;;  %v6357_v44 = vmul.f32 %v13717_v55, %v13970_v62  ;;  %v14164_v12 = vmul.f32 0.75, %v6520_v46  ;;  %v6937_v62 = vadd.f32 %v14154_v36, %v14152_v14  ;;  %v14177_v10 = vmul.f32 0.25, %v6745_v22 }
 0x638   : > { %15848 = vst [vmem:[#allocation33_spill] sm:$0xff] %v14142_v32  ;;  %15849 = vst [vmem:[#allocation35_spill] sm:$0xff] %v14144_v30  ;;  %v6744_v30 = vld [vmem:[#allocation3 + $0x180] sm:$0xff] }
 0x639   : > { %6606 = vst.msk [vmem:[#allocation3 + $0x1e1] sm:$0xff] %vm420_vm1, %v6520_v46  ;;  %15850 = vst [vmem:[#allocation37_spill] sm:$0xff] %v14149_v53  ;;  %v6888_v18 = vmul.f32 0.25, %v6744_v30  ;;  %v6396_v26 = vadd.f32 %v13722_v24, %v6357_v44  ;;  %v10573_v32 = vpack.c.bf16 %v6937_v62, %v6936_v31  ;;  %v15547_v22 = vrot.slane %v14177_v10, 2 }
 0x63a   : > { %6651 = vst.msk [vmem:[#allocation3 + $0x1e0] sm:$0x1] %vm6630_vm6, %v6520_v46  ;;  %15851 = vst [vmem:[#allocation39_spill] sm:$0xff] %v14152_v14  ;;  %v14175_v46 = vmul.f32 0.75, %v13968_v43  ;;  %v6429_v14 = vmax.f32 %v6397_v48, 0.0  ;;  %v14190_v43 = vmul.f32 0.25, %v6723_v61 }
 0x63b   : > { %15852 = vst [vmem:[#allocation40_spill] sm:$0xff] %v14154_v36  ;;  %6604 = vst.msk [vmem:[#allocation3 + $0x1c9] sm:$0xff] %vm420_vm1, %v6552_v38  ;;  %v7192_v30 = vrot.slane %v6888_v18, 2  ;;  %v6748_v2 = vld [vmem:[#allocation3 + $0x1a0] sm:$0xff]  ;;  %v14197_v63 = vadd.f32 %v6888_v18, %v14114_v54  ;;  %v6751_v44 = vld [vmem:[#allocation3 + $0x1b8] sm:$0xff]  ;;  %10575 = vmatprep.subr.msk.bf16.mxu0 %vm14182_vm7, %v10573_v32 }
 0x63c   : > { %6650 = vst.msk [vmem:[#allocation3 + $0x1c8] sm:$0x1] %vm6630_vm6, %v6552_v38  ;;  %v6724_v38 = vld [vmem:[#allocation3 + $0xe0] sm:$0xff]  ;;  %15853 = vst [vmem:[#allocation42_spill] sm:$0xff] %v14175_v46  ;;  %v6747_v53 = vld [vmem:[#allocation3 + $0x198] sm:$0xff]  ;;  %v14199_v31 = vmul.f32 0.25, %v6748_v2  ;;  %10578 = vmatpush3.bf16.xpose.msk.msra.mxu0 %vm14182_vm7, %v10576_v8  ;;  %v6938_v32 = vadd.f32 %v14190_v43, %v14175_v46 }
 0x63d   : > { %15854 = vst [vmem:[#allocation43_spill] sm:$0xff] %v14177_v10  ;;  %v6750_v36 = vld [vmem:[#allocation3 + $0x1b0] sm:$0xff]  ;;  %v14194_v39 = vmul.f32 0.25, %v6724_v38  ;;  %15857 = vst [vmem:[#allocation44_spill] sm:$0xff] %v14197_v63  ;;  %v6890_v48 = vmul.f32 0.25, %v6747_v53  ;;  %v7194_v6 = vsel %vm1350_vm4, %v7192_v30, %v15547_v22  ;;  %v14206_v35 = vmul.f32 0.25, %v6751_v44 }
 0x63e   : > { %15858 = vst [vmem:[#allocation45_spill] sm:$0xff] %v14199_v31  ;;  %v6892_v59 = vmul.f32 0.25, %v6750_v36  ;;  %v14213_v18 = vadd.f32 %v7194_v6, %v14114_v54  ;;  %v6428_v63 = vmax.f32 %v6396_v26, 0.0  ;;  %v15550_v30 = vrot.slane %v14199_v31, 2 }
 0x63f   : > { %15859 = vst [vmem:[#allocation46_spill] sm:$0xff] %v14206_v35  ;;  %v7197_v2 = vrot.slane %v6890_v48, 2  ;;  %v14220_v22 = vadd.f32 %v6890_v48, %v14134_v47 }
 0x640   : > { %v6757_v62 = vld [vmem:[#allocation3 + $0x1e8] sm:$0xff]  ;;  %15861 = vst [vmem:[#allocation48_spill] sm:$0xff] %v14213_v18  ;;  %v7202_v44 = vrot.slane %v6892_v59, 2  ;;  %v14226_v18 = vadd.f32 %v6892_v59, %v14136_v45 }
 0x641   : > { %v6756_v61 = vld [vmem:[#allocation3 + $0x1e0] sm:$0xff]  ;;  %v14208_v38 = vmul.f32 0.25, %v6757_v62  ;;  %15862 = vst [vmem:[#allocation49_spill] sm:$0xff] %v14220_v22  ;;  %v7199_v26 = vsel %vm1350_vm4, %v7197_v2, %v15550_v30  ;;  %v6461_v2 = vmul.f32 0.75, %v6429_v14  ;;  %v6493_v30 = vmul.f32 0.25, %v6429_v14 }
 0x642   : > { %v6896_v3 = vmul.f32 0.25, %v6756_v61  ;;  %v6754_v36 = vld [vmem:[#allocation3 + $0x1d0] sm:$0xff]  ;;  %v15553_v61 = vrot.slane %v14206_v35, 2  ;;  %15864 = vst [vmem:[#allocation51_spill] sm:$0xff] %v14226_v18  ;;  %v14245_v22 = vadd.f32 %v7199_v26, %v14134_v47  ;;  %v14247_v35 = vmul.f32 0.75, %v6428_v63 }
 0x643   : > { %15860 = vst [vmem:[#allocation47_spill] sm:$0xff] %v14208_v38  ;;  %v6753_v53 = vld [vmem:[#allocation3 + $0x1c8] sm:$0xff]  ;;  %v14222_v8 = vmul.f32 0.25, %v6754_v36  ;;  %v15865_v59 = vrot.slane %v14208_v38, 2  ;;  %v6523_v47 = vadd.f32 %v14096_v33, %v6461_v2  ;;  %v6555_v14 = vadd.f32 %v6493_v30, %v14094_v60 }
 0x644   : > { %v6894_v62 = vmul.f32 0.25, %v6753_v53  ;;  %v7212_v54 = vrot.slane %v6896_v3, 2  ;;  %v7204_v46 = vsel %vm1350_vm4, %v7202_v44, %v15553_v61  ;;  %v14238_v36 = vadd.f32 %v6896_v3, %v14164_v12  ;;  %15866 = vst [vmem:[#allocation52_spill] sm:$0xff] %v14245_v22 }
 0x645   : > { %15863 = vst [vmem:[#allocation50_spill] sm:$0xff] %v14222_v8  ;;  %v15554_v6 = vrot.slane %v14222_v8, 2  ;;  %v14250_v44 = vadd.f32 %v7204_v46, %v14136_v45  ;;  %v6939_v61 = vadd.f32 %v14194_v39, %v14188_v19  ;;  %v6522_v26 = vadd.f32 %v14120_v50, %v14247_v35  ;;  %6609 = vst.msk [vmem:[#allocation3 + $0x201] sm:$0xff] %vm420_vm1, %v6555_v14 }
 0x646   : > { %v7207_v53 = vrot.slane %v6894_v62, 2  ;;  %v14235_v48 = vadd.f32 %v6894_v62, %v14162_v16  ;;  %v7214_v18 = vsel %vm1350_vm4, %v7212_v54, %v15865_v59  ;;  %v6492_v62 = vmul.f32 0.25, %v6428_v63  ;;  %6611 = vst.msk [vmem:[#allocation3 + $0x219] sm:$0xff] %vm420_vm1, %v6523_v47 }
 0x647   : > { %15867 = vst [vmem:[#allocation53_spill] sm:$0xff] %v14250_v44  ;;  %v14258_v54 = vadd.f32 %v7214_v18, %v14164_v12  ;;  %v10579_v59 = vpack.c.bf16 %v6939_v61, %v6938_v32  ;;  %v6360_v63 = vmul.f32 %v14007_v52, %v13717_v55  ;;  %6685 = vst.msk [vmem:[#allocation3 + $0x202] sm:$0x80] %vm6663_vm5, %v6555_v14  ;;  %v14275_v60 = vmul.f32 0.75, %v6555_v14 }
 0x648   : > { %v7209_v3 = vsel %vm1350_vm4, %v7207_v53, %v15554_v6  ;;  %v6554_v45 = vadd.f32 %v6492_v62, %v14106_v29  ;;  %v6726_v53 = vld [vmem:[#allocation3 + $0xf0] sm:$0xff]  ;;  %6686 = vst.msk [vmem:[#allocation3 + $0x21a] sm:$0x80] %vm6663_vm5, %v6523_v47  ;;  %v6359_v33 = vmul.f32 %v13717_v55, %v14015_v0  ;;  %v6727_v29 = vld [vmem:[#allocation3 + $0xf8] sm:$0xff]  ;;  %v14282_v50 = vmul.f32 0.75, %v6523_v47 }
 0x649   : > { %15868 = vst [vmem:[#allocation54_spill] sm:$0xff] %v14258_v54  ;;  %v14269_v6 = vadd.f32 %v7209_v3, %v14162_v16  ;;  %6610 = vst.msk [vmem:[#allocation3 + $0x211] sm:$0xff] %vm420_vm1, %v6522_v26  ;;  %10581 = vmatprep.subr.msk.bf16.mxu0 %vm14182_vm7, %v10579_v59  ;;  %v6399_v16 = vadd.f32 %v13722_v24, %v6360_v63  ;;  %v6923_v12 = vadd.f32 %v13809_v15, %v13753_v13 }
 0x64a   : > { %6653 = vst.msk [vmem:[#allocation3 + $0x210] sm:$0x1] %vm6630_vm6, %v6522_v26  ;;  %15870 = vst [vmem:[#allocation56_spill] sm:$0xff] %v14282_v50  ;;  %v6362_v18 = vmul.f32 %v14061_v34, %v13717_v55  ;;  %v14293_v32 = vmul.f32 0.75, %v6522_v26  ;;  %v6398_v0 = vadd.f32 %v13722_v24, %v6359_v33  ;;  %v14297_v61 = vmul.f32 0.75, %v13966_v17 }
 0x64b   : > { %15869 = vst [vmem:[#allocation55_spill] sm:$0xff] %v14269_v6  ;;  %6608 = vst.msk [vmem:[#allocation3 + $0x1f9] sm:$0xff] %vm420_vm1, %v6554_v45  ;;  %v14299_v3 = vmul.f32 0.25, %v6726_v53  ;;  %v6431_v47 = vmax.f32 %v6399_v16, 0.0  ;;  %v10582_v14 = vpack.c.bf16 %v6923_v12, %v13836_v25  ;;  %v14303_v63 = vmul.f32 0.25, %v6727_v29 }
 0x64c   : > { %6652 = vst.msk [vmem:[#allocation3 + $0x1f8] sm:$0x1] %vm6630_vm6, %v6554_v45  ;;  %15871 = vst [vmem:[#allocation57_spill] sm:$0xff] %v14293_v32  ;;  %v6401_v59 = vadd.f32 %v13722_v24, %v6362_v18  ;;  %v14305_v46 = vmul.f32 0.75, %v6554_v45  ;;  %v6430_v52 = vmax.f32 %v6398_v0, 0.0  ;;  %v14308_v34 = vmul.f32 0.75, %v13960_v21 }
 0x64d   : > { %v6361_v26 = vmul.f32 %v13717_v55, %v14066_v11  ;;  %v6463_v17 = vmul.f32 0.75, %v6431_v47  ;;  %v6495_v33 = vmul.f32 0.25, %v6431_v47  ;;  %10584 = vmatpush3.bf16.xpose.msk.msra.mxu0 %vm14182_vm7, %v10582_v14  ;;  %v6940_v25 = vadd.f32 %v14299_v3, %v14297_v61 }
 0x64e   : > { %15872 = vst [vmem:[#allocation58_spill] sm:$0xff] %v14308_v34  ;;  %v6433_v53 = vmax.f32 %v6401_v59, 0.0  ;;  %v6462_v29 = vmul.f32 0.75, %v6430_v52  ;;  %v6494_v16 = vmul.f32 0.25, %v6430_v52  ;;  %v6941_v45 = vadd.f32 %v14303_v63, %v14308_v34 }
 0x64f   : > { %v6400_v21 = vadd.f32 %v13722_v24, %v6361_v26  ;;  %v14319_v0 = vadd.f32 %v6493_v30, %v6463_v17  ;;  %v6557_v55 = vadd.f32 %v6495_v33, %v6461_v2 }
 0x650   : > { %v6763_v18 = vld [vmem:[#allocation3 + $0x218] sm:$0xff]  ;;  %v14321_v11 = vmul.f32 0.75, %v6433_v53  ;;  %v14323_v47 = vmul.f32 0.25, %v6433_v53  ;;  %v14327_v52 = vadd.f32 %v6492_v62, %v6462_v29  ;;  %v6556_v44 = vadd.f32 %v6494_v16, %v14247_v35 }
 0x651   : > { %v6762_v12 = vld [vmem:[#allocation3 + $0x210] sm:$0xff]  ;;  %v14325_v6 = vmul.f32 0.25, %v6763_v18  ;;  %6613 = vst.msk [vmem:[#allocation3 + $0x231] sm:$0xff] %vm420_vm1, %v6557_v55  ;;  %6615 = vst.msk [vmem:[#allocation3 + $0x249] sm:$0xff] %vm420_vm1, %v14319_v0  ;;  %v14343_v26 = vmul.f32 0.75, %v6557_v55  ;;  %v6432_v2 = vmax.f32 %v6400_v21, 0.0 }
 0x652   : > { %v6760_v59 = vld [vmem:[#allocation3 + $0x200] sm:$0xff]  ;;  %v6900_v54 = vmul.f32 0.25, %v6762_v12  ;;  %6687 = vst.msk [vmem:[#allocation3 + $0x232] sm:$0x80] %vm6663_vm5, %v6557_v55  ;;  %6688 = vst.msk [vmem:[#allocation3 + $0x24a] sm:$0x80] %vm6663_vm5, %v14319_v0  ;;  %v14339_v30 = vadd.f32 %v6495_v33, %v14321_v11  ;;  %v14357_v55 = vadd.f32 %v14323_v47, %v6463_v17 }
 0x653   : > { %v6759_v14 = vld [vmem:[#allocation3 + $0x1f8] sm:$0xff]  ;;  %v14330_v24 = vmul.f32 0.25, %v6760_v59  ;;  %15873 = vst [vmem:[#allocation59_spill] sm:$0xff] %v14343_v26  ;;  %6612 = vst.msk [vmem:[#allocation3 + $0x229] sm:$0xff] %vm420_vm1, %v6556_v44  ;;  %v10585_v59 = vpack.c.bf16 %v6941_v45, %v6940_v25  ;;  %v6925_v25 = vadd.f32 %v13817_v40, %v13755_v4  ;;  %v6464_v45 = vmul.f32 0.75, %v6432_v2 }
 0x654   : > { %v6898_v22 = vmul.f32 0.25, %v6759_v14  ;;  %v7222_v62 = vrot.slane %v6900_v54, 2  ;;  %6614 = vst.msk [vmem:[#allocation3 + $0x241] sm:$0xff] %vm420_vm1, %v14327_v52  ;;  %v14353_v53 = vadd.f32 %v6900_v54, %v14293_v32  ;;  %6619 = vst.msk [vmem:[#allocation3 + $0x279] sm:$0xff] %vm420_vm1, %v14339_v30  ;;  %v14363_v14 = vmul.f32 0.75, %v6556_v44  ;;  %v6730_v32 = vld [vmem:[#allocation3 + $0x110] sm:$0xff] }
 0x655   : > { %6654 = vst.msk [vmem:[#allocation3 + $0x228] sm:$0x1] %vm6630_vm6, %v6556_v44  ;;  %6655 = vst.msk [vmem:[#allocation3 + $0x240] sm:$0x1] %vm6630_vm6, %v14327_v52  ;;  %v15557_v18 = vrot.slane %v14330_v24, 2  ;;  %10587 = vmatprep.subr.msk.bf16.mxu0 %vm14182_vm7, %v10585_v59  ;;  %v6496_v21 = vmul.f32 0.25, %v6432_v2  ;;  %v14406_v2 = vadd.f32 %v6494_v16, %v6464_v45 }
 0x656   : > { %15874 = vst [vmem:[#allocation60_spill] sm:$0xff] %v14353_v53  ;;  %v7217_v12 = vrot.slane %v6898_v22, 2  ;;  %6690 = vst.msk [vmem:[#allocation3 + $0x27a] sm:$0x80] %vm6663_vm5, %v14339_v30  ;;  %v14368_v54 = vld [vmem:[%s15353_s6] ss:$0 sm:$0xff]  ;;  %v14373_v17 = vadd.f32 %v6898_v22, %v14305_v46 }
 0x657   : > { %15875 = vst [vmem:[#allocation61_spill] sm:$0xff] %v14363_v14  ;;  %v6364_v33 = vmul.f32 %v14368_v54, %v14077_v7  ;;  %6617 = vst.msk [vmem:[#allocation3 + $0x261] sm:$0xff] %vm420_vm1, %v14357_v55  ;;  %v6363_v44 = vmul.f32 %v14368_v54, %v14089_v49  ;;  %v15876_v7 = vrot.slane %v14325_v6, 2  ;;  %v6366_v59 = vmul.f32 %v14368_v54, %v14108_v5 }
 0x658   : > { %v7219_v35 = vsel %vm1350_vm4, %v7217_v12, %v15557_v18  ;;  %6689 = vst.msk [vmem:[#allocation3 + $0x262] sm:$0x80] %vm6663_vm5, %v14357_v55  ;;  %v14396_v12 = vld [vmem:[%s15354_s7] ss:$0 sm:$0xff]  ;;  %v6729_v18 = vld [vmem:[#allocation3 + $0x108] sm:$0xff]  ;;  %v14411_v40 = vmul.f32 0.75, %v14013_v57 }
 0x659   : > { %v14389_v22 = vsel %vm1350_vm4, %v7222_v62, %v15876_v7  ;;  %v6403_v49 = vadd.f32 %v14396_v12, %v6364_v33  ;;  %v14400_v26 = vadd.f32 %v7219_v35, %v14305_v46  ;;  %v6402_v62 = vadd.f32 %v14396_v12, %v6363_v44  ;;  %6618 = vst.msk [vmem:[#allocation3 + $0x271] sm:$0xff] %vm420_vm1, %v14406_v2 }
 0x65a   : > { %15877 = vst [vmem:[#allocation62_spill] sm:$0xff] %v14389_v22  ;;  %v10588_v7 = vpack.c.bf16 %v6925_v25, %v13848_v42  ;;  %v14408_v22 = vadd.f32 %v6496_v21, %v6462_v29  ;;  %v6766_v53 = vld [vmem:[#allocation3 + $0x230] sm:$0xff]  ;;  %v6405_v46 = vadd.f32 %v14396_v12, %v6366_v59  ;;  %v14416_v42 = vmul.f32 0.25, %v6729_v18  ;;  %6657 = vst.msk [vmem:[#allocation3 + $0x270] sm:$0x1] %vm6630_vm6, %v14406_v2 }
 0x65b   : > { %15878 = vst [vmem:[#allocation63_spill] sm:$0xff] %v14400_v26  ;;  %v6435_v4 = vmax.f32 %v6403_v49, 0.0  ;;  %v6434_v34 = vmax.f32 %v6402_v62, 0.0  ;;  %v14418_v35 = vmul.f32 0.25, %v6730_v32  ;;  %v14420_v16 = vmul.f32 0.25, %v6766_v53 }
 0x65c   : > { %v6765_v33 = vld [vmem:[#allocation3 + $0x228] sm:$0xff]  ;;  %10590 = vmatpush3.bf16.xpose.msk.msra.mxu0 %vm14182_vm7, %v10588_v7  ;;  %6616 = vst.msk [vmem:[#allocation3 + $0x259] sm:$0xff] %vm420_vm1, %v14408_v22  ;;  %v6437_v53 = vmax.f32 %v6405_v46, 0.0  ;;  %v14435_v44 = vmul.f32 0.75, %v13982_v28  ;;  %v6942_v7 = vadd.f32 %v14416_v42, %v14411_v40 }
 0x65d   : > { %v6902_v5 = vmul.f32 0.25, %v6765_v33  ;;  %15879 = vst [vmem:[#allocation64_spill] sm:$0xff] %v14420_v16  ;;  %6656 = vst.msk [vmem:[#allocation3 + $0x258] sm:$0x1] %vm6630_vm6, %v14408_v22  ;;  %v6467_v57 = vmul.f32 0.75, %v6435_v4  ;;  %v6499_v29 = vmul.f32 0.25, %v6435_v4 }
 0x65e   : > { %v14430_v18 = vmul.f32 0.75, %v6434_v34  ;;  %v14432_v32 = vmul.f32 0.25, %v6434_v34  ;;  %15880 = vst [vmem:[#allocation65_spill] sm:$0xff] %v14435_v44  ;;  %v15564_v49 = vrot.slane %v14420_v16, 2  ;;  %v6469_v28 = vmul.f32 0.75, %v6437_v53 }
 0x65f   : > { %v7227_v25 = vrot.slane %v6902_v5, 2  ;;  %v14439_v62 = vadd.f32 %v14323_v47, %v6467_v57  ;;  %v14444_v59 = vadd.f32 %v6499_v29, %v14321_v11  ;;  %v14453_v33 = vadd.f32 %v6902_v5, %v14363_v14 }
 0x660   : > { %v14447_v4 = vadd.f32 %v6496_v21, %v14430_v18  ;;  %v14450_v34 = vadd.f32 %v14432_v32, %v6464_v45  ;;  %v6533_v11 = vmul.f32 0.25, %v6437_v53  ;;  %v6943_v45 = vadd.f32 %v14418_v35, %v14435_v44  ;;  %v6732_v21 = vld [vmem:[#allocation3 + $0x120] sm:$0xff] }
 0x661   : > { %15881 = vst [vmem:[#allocation66_spill] sm:$0xff] %v14453_v33  ;;  %v14458_v47 = vsel %vm1350_vm4, %v7227_v25, %v15564_v49  ;;  %6623 = vst.msk [vmem:[#allocation3 + $0x2a9] sm:$0xff] %vm420_vm1, %v14439_v62  ;;  %v14478_v46 = vadd.f32 %v6499_v29, %v6469_v28  ;;  %v6365_v25 = vmul.f32 %v14368_v54, %v14112_v51  ;;  %v6733_v49 = vld [vmem:[#allocation3 + $0x128] sm:$0xff]  ;;  %v6768_v44 = vld [vmem:[#allocation3 + $0x240] sm:$0xff]  ;;  %v14496_v51 = vmul.f32 0.75, %v14011_v23 }
 0x662   : > { %15882 = vst [vmem:[#allocation67_spill] sm:$0xff] %v14458_v47  ;;  %6692 = vst.msk [vmem:[#allocation3 + $0x2aa] sm:$0x80] %vm6663_vm5, %v14439_v62  ;;  %v14484_v47 = vadd.f32 %v6533_v11, %v6467_v57  ;;  %v14486_v14 = vadd.f32 %v6533_v11, %v6469_v28  ;;  %v10591_v26 = vpack.c.bf16 %v6943_v45, %v6942_v7  ;;  %v14499_v54 = vmul.f32 0.75, %v13980_v9  ;;  %v6769_v7 = vld [vmem:[#allocation3 + $0x248] sm:$0xff] }
 0x663   : > { %6621 = vst.msk [vmem:[#allocation3 + $0x291] sm:$0xff] %vm420_vm1, %v14444_v59  ;;  %6620 = vst.msk [vmem:[#allocation3 + $0x289] sm:$0xff] %vm420_vm1, %v14450_v34  ;;  %v6927_v33 = vadd.f32 %v13843_v20, %v13777_v37  ;;  %v6404_v29 = vadd.f32 %v14396_v12, %v6365_v25  ;;  %v14501_v57 = vmul.f32 0.25, %v6732_v21  ;;  %v14514_v9 = vmul.f32 0.25, %v6733_v49  ;;  %v6735_v21 = vld [vmem:[#allocation3 + $0x138] sm:$0xff] }
 0x664   : > { %6691 = vst.msk [vmem:[#allocation3 + $0x292] sm:$0x80] %vm6663_vm5, %v14444_v59  ;;  %6694 = vst.msk [vmem:[#allocation3 + $0x2da] sm:$0x80] %vm6663_vm5, %v14478_v46  ;;  %10593 = vmatprep.subr.msk.bf16.mxu0 %vm14182_vm7, %v10591_v26  ;;  %v14517_v12 = vmul.f32 0.75, %v14327_v52  ;;  %v14520_v28 = vmul.f32 0.75, %v14319_v0  ;;  %v6929_v0 = vadd.f32 %v13856_v41, %v13779_v58 }
 0x665   : > { %6622 = vst.msk [vmem:[#allocation3 + $0x2a1] sm:$0xff] %vm420_vm1, %v14447_v4  ;;  %6627 = vst.msk [vmem:[#allocation3 + $0x2d9] sm:$0xff] %vm420_vm1, %v14478_v46  ;;  %v10594_v23 = vpack.c.bf16 %v6927_v33, %v13866_v27  ;;  %v6436_v11 = vmax.f32 %v6404_v29, 0.0  ;;  %v6944_v45 = vadd.f32 %v14501_v57, %v14496_v51  ;;  %v14525_v25 = vmul.f32 0.25, %v6768_v44  ;;  %v6736_v52 = vld [vmem:[#allocation3 + $0x140] sm:$0xff]  ;;  %v15889_v41 = vld [vmem:[#allocation25_spill] sm:$0xff] }
 0x666   : > { %6658 = vst.msk [vmem:[#allocation3 + $0x288] sm:$0x1] %vm6630_vm6, %v14450_v34  ;;  %6659 = vst.msk [vmem:[#allocation3 + $0x2a0] sm:$0x1] %vm6630_vm6, %v14447_v4  ;;  %v6945_v27 = vadd.f32 %v14514_v9, %v14499_v54  ;;  %v14532_v26 = vmul.f32 0.25, %v6769_v7  ;;  %v10600_v7 = vpack.c.bf16 %v6929_v0, %v13869_v1  ;;  %v6953_v44 = vadd.f32 %v14177_v10, %v15889_v41  ;;  %v15892_v0 = vld [vmem:[#allocation12_spill] sm:$0xff] }
 0x667   : > { %15883 = vst [vmem:[#allocation68_spill] sm:$0xff] %v14496_v51  ;;  %15884 = vst [vmem:[#allocation69_spill] sm:$0xff] %v14499_v54  ;;  %10596 = vmatpush3.bf16.xpose.msk.msra.mxu0 %vm14182_vm7, %v10594_v23  ;;  %v6468_v49 = vmul.f32 0.75, %v6436_v11  ;;  %v6532_v33 = vmul.f32 0.25, %v6436_v11  ;;  %v6968_v29 = vadd.f32 %v14525_v25, %v14517_v12  ;;  %v6738_v10 = vld [vmem:[#allocation3 + $0x150] sm:$0xff] }
 0x668   : > { %6625 = vst.msk [vmem:[#allocation3 + $0x2c1] sm:$0xff] %vm420_vm1, %v14484_v47  ;;  %6629 = vst.msk [vmem:[#allocation3 + $0x2f1] sm:$0xff] %vm420_vm1, %v14486_v14  ;;  %v10597_v5 = vpack.c.bf16 %v6945_v27, %v6944_v45  ;;  %v6969_v23 = vadd.f32 %v14532_v26, %v14520_v28  ;;  %v6771_v45 = vld [vmem:[#allocation3 + $0x258] sm:$0xff]  ;;  %v6772_v27 = vld [vmem:[#allocation3 + $0x260] sm:$0xff]  ;;  %v14618_v51 = vmul.f32 0.25, %v6738_v10 }
 0x669   : > { %6693 = vst.msk [vmem:[#allocation3 + $0x2c2] sm:$0x80] %vm6663_vm5, %v14484_v47  ;;  %6695 = vst.msk [vmem:[#allocation3 + $0x2f2] sm:$0x80] %vm6663_vm5, %v14486_v14  ;;  %v14544_v54 = vadd.f32 %v14432_v32, %v6468_v49  ;;  %v14547_v11 = vadd.f32 %v6532_v33, %v14430_v18  ;;  %v14549_v58 = vadd.f32 %v6532_v33, %v6468_v49  ;;  %v14559_v32 = vmul.f32 0.75, %v15892_v0  ;;  %v15895_v18 = vld [vmem:[#allocation44_spill] sm:$0xff] }
 0x66a   : > { %15885 = vst [vmem:[#allocation70_spill] sm:$0xff] %v14517_v12  ;;  %15886 = vst [vmem:[#allocation71_spill] sm:$0xff] %v14520_v28  ;;  %10599 = vmatprep.subr.msk.bf16.mxu0 %vm14182_vm7, %v10597_v5  ;;  %v10621_v53 = vpack.c.bf16 %v6969_v23, %v6968_v29  ;;  %v15890_v28 = vld [vmem:[#allocation14_spill] sm:$0xff]  ;;  %v14561_v12 = vmul.f32 0.25, %v6735_v21  ;;  %v10624_v5 = vpack.c.bf16 %v6953_v44, %v15895_v18  ;;  %v14579_v21 = vmul.f32 0.75, %v14408_v22  ;;  %v15900_v44 = vld [vmem:[#allocation24_spill] sm:$0xff] }
 0x66b   : > { %15887 = vst [vmem:[#allocation72_spill] sm:$0xff] %v14525_v25  ;;  %15888 = vst [vmem:[#allocation73_spill] sm:$0xff] %v14532_v26  ;;  %v14556_v1 = vmul.f32 0.75, %v15890_v28  ;;  %v14576_v28 = vmul.f32 0.25, %v6736_v52  ;;  %v14582_v49 = vmul.f32 0.75, %v14357_v55  ;;  %v14589_v23 = vmul.f32 0.25, %v6771_v45 }
 0x66c   : > { %15893 = vst [vmem:[#allocation12_spill] sm:$0xff] %v14559_v32  ;;  %15894 = vst [vmem:[#allocation74_spill] sm:$0xff] %v14561_v12  ;;  %10623 = vmatprep.subr.msk.bf16.mxu1 %vm14182_vm7, %v10621_v53  ;;  %v14591_v0 = vmul.f32 0.25, %v6772_v27  ;;  %v15899_v52 = vld [vmem:[#allocation36_spill] sm:$0xff]  ;;  %v15901_v18 = vld [vmem:[#allocation31_spill] sm:$0xff] }
 0x66d   : > { %15891 = vst [vmem:[#allocation14_spill] sm:$0xff] %v14556_v1  ;;  %6624 = vst.msk [vmem:[#allocation3 + $0x2b9] sm:$0xff] %vm420_vm1, %v14547_v11  ;;  %v6946_v33 = vadd.f32 %v14561_v12, %v14556_v1  ;;  %10626 = vmatpush3.bf16.xpose.msk.msra.mxu1 %vm14182_vm7, %v10624_v5  ;;  %v6947_v22 = vadd.f32 %v14576_v28, %v14559_v32  ;;  %v6931_v53 = vadd.f32 %v15900_v44, %v15899_v52  ;;  %v6739_v29 = vld [vmem:[#allocation3 + $0x158] sm:$0xff]  ;;  %v6774_v32 = vld [vmem:[#allocation3 + $0x270] sm:$0xff] }
 0x66e   : > { %6626 = vst.msk [vmem:[#allocation3 + $0x2d1] sm:$0xff] %vm420_vm1, %v14544_v54  ;;  %6628 = vst.msk [vmem:[#allocation3 + $0x2e9] sm:$0xff] %vm420_vm1, %v14549_v58  ;;  %v6955_v41 = vadd.f32 %v14199_v31, %v15901_v18  ;;  %v6970_v45 = vadd.f32 %v14589_v23, %v14579_v21  ;;  %v6971_v27 = vadd.f32 %v14591_v0, %v14582_v49  ;;  %v6775_v52 = vld [vmem:[#allocation3 + $0x278] sm:$0xff]  ;;  %v15902_v1 = vld [vmem:[#allocation5_spill] sm:$0xff] }
 0x66f   : > { %6660 = vst.msk [vmem:[#allocation3 + $0x2b8] sm:$0x1] %vm6630_vm6, %v14547_v11  ;;  %6661 = vst.msk [vmem:[#allocation3 + $0x2d0] sm:$0x1] %vm6630_vm6, %v14544_v54  ;;  %10602 = vmatpush3.bf16.xpose.msk.msra.mxu0 %vm14182_vm7, %v10600_v7  ;;  %v10603_v44 = vpack.c.bf16 %v6947_v22, %v6946_v33  ;;  %v10606_v18 = vpack.c.bf16 %v6931_v53, %v15902_v1  ;;  %v15903_v31 = vld [vmem:[#allocation49_spill] sm:$0xff]  ;;  %v15906_v26 = vld [vmem:[#allocation11_spill] sm:$0xff] }
 0x670   : > { %6662 = vst.msk [vmem:[#allocation3 + $0x2e8] sm:$0x1] %vm6630_vm6, %v14549_v58  ;;  %15896 = vst [vmem:[#allocation44_spill] sm:$0xff] %v14576_v28  ;;  %v10630_v12 = vpack.c.bf16 %v6955_v41, %v15903_v31  ;;  %v15904_v28 = vld [vmem:[#allocation13_spill] sm:$0xff]  ;;  %v10627_v7 = vpack.c.bf16 %v6971_v27, %v6970_v45  ;;  %v14625_v33 = vmul.f32 0.75, %v14406_v2  ;;  %v14628_v1 = vmul.f32 0.75, %v14339_v30 }
 0x671   : > { %15897 = vst [vmem:[#allocation75_spill] sm:$0xff] %v14579_v21  ;;  %15898 = vst [vmem:[#allocation76_spill] sm:$0xff] %v14582_v49  ;;  %v14613_v25 = vmul.f32 0.75, %v15904_v28  ;;  %v14616_v21 = vmul.f32 0.75, %v15906_v26  ;;  %v14620_v49 = vmul.f32 0.25, %v6739_v29  ;;  %10605 = vmatprep.subr.msk.bf16.mxu0 %vm14182_vm7, %v10603_v44  ;;  %v14630_v41 = vmul.f32 0.25, %v6774_v32 }
 0x672   : > { %15908 = vst [vmem:[#allocation13_spill] sm:$0xff] %v14625_v33  ;;  %15909 = vst [vmem:[#allocation11_spill] sm:$0xff] %v14628_v1  ;;  %v14632_v31 = vmul.f32 0.25, %v6775_v52  ;;  %10629 = vmatprep.subr.msk.bf16.mxu1 %vm14182_vm7, %v10627_v7  ;;  %v6741_v29 = vld [vmem:[#allocation3 + $0x168] sm:$0xff]  ;;  %v6742_v30 = vld [vmem:[#allocation3 + $0x170] sm:$0xff] }
 0x673   : > { %15905 = vst [vmem:[#allocation5_spill] sm:$0xff] %v14613_v25  ;;  %15907 = vst [vmem:[#allocation49_spill] sm:$0xff] %v14616_v21  ;;  %v6948_v10 = vadd.f32 %v14618_v51, %v14613_v25  ;;  %v6949_v26 = vadd.f32 %v14620_v49, %v14616_v21  ;;  %v6972_v32 = vadd.f32 %v14630_v41, %v14625_v33  ;;  %v15910_v45 = vld [vmem:[#allocation7_spill] sm:$0xff]  ;;  %v15911_v27 = vld [vmem:[#allocation34_spill] sm:$0xff]  ;;  %v14660_v52 = vmul.f32 0.25, %v6741_v29 }
 0x674   : > { %v6973_v22 = vadd.f32 %v14632_v31, %v14628_v1  ;;  %v6933_v7 = vadd.f32 %v15911_v27, %v15910_v45  ;;  %v15912_v5 = vld [vmem:[#allocation32_spill] sm:$0xff]  ;;  %v15913_v28 = vld [vmem:[#allocation46_spill] sm:$0xff]  ;;  %v15914_v2 = vld [vmem:[#allocation21_spill] sm:$0xff]  ;;  %v14662_v44 = vmul.f32 0.25, %v6742_v30  ;;  %v14669_v27 = vmul.f32 0.75, %v14450_v34 }
 0x675   : > { %v10609_v53 = vpack.c.bf16 %v6949_v26, %v6948_v10  ;;  %v6957_v55 = vadd.f32 %v15913_v28, %v15912_v5  ;;  %v14653_v21 = vmul.f32 0.75, %v15914_v2  ;;  %10632 = vmatpush3.bf16.xpose.msk.msra.mxu1 %vm14182_vm7, %v10630_v12  ;;  %v15916_v25 = vld [vmem:[#allocation17_spill] sm:$0xff]  ;;  %15918 = vst [vmem:[#allocation77_spill] sm:$0xff] %v14660_v52  ;;  %v6778_v26 = vld [vmem:[#allocation3 + $0x290] sm:$0xff]  ;;  %v15920_v2 = vld [vmem:[#allocation51_spill] sm:$0xff]  ;;  %v14672_v12 = vmul.f32 0.75, %v14444_v59 }
 0x676   : > { %v10633_v33 = vpack.c.bf16 %v6973_v22, %v6972_v32  ;;  %v14658_v1 = vmul.f32 0.75, %v15916_v25  ;;  %v6777_v10 = vld [vmem:[#allocation3 + $0x288] sm:$0xff]  ;;  %v15919_v5 = vld [vmem:[#allocation6_spill] sm:$0xff]  ;;  %v6780_v25 = vld [vmem:[#allocation3 + $0x2a0] sm:$0xff]  ;;  %v14686_v59 = vmul.f32 0.25, %v6778_v26 }
 0x677   : > { %15915 = vst [vmem:[#allocation21_spill] sm:$0xff] %v14653_v21  ;;  %10608 = vmatpush3.bf16.xpose.msk.msra.mxu0 %vm14182_vm7, %v10606_v18  ;;  %v10612_v28 = vpack.c.bf16 %v6933_v7, %v15919_v5  ;;  %v10636_v45 = vpack.c.bf16 %v6957_v55, %v15920_v2  ;;  %15921 = vst [vmem:[#allocation6_spill] sm:$0xff] %v14669_v27  ;;  %v6950_v18 = vadd.f32 %v14660_v52, %v14653_v21  ;;  %v15925_v30 = vld [vmem:[#allocation16_spill] sm:$0xff]  ;;  %v15926_v32 = vld [vmem:[#allocation10_spill] sm:$0xff] }
 0x678   : > { %15917 = vst [vmem:[#allocation17_spill] sm:$0xff] %v14658_v1  ;;  %15922 = vst [vmem:[#allocation51_spill] sm:$0xff] %v14672_v12  ;;  %10611 = vmatprep.subr.msk.bf16.mxu0 %vm14182_vm7, %v10609_v53  ;;  %10635 = vmatprep.subr.msk.bf16.mxu1 %vm14182_vm7, %v10633_v33  ;;  %v6951_v5 = vadd.f32 %v14662_v44, %v14658_v1  ;;  %v14684_v29 = vmul.f32 0.25, %v6777_v10  ;;  %v14690_v22 = vadd.f32 %v15926_v32, %v15925_v30  ;;  %v15927_v53 = vld [vmem:[#allocation33_spill] sm:$0xff]  ;;  %v6722_v26 = vld [vmem:[#allocation3 + $0xd0] sm:$0x3] }
 0x679   : > { %15924 = vst [vmem:[#allocation79_spill] sm:$0xff] %v14686_v59  ;;  %v14694_v33 = vadd.f32 %v14222_v8, %v15927_v53  ;;  %v6781_v7 = vld [vmem:[#allocation3 + $0x2a8] sm:$0xff]  ;;  %v14697_v1 = vmul.f32 0.75, %v14447_v4  ;;  %v14700_v55 = vmul.f32 0.75, %v14439_v62  ;;  %v14702_v10 = vmul.f32 0.25, %v6780_v25  ;;  %v15930_v52 = vld [vmem:[#allocation40_spill] sm:$0xff] }
 0x67a   : > { %15923 = vst [vmem:[#allocation78_spill] sm:$0xff] %v14684_v29  ;;  %v10615_v2 = vpack.c.bf16 %v6951_v5, %v6950_v18  ;;  %v6974_v34 = vadd.f32 %v14684_v29, %v14669_v27  ;;  %v6975_v30 = vadd.f32 %v14686_v59, %v14672_v12  ;;  %v15929_v18 = vld [vmem:[#allocation18_spill] sm:$0xff]  ;;  %v14714_v5 = vmul.f32 0.25, %v6781_v7  ;;  %v15932_v29 = vld [vmem:[#allocation37_spill] sm:$0xff]  ;;  %v15935_v7 = vld [vmem:[#allocation35_spill] sm:$0xff] }
 0x67b   : > { %15928 = vst [vmem:[#allocation80_spill] sm:$0xff] %v14700_v55  ;;  %v10618_v4 = vpack.c.bf16 %v14690_v22, %v15929_v18  ;;  %v10642_v62 = vpack.c.bf16 %v14694_v33, %v14235_v48  ;;  %v6976_v25 = vadd.f32 %v14702_v10, %v14697_v1  ;;  %v6698_v32 = vld [vmem:[#allocation3 + $0x10] sm:$0x3]  ;;  %v6992_v12 = vmul.f32 0.25, %v6722_v26  ;;  %v6783_v22 = vld [vmem:[#allocation3 + $0x2b8] sm:$0xff]  ;;  %v6784_v18 = vld [vmem:[#allocation3 + $0x2c0] sm:$0xff] }
 0x67c   : > { %v10639_v27 = vpack.c.bf16 %v6975_v30, %v6974_v34  ;;  %v15931_v53 = vrot.slane %v15930_v52, 2  ;;  %v15933_v8 = vrot.slane %v15932_v29, 2  ;;  %v6977_v48 = vadd.f32 %v14714_v5, %v14700_v55  ;;  %v15934_v34 = vld [vmem:[#allocation30_spill] sm:$0xff]  ;;  %v6725_v21 = vld [vmem:[#allocation3 + $0xe8] sm:$0x3] }
 0x67d   : > { %10638 = vmatpush3.bf16.xpose.msk.msra.mxu1 %vm14182_vm7, %v10636_v45  ;;  %v14732_v26 = vadd.f32 %v14208_v38, %v15935_v7  ;;  %v6984_v45 = vmul.f32 0.25, %v6698_v32  ;;  %v14739_v29 = vmul.f32 0.75, %v14547_v11  ;;  %v14748_v33 = vmul.f32 0.25, %v6783_v22  ;;  %v6728_v55 = vld [vmem:[#allocation3 + $0x100] sm:$0x3] }
 0x67e   : > { %v7154_v59 = vsel %vm1350_vm4, %v15933_v8, %v15931_v53  ;;  %10641 = vmatprep.subr.msk.bf16.mxu1 %vm14182_vm7, %v10639_v27  ;;  %v7155_v8 = vrot.slane %v6992_v12, 2  ;;  %v14742_v53 = vmul.f32 0.75, %v14484_v47  ;;  %v15938_v27 = vrot.slane %v15930_v52, 2 }
 0x67f   : > { %v7352_v30 = vadd.f32 %v7154_v59, %v15934_v34  ;;  %10614 = vmatpush3.bf16.xpose.msk.msra.mxu0 %vm14182_vm7, %v10612_v28  ;;  %15936 = vst [vmem:[#allocation18_spill] sm:$0xff] %v14739_v29  ;;  %v10645_v59 = vpack.c.bf16 %v6977_v48, %v6976_v25  ;;  %v14750_v28 = vmul.f32 0.25, %v6784_v18  ;;  %v7115_v11 = vrot.slane %v6984_v45, 2  ;;  %v15941_v25 = vld [vmem:[#allocation39_spill] sm:$0xff] }
 0x680   : > { %15937 = vst [vmem:[#allocation40_spill] sm:$0xff] %v14742_v53  ;;  %10617 = vmatprep.subr.msk.bf16.mxu0 %vm14182_vm7, %v10615_v2  ;;  %v7156_v12 = vsel %vm1350_vm4, %v15938_v27, %v7155_v8  ;;  %v6993_v32 = vmul.f32 0.25, %v6725_v21  ;;  %v15939_v47 = vrot.slane %v14194_v39, 2  ;;  %v15940_v7 = vrot.slane %v14190_v43, 2  ;;  %v6701_v8 = vld [vmem:[#allocation3 + $0x28] sm:$0x3] }
 0x681   : > { %v7353_v48 = vadd.f32 %v7156_v12, %v15941_v25  ;;  %v14763_v22 = vadd.f32 %v14748_v33, %v14739_v29  ;;  %v14767_v18 = vadd.f32 %v14750_v28, %v14742_v53  ;;  %v15942_v21 = vld [vmem:[#allocation26_spill] sm:$0xff]  ;;  %v15945_v29 = vld [vmem:[#allocation4_spill] sm:$0xff]  ;;  %v14782_v52 = vadd.f32 %v14330_v24, %v14275_v60 }
 0x682   : > { %v7159_v2 = vsel %vm1350_vm4, %v15940_v7, %v15939_v47  ;;  %v15943_v45 = vrot.slane %v15942_v21, 2  ;;  %v7160_v7 = vrot.slane %v6993_v32, 2  ;;  %v15944_v47 = vld [vmem:[#allocation42_spill] sm:$0xff]  ;;  %v6787_v21 = vld [vmem:[#allocation3 + $0x2d8] sm:$0xff] }
 0x683   : > { %v14775_v12 = vadd.f32 %v7159_v2, %v15944_v47  ;;  %v6786_v25 = vld [vmem:[#allocation3 + $0x2d0] sm:$0xff]  ;;  %v10669_v34 = vpack.c.bf16 %v7353_v48, %v7352_v30  ;;  %v10651_v53 = vpack.c.bf16 %v14767_v18, %v14763_v22  ;;  %v14788_v2 = vmul.f32 0.75, %v14544_v54  ;;  %v6789_v47 = vld [vmem:[#allocation3 + $0x2e8] sm:$0xff] }
 0x684   : > { %v7116_v27 = vsel %vm1350_vm4, %v15943_v45, %v7115_v11  ;;  %v15946_v11 = vrot.slane %v14194_v39, 2  ;;  %v6985_v45 = vmul.f32 0.25, %v6701_v8  ;;  %v14791_v30 = vmul.f32 0.75, %v14478_v46  ;;  %v6746_v18 = vld [vmem:[#allocation3 + $0x190] sm:$0x3] }
 0x685   : > { %v7337_v38 = vadd.f32 %v7116_v27, %v15945_v29  ;;  %10644 = vmatpush3.bf16.xpose.msk.msra.mxu1 %vm14182_vm7, %v10642_v62  ;;  %v15947_v29 = vld [vmem:[#allocation28_spill] sm:$0xff]  ;;  %v14799_v39 = vmul.f32 0.25, %v6786_v25  ;;  %v14805_v54 = vmul.f32 0.25, %v6787_v21  ;;  %v6994_v8 = vmul.f32 0.25, %v6728_v55 }
 0x686   : > { %v7161_v32 = vsel %vm1350_vm4, %v15946_v11, %v7160_v7  ;;  %10647 = vmatprep.subr.msk.bf16.mxu1 %vm14182_vm7, %v10645_v59  ;;  %v7120_v46 = vrot.slane %v6985_v45, 2  ;;  %v15948_v62 = vrot.slane %v14303_v63, 2  ;;  %v6704_v27 = vld [vmem:[#allocation3 + $0x40] sm:$0x3]  ;;  %v6790_v45 = vld [vmem:[#allocation3 + $0x2f0] sm:$0xff] }
 0x687   : > { %v10672_v48 = vpack.c.bf16 %v7337_v38, %v15947_v29  ;;  %v7355_v22 = vadd.f32 %v7161_v32, %v14188_v19  ;;  %10620 = vmatpush3.bf16.xpose.msk.msra.mxu0 %vm14182_vm7, %v10618_v4  ;;  %v15949_v38 = vrot.slane %v14299_v3, 2  ;;  %v14817_v4 = vadd.f32 %v14799_v39, %v14788_v2  ;;  %v6731_v29 = vld [vmem:[#allocation3 + $0x118] sm:$0x3] }
 0x688   : > { %10671 = vmatprep.subr.msk.bf16.mxu0 %vm14182_vm7, %v10669_v34  ;;  %v15950_v3 = vrot.slane %v13809_v15, 2  ;;  %v14828_v21 = vadd.f32 %v14805_v54, %v14791_v30  ;;  %v14836_v32 = vadd.f32 %v14325_v6, %v14282_v50  ;;  %v14839_v15 = vmul.f32 0.75, %v14549_v58 }
 0x689   : > { %v7164_v19 = vsel %vm1350_vm4, %v15949_v38, %v15948_v62  ;;  %v10675_v7 = vpack.c.bf16 %v7355_v22, %v14775_v12  ;;  %v7165_v12 = vrot.slane %v6994_v8, 2  ;;  %v6707_v38 = vld [vmem:[#allocation3 + $0x58] sm:$0x3]  ;;  %v14858_v43 = vmul.f32 0.25, %v6790_v45 }
 0x68a   : > { %v14821_v55 = vadd.f32 %v7164_v19, %v14297_v61  ;;  %v7121_v25 = vsel %vm1350_vm4, %v15950_v3, %v7120_v46  ;;  %v6986_v61 = vmul.f32 0.25, %v6704_v27  ;;  %v15951_v46 = vmov %v15948_v62  ;;  %v15953_v19 = vld [vmem:[#allocation20_spill] sm:$0xff]  ;;  %v15954_v3 = vld [vmem:[#allocation58_spill] sm:$0xff] }
 0x68b   : > { %v14832_v11 = vadd.f32 %v7121_v25, %v13753_v13  ;;  %v7166_v8 = vsel %vm1350_vm4, %v15951_v46, %v7165_v12  ;;  %v14847_v13 = vmul.f32 0.75, %v14486_v14  ;;  %v14849_v62 = vmul.f32 0.25, %v6789_v47  ;;  %v15955_v25 = vld [vmem:[#allocation60_spill] sm:$0xff]  ;;  %v6734_v12 = vld [vmem:[#allocation3 + $0x130] sm:$0x3]  ;;  %v15957_v46 = vld [vmem:[#allocation29_spill] sm:$0xff] }
 0x68c   : > { %v14854_v58 = vadd.f32 %v7166_v8, %v15954_v3  ;;  %v7125_v34 = vrot.slane %v6986_v61, 2  ;;  %v6995_v47 = vmul.f32 0.25, %v6731_v29  ;;  %v15956_v61 = vpack.c.bf16 %v14732_v26, %v14238_v36  ;;  %v15961_v36 = vld [vmem:[#allocation15_spill] sm:$0xff] }
 0x68d   : > { %15952 = vst [vmem:[#allocation37_spill] sm:$0xff] %v14847_v13  ;;  %v10678_v27 = vpack.c.bf16 %v14832_v11, %v15953_v19  ;;  %v14862_v63 = vadd.f32 %v14849_v62, %v14839_v15  ;;  %v14868_v11 = vld [vmem:[%s15355_s8] sm:$0xff]  ;;  %v15958_v29 = vrot.slane %v15957_v46, 2  ;;  %v15959_v19 = vrot.slane %v14418_v35, 2 }
 0x68e   : > { %9570 = vmatmul.mubr.msk.f32.vlgmr.msra.gmra.mrb[32].mxu0 %vm420_vm1, %v14868_v11  ;;  %10650 = vmatpush3.bf16.xpose.msk.msra.mxu1 %vm14182_vm7, %v15956_v61  ;;  %v10681_v45 = vpack.c.bf16 %v14854_v58, %v14821_v55  ;;  %v15960_v3 = vrot.slane %v14416_v42, 2  ;;  %v6987_v59 = vmul.f32 0.25, %v6707_v38  ;;  %v14896_v55 = vadd.f32 %v14858_v43, %v14847_v13  ;;  %v6770_v46 = vld [vmem:[#allocation3 + $0x250] sm:$0x3]  ;;  %v6773_v13 = vld [vmem:[#allocation3 + $0x268] sm:$0x3] }
 0x68f   : > { %v7126_v8 = vsel %vm1350_vm4, %v15958_v29, %v7125_v34  ;;  %10674 = vmatpush3.bf16.xpose.msk.msra.mxu0 %vm14182_vm7, %v10672_v48  ;;  %10653 = vmatprep.subr.msk.bf16.mxu1 %vm14182_vm7, %v10651_v53  ;;  %v7170_v58 = vrot.slane %v6995_v47, 2  ;;  %v15962_v48 = vld [vmem:[#allocation59_spill] sm:$0xff]  ;;  %v6996_v61 = vmul.f32 0.25, %v6734_v12  ;;  %v6710_v12 = vld [vmem:[#allocation3 + $0x70] sm:$0x3]  ;;  %v15969_v22 = vrot.slane %v13843_v20, 2 }
 0x690   : > { %v7169_v14 = vsel %vm1350_vm4, %v15960_v3, %v15959_v19  ;;  %v14892_v26 = vadd.f32 %v7126_v8, %v15961_v36  ;;  %10677 = vmatprep.subr.msk.bf16.mxu0 %vm14182_vm7, %v10675_v7  ;;  %v14906_v38 = vadd.f32 %v14420_v16, %v15962_v48  ;;  %v7130_v53 = vrot.slane %v6987_v59, 2  ;;  %9637 = vmatprep.mubr.msk.f32.mxu0 %vm420_vm1, %v14868_v11  ;;  %v15963_v29 = vld [vmem:[#allocation23_spill] sm:$0xff]  ;;  %v15967_v3 = vld [vmem:[#allocation65_spill] sm:$0xff]  ;;  %v15968_v34 = vld [vmem:[#allocation66_spill] sm:$0xff] }
 0x691   : > { %v14902_v42 = vadd.f32 %v7169_v14, %v14411_v40  ;;  %v15964_v7 = vmov %v15959_v19  ;;  %v15965_v14 = vrot.slane %v14514_v9, 2  ;;  %v15966_v19 = vrot.slane %v14501_v57, 2  ;;  %v6737_v8 = vld [vmem:[#allocation3 + $0x148] sm:$0x3] }
 0x692   : > { %v7171_v40 = vsel %vm1350_vm4, %v15964_v7, %v7170_v58  ;;  %v7131_v47 = vsel %vm1350_vm4, %v15969_v22, %v7130_v53  ;;  %v7175_v35 = vrot.slane %v6996_v61, 2  ;;  %v15970_v7 = vld [vmem:[#allocation68_spill] sm:$0xff]  ;;  %v15975_v22 = vrot.slane %v14514_v9, 2  ;;  %v15976_v53 = vld [vmem:[#allocation70_spill] sm:$0xff] }
 0x693   : > { %v7174_v59 = vsel %vm1350_vm4, %v15966_v19, %v15965_v14  ;;  %v14923_v36 = vadd.f32 %v7171_v40, %v15967_v3  ;;  %v14931_v58 = vadd.f32 %v7131_v47, %v13777_v37  ;;  %v7008_v14 = vmul.f32 0.25, %v6770_v46  ;;  %v15971_v19 = vld [vmem:[#allocation73_spill] sm:$0xff]  ;;  %v15973_v40 = vld [vmem:[#allocation72_spill] sm:$0xff]  ;;  %v15977_v46 = vld [vmem:[#allocation38_spill] sm:$0xff] }
 0x694   : > { %v14934_v57 = vadd.f32 %v7174_v59, %v15970_v7  ;;  %v15972_v48 = vrot.slane %v15971_v19, 2  ;;  %v15974_v3 = vrot.slane %v15973_v40, 2  ;;  %v7176_v37 = vsel %vm1350_vm4, %v15975_v22, %v7175_v35  ;;  %v15978_v7 = vld [vmem:[#allocation69_spill] sm:$0xff]  ;;  %v15982_v35 = vld [vmem:[#allocation74_spill] sm:$0xff] }
 0x695   : > { %v10687_v20 = vpack.c.bf16 %v14923_v36, %v14902_v42  ;;  %v6988_v47 = vmul.f32 0.25, %v6710_v12  ;;  %v14952_v40 = vadd.f32 %v7176_v37, %v15978_v7  ;;  %v15979_v50 = vpack.c.bf16 %v14782_v52, %v14373_v17  ;;  %v15980_v36 = vld [vmem:[#allocation44_spill] sm:$0xff]  ;;  %v16036_v59 = vld [vmem:[#allocation78_spill] sm:$0xff] }
 0x696   : > { %v7234_v16 = vsel %vm1350_vm4, %v15974_v3, %v15972_v48  ;;  %v7235_v48 = vrot.slane %v7008_v14, 2  ;;  %v7000_v3 = vmul.f32 0.25, %v6746_v18  ;;  %v6997_v42 = vmul.f32 0.25, %v6737_v8  ;;  %v15986_v14 = vld [vmem:[#allocation14_spill] sm:$0xff] }
 0x697   : > { %v14947_v61 = vadd.f32 %v7234_v16, %v15976_v53  ;;  %10656 = vmatpush3.bf16.xpose.msk.msra.mxu1 %vm14182_vm7, %v15979_v50  ;;  %v7135_v9 = vrot.slane %v6988_v47, 2  ;;  %v15981_v16 = vrot.slane %v15980_v36, 2  ;;  %v15983_v12 = vrot.slane %v15982_v35, 2  ;;  %10680 = vmatpush3.bf16.xpose.msk.msra.mxu0 %vm14182_vm7, %v10678_v27  ;;  %v15987_v27 = vld [vmem:[#allocation71_spill] sm:$0xff]  ;;  %v6749_v35 = vld [vmem:[#allocation3 + $0x1a8] sm:$0x3] }
 0x698   : > { %v7009_v53 = vmul.f32 0.25, %v6773_v13  ;;  %v15984_v18 = vpack.c.bf16 %v14828_v21, %v14817_v4  ;;  %v15985_v17 = vrot.slane %v15971_v19, 2  ;;  %v7195_v8 = vrot.slane %v7000_v3, 2  ;;  %v6713_v13 = vld [vmem:[#allocation3 + $0x88] sm:$0x3]  ;;  %10683 = vmatprep.subr.msk.bf16.mxu0 %vm14182_vm7, %v10681_v45  ;;  %v15988_v21 = vld [vmem:[#allocation22_spill] sm:$0xff] }
 0x699   : > { %v7179_v22 = vsel %vm1350_vm4, %v15983_v12, %v15981_v16  ;;  %v15989_v47 = vrot.slane %v15988_v21, 2  ;;  %v7180_v16 = vrot.slane %v6997_v42, 2  ;;  %v15990_v19 = vrot.slane %v14591_v0, 2  ;;  %v15992_v12 = vld [vmem:[#allocation27_spill] sm:$0xff]  ;;  %v15996_v21 = vld [vmem:[#allocation25_spill] sm:$0xff]  ;;  %v16001_v50 = vld [vmem:[#allocation48_spill] sm:$0xff] }
 0x69a   : > { %10659 = vmatprep.subr.msk.bf16.mxu1 %vm14182_vm7, %v15984_v18  ;;  %v7236_v52 = vsel %vm1350_vm4, %v15985_v17, %v7235_v48  ;;  %v14977_v37 = vadd.f32 %v7179_v22, %v15986_v14  ;;  %v15991_v48 = vrot.slane %v14589_v23, 2  ;;  %v15993_v18 = vld [vmem:[#allocation43_spill] sm:$0xff] }
 0x69b   : > { %v14982_v4 = vadd.f32 %v7236_v52, %v15987_v27  ;;  %v7136_v7 = vsel %vm1350_vm4, %v15989_v47, %v7135_v9  ;;  %v15994_v45 = vrot.slane %v15993_v18, 2  ;;  %v7240_v52 = vrot.slane %v7009_v53, 2  ;;  %v15995_v14 = vld [vmem:[#allocation75_spill] sm:$0xff]  ;;  %v6740_v9 = vld [vmem:[#allocation3 + $0x160] sm:$0x3] }
 0x69c   : > { %v7239_v3 = vsel %vm1350_vm4, %v15991_v48, %v15990_v19  ;;  %v14993_v22 = vadd.f32 %v7136_v7, %v15992_v12  ;;  %v15997_v47 = vrot.slane %v15980_v36, 2  ;;  %v6989_v19 = vmul.f32 0.25, %v6713_v13  ;;  %v6776_v48 = vld [vmem:[#allocation3 + $0x280] sm:$0x3]  ;;  %v15998_v12 = vld [vmem:[#allocation41_spill] sm:$0xff] }
 0x69d   : > { %v7196_v17 = vsel %vm1350_vm4, %v15994_v45, %v7195_v8  ;;  %v14999_v27 = vadd.f32 %v7239_v3, %v15995_v14  ;;  %v15999_v53 = vld [vmem:[#allocation12_spill] sm:$0xff]  ;;  %v16000_v3 = vrot.slane %v14591_v0, 2  ;;  %v7001_v14 = vmul.f32 0.25, %v6749_v35 }
 0x69e   : > { %v15004_v23 = vadd.f32 %v7196_v17, %v15996_v21  ;;  %v7181_v7 = vsel %vm1350_vm4, %v15997_v47, %v7180_v16  ;;  %v16002_v21 = vld [vmem:[#allocation76_spill] sm:$0xff]  ;;  %v7140_v16 = vrot.slane %v6989_v19, 2  ;;  %v6998_v13 = vmul.f32 0.25, %v6740_v9  ;;  %v16008_v47 = vld [vmem:[#allocation5_spill] sm:$0xff] }
 0x69f   : > { %v15012_v18 = vadd.f32 %v7181_v7, %v15999_v53  ;;  %v7241_v45 = vsel %vm1350_vm4, %v16000_v3, %v7240_v52  ;;  %v7200_v8 = vrot.slane %v7001_v14, 2  ;;  %v16003_v7 = vrot.slane %v14620_v49, 2  ;;  %v6716_v35 = vld [vmem:[#allocation3 + $0xa0] sm:$0x3] }
 0x6a0   : > { %v15020_v36 = vadd.f32 %v7241_v45, %v16002_v21  ;;  %v16004_v53 = vrot.slane %v14618_v51, 2  ;;  %v7010_v52 = vmul.f32 0.25, %v6776_v48  ;;  %v16005_v3 = vpack.c.bf16 %v14836_v32, %v15955_v25  ;;  %v16006_v19 = vld [vmem:[#allocation24_spill] sm:$0xff] }
 0x6a1   : > { %v16007_v45 = vrot.slane %v16006_v19, 2  ;;  %v7185_v21 = vrot.slane %v6998_v13, 2  ;;  %v16010_v48 = vpack.c.bf16 %v14892_v26, %v15963_v29  ;;  %v16011_v32 = vpack.c.bf16 %v14896_v55, %v14862_v63  ;;  %v16012_v25 = vld [vmem:[#allocation36_spill] sm:$0xff]  ;;  %v6743_v19 = vld [vmem:[#allocation3 + $0x178] sm:$0x3] }
 0x6a2   : > { %v7184_v0 = vsel %vm1350_vm4, %v16004_v53, %v16003_v7  ;;  %10662 = vmatpush3.bf16.xpose.msk.msra.mxu1 %vm14182_vm7, %v16005_v3  ;;  %v6752_v7 = vld [vmem:[#allocation3 + $0x1c0] sm:$0x3]  ;;  %v16016_v26 = vrot.slane %v14630_v41, 2  ;;  %v7245_v3 = vrot.slane %v7010_v52, 2  ;;  %v16017_v63 = vld [vmem:[#allocation31_spill] sm:$0xff]  ;;  %v16021_v52 = vld [vmem:[#allocation49_spill] sm:$0xff] }
 0x6a3   : > { %v7141_v14 = vsel %vm1350_vm4, %v16007_v45, %v7140_v16  ;;  %v15040_v51 = vadd.f32 %v7184_v0, %v16008_v47  ;;  %10686 = vmatpush3.bf16.xpose.msk.msra.mxu0 %vm14182_vm7, %v16010_v48  ;;  %10665 = vmatprep.subr.msk.bf16.mxu1 %vm14182_vm7, %v16011_v32  ;;  %v16013_v16 = vld [vmem:[#allocation45_spill] sm:$0xff]  ;;  %v16015_v0 = vrot.slane %v14632_v31, 2  ;;  %v16018_v45 = vrot.slane %v14620_v49, 2  ;;  %v16020_v41 = vld [vmem:[#allocation8_spill] sm:$0xff]  ;;  %v16028_v49 = vld [vmem:[#allocation34_spill] sm:$0xff] }
 0x6a4   : > { %v15053_v53 = vadd.f32 %v7141_v14, %v16012_v25  ;;  %v16014_v13 = vrot.slane %v16013_v16, 2  ;;  %10689 = vmatprep.subr.msk.bf16.mxu0 %vm14182_vm7, %v10687_v20  ;;  %v16019_v48 = vld [vmem:[#allocation13_spill] sm:$0xff]  ;;  %v6990_v32 = vmul.f32 0.25, %v6716_v35  ;;  %v6779_v25 = vld [vmem:[#allocation3 + $0x298] sm:$0x3]  ;;  %v6999_v35 = vmul.f32 0.25, %v6743_v19 }
 0x6a5   : > { %16009 = vst [vmem:[#allocation30_spill] sm:$0xff] %v15040_v51  ;;  %v7244_v29 = vsel %vm1350_vm4, %v16016_v26, %v16015_v0  ;;  %v7186_v14 = vsel %vm1350_vm4, %v16018_v45, %v7185_v21  ;;  %v16022_v20 = vmov %v16015_v0  ;;  %v7002_v0 = vmul.f32 0.25, %v6752_v7  ;;  %v16023_v26 = vld [vmem:[#allocation52_spill] sm:$0xff]  ;;  %v16024_v21 = vld [vmem:[#allocation11_spill] sm:$0xff] }
 0x6a6   : > { %v7201_v47 = vsel %vm1350_vm4, %v16014_v13, %v7200_v8  ;;  %v15072_v8 = vadd.f32 %v7244_v29, %v16019_v48  ;;  %v15077_v13 = vadd.f32 %v7186_v14, %v16021_v52  ;;  %v7145_v29 = vrot.slane %v6990_v32, 2  ;;  %v16026_v52 = vld [vmem:[#allocation77_spill] sm:$0xff]  ;;  %v6719_v7 = vld [vmem:[#allocation3 + $0xb8] sm:$0x3] }
 0x6a7   : > { %v15066_v55 = vadd.f32 %v7201_v47, %v16017_v63  ;;  %v7246_v47 = vsel %vm1350_vm4, %v16022_v20, %v7245_v3  ;;  %v7205_v48 = vrot.slane %v7002_v0, 2  ;;  %v16025_v14 = vrot.slane %v14662_v44, 2  ;;  %v6755_v0 = vld [vmem:[#allocation3 + $0x1d8] sm:$0x3] }
 0x6a8   : > { %v15085_v63 = vadd.f32 %v7246_v47, %v16024_v21  ;;  %v16027_v16 = vrot.slane %v16026_v52, 2  ;;  %v7011_v3 = vmul.f32 0.25, %v6779_v25  ;;  %v16029_v47 = vrot.slane %v16028_v49, 2  ;;  %v16030_v21 = vld [vmem:[#allocation21_spill] sm:$0xff]  ;;  %v16031_v45 = vld [vmem:[#allocation7_spill] sm:$0xff]  ;;  %v16032_v52 = vld [vmem:[#allocation46_spill] sm:$0xff] }
 0x6a9   : > { %v7190_v19 = vrot.slane %v6999_v35, 2  ;;  %v16033_v42 = vrot.slane %v16032_v52, 2  ;;  %v16037_v20 = vrot.slane %v16036_v59, 2  ;;  %v16038_v35 = vpack.c.bf16 %v14906_v38, %v15968_v34 }
 0x6aa   : > { %v7189_v31 = vsel %vm1350_vm4, %v16027_v16, %v16025_v14  ;;  %v7146_v32 = vsel %vm1350_vm4, %v16029_v47, %v7145_v29  ;;  %v16034_v16 = vld [vmem:[#allocation79_spill] sm:$0xff]  ;;  %v7250_v51 = vrot.slane %v7011_v3, 2  ;;  %v6782_v29 = vld [vmem:[#allocation3 + $0x2b0] sm:$0x3]  ;;  %v16040_v47 = vrot.slane %v14662_v44, 2  ;;  %v16044_v44 = vld [vmem:[#allocation9_spill] sm:$0xff] }
 0x6ab   : > { %v15100_v9 = vadd.f32 %v7189_v31, %v16030_v21  ;;  %v15103_v17 = vadd.f32 %v7146_v32, %v16031_v45  ;;  %v7206_v25 = vsel %vm1350_vm4, %v16033_v42, %v7205_v48  ;;  %v16035_v14 = vrot.slane %v16034_v16, 2  ;;  %10668 = vmatpush3.bf16.xpose.msk.msra.mxu1 %vm14182_vm7, %v16038_v35  ;;  %v16039_v45 = vld [vmem:[#allocation32_spill] sm:$0xff]  ;;  %v16041_v48 = vld [vmem:[#allocation6_spill] sm:$0xff] }
 0x6ac   : > { %v15119_v31 = vadd.f32 %v7206_v25, %v16039_v45  ;;  %v7191_v42 = vsel %vm1350_vm4, %v16040_v47, %v7190_v19  ;;  %v6991_v59 = vmul.f32 0.25, %v6719_v7  ;;  %v16042_v3 = vpack.c.bf16 %v14931_v58, %v15977_v46  ;;  %v16045_v19 = vld [vmem:[#allocation17_spill] sm:$0xff]  ;;  %v16049_v25 = vld [vmem:[#allocation51_spill] sm:$0xff] }
 0x6ad   : > { %v7249_v49 = vsel %vm1350_vm4, %v16037_v20, %v16035_v14  ;;  %v6758_v20 = vld [vmem:[#allocation3 + $0x1f0] sm:$0x3]  ;;  %v16043_v34 = vpack.c.bf16 %v14982_v4, %v14947_v61  ;;  %v10708_v38 = vpack.c.bf16 %v15103_v17, %v16044_v44  ;;  %v15140_v21 = vadd.f32 %v7191_v42, %v16045_v19  ;;  %v16048_v61 = vld [vmem:[#allocation53_spill] sm:$0xff] }
 0x6ae   : > { %v15125_v32 = vadd.f32 %v7249_v49, %v16041_v48  ;;  %10692 = vmatpush3.bf16.xpose.msk.msra.mxu0 %vm14182_vm7, %v16042_v3  ;;  %v16046_v7 = vmov %v16035_v14  ;;  %v7003_v58 = vmul.f32 0.25, %v6755_v0  ;;  %v16047_v46 = vpack.c.bf16 %v14952_v40, %v14934_v57  ;;  %v6785_v45 = vld [vmem:[#allocation3 + $0x2c8] sm:$0x3]  ;;  %v16052_v3 = vld [vmem:[#allocation10_spill] sm:$0xff] }
 0x6af   : > { %10719 = vmatprep.subr.msk.bf16.mxu1 %vm14182_vm7, %v16043_v34  ;;  %v7251_v52 = vsel %vm1350_vm4, %v16046_v7, %v7250_v51  ;;  %v10732_v4 = vpack.c.bf16 %v15119_v31, %v16048_v61  ;;  %v7150_v49 = vrot.slane %v6991_v59, 2  ;;  %v7012_v35 = vmul.f32 0.25, %v6782_v29  ;;  %v6761_v42 = vld [vmem:[#allocation3 + $0x208] sm:$0x3]  ;;  %v16054_v7 = vld [vmem:[#allocation16_spill] sm:$0xff] }
 0x6b0   : > { %10695 = vmatprep.subr.msk.bf16.mxu0 %vm14182_vm7, %v16047_v46  ;;  %v15153_v14 = vadd.f32 %v7251_v52, %v16049_v25  ;;  %v10711_v16 = vpack.c.bf16 %v15140_v21, %v15100_v9  ;;  %v7210_v51 = vrot.slane %v7003_v58, 2  ;;  %v16050_v0 = vrot.slane %v14714_v5, 2  ;;  %v16055_v58 = vld [vmem:[#allocation50_spill] sm:$0xff] }
 0x6b1   : > { %v16051_v57 = vrot.slane %v14702_v10, 2  ;;  %v7004_v47 = vmul.f32 0.25, %v6758_v20  ;;  %v16053_v34 = vrot.slane %v16052_v3, 2  ;;  %v7255_v59 = vrot.slane %v7012_v35, 2 }
 0x6b2   : > { %v10735_v48 = vpack.c.bf16 %v15153_v14, %v15125_v32  ;;  %v16056_v10 = vrot.slane %v16055_v58, 2  ;;  %v7013_v25 = vmul.f32 0.25, %v6785_v45  ;;  %v16058_v3 = vrot.slane %v14714_v5, 2  ;;  %9604 = vmatmul.mubr.msk.f32.vlgmr.msra.gmra.mrb[32].mxu1 %vm420_vm1, %v14868_v11  ;;  %v16063_v5 = vld [vmem:[#allocation47_spill] sm:$0xff] }
 0x6b3   : > { %v7254_v40 = vsel %vm1350_vm4, %v16051_v57, %v16050_v0  ;;  %v7151_v29 = vsel %vm1350_vm4, %v16053_v34, %v7150_v49  ;;  %v7215_v20 = vrot.slane %v7004_v47, 2  ;;  %v16057_v0 = vld [vmem:[#allocation33_spill] sm:$0xff]  ;;  %v16059_v35 = vrot.slane %v14750_v28, 2  ;;  %v16062_v47 = vld [vmem:[#allocation80_spill] sm:$0xff]  ;;  %v6791_v45 = vld [vmem:[#allocation3 + $0x2f8] sm:$0x3]  ;;  %9671 = vmatprep.mubr.msk.f32.mxu1 %vm420_vm1, %v14868_v11 }
 0x6b4   : > { %v15168_v19 = vadd.f32 %v7254_v40, %v14697_v1  ;;  %v15171_v52 = vadd.f32 %v7151_v29, %v16054_v7  ;;  %v7211_v46 = vsel %vm1350_vm4, %v16056_v10, %v7210_v51  ;;  %v7256_v49 = vsel %vm1350_vm4, %v16058_v3, %v7255_v59  ;;  %v6788_v29 = vld [vmem:[#allocation3 + $0x2e0] sm:$0x3]  ;;  %v16061_v51 = vld [vmem:[#allocation19_spill] sm:$0xff] }
 0x6b5   : > { %v15177_v57 = vadd.f32 %v7211_v46, %v16057_v0  ;;  %v16060_v1 = vrot.slane %v14748_v33, 2  ;;  %v7005_v34 = vmul.f32 0.25, %v6761_v42  ;;  %v15192_v7 = vadd.f32 %v7256_v49, %v16062_v47  ;;  %v16066_v42 = vld [vmem:[#allocation55_spill] sm:$0xff]  ;;  %v6764_v47 = vld [vmem:[#allocation3 + $0x220] sm:$0x3] }
 0x6b6   : > { %v16064_v58 = vrot.slane %v16063_v5, 2  ;;  %v7260_v10 = vrot.slane %v7013_v25, 2  ;;  %v16065_v33 = vpack.c.bf16 %v15004_v23, %v16001_v50  ;;  %v16067_v0 = vld [vmem:[#allocation35_spill] sm:$0xff]  ;;  %v16070_v50 = vpack.c.bf16 %v15020_v36, %v14999_v27  ;;  %v16075_v36 = vld [vmem:[#allocation54_spill] sm:$0xff] }
 0x6b7   : > { %v7259_v40 = vsel %vm1350_vm4, %v16060_v1, %v16059_v35  ;;  %v10738_v46 = vpack.c.bf16 %v15177_v57, %v16066_v42  ;;  %v16068_v35 = vld [vmem:[#allocation18_spill] sm:$0xff]  ;;  %v7220_v49 = vrot.slane %v7005_v34, 2  ;;  %v10741_v23 = vpack.c.bf16 %v15192_v7, %v15168_v19  ;;  %v6767_v5 = vld [vmem:[#allocation3 + $0x238] sm:$0x3]  ;;  %v16076_v7 = vld [vmem:[#allocation40_spill] sm:$0xff] }
 0x6b8   : > { %v7216_v59 = vsel %vm1350_vm4, %v16064_v58, %v7215_v20  ;;  %10722 = vmatpush3.bf16.xpose.msk.msra.mxu1 %vm14182_vm7, %v16065_v33  ;;  %v7394_v1 = vadd.f32 %v7259_v40, %v16068_v35  ;;  %v16069_v20 = vpack.c.bf16 %v14993_v22, %v15998_v12  ;;  %v16071_v25 = vrot.slane %v14750_v28, 2 }
 0x6b9   : > { %v7377_v3 = vadd.f32 %v7216_v59, %v16067_v0  ;;  %10725 = vmatprep.subr.msk.bf16.mxu1 %vm14182_vm7, %v16070_v50  ;;  %v7014_v40 = vmul.f32 0.25, %v6788_v29  ;;  %v16072_v34 = vrot.slane %v14805_v54, 2  ;;  %v16073_v22 = vrot.slane %v14799_v39, 2 }
 0x6ba   : > { %10698 = vmatpush3.bf16.xpose.msk.msra.mxu0 %vm14182_vm7, %v16069_v20  ;;  %v7261_v57 = vsel %vm1350_vm4, %v16071_v25, %v7260_v10  ;;  %v16074_v27 = vpack.c.bf16 %v15012_v18, %v14977_v37  ;;  %v16077_v58 = vrot.slane %v14330_v24, 2  ;;  %v7006_v33 = vmul.f32 0.25, %v6764_v47  ;;  %v7401_v37 = vld [vmem:[%s15356_s9] sm:$0xff]  ;;  %v16082_v25 = vld [vmem:[#allocation57_spill] sm:$0xff] }
 0x6bb   : > { %v7264_v12 = vsel %vm1350_vm4, %v16073_v22, %v16072_v34  ;;  %v10744_v19 = vpack.c.bf16 %v7377_v3, %v16075_v36  ;;  %v7395_v28 = vadd.f32 %v7261_v57, %v16076_v7  ;;  %v7265_v10 = vrot.slane %v7014_v40, 2  ;;  %v16083_v57 = vld [vmem:[#allocation62_spill] sm:$0xff]  ;;  %v16084_v22 = vld [vmem:[#allocation61_spill] sm:$0xff] }
 0x6bc   : > { %10701 = vmatprep.subr.msk.bf16.mxu0 %vm14182_vm7, %v16074_v27  ;;  %v7221_v29 = vsel %vm1350_vm4, %v16077_v58, %v7220_v49  ;;  %v7396_v59 = vadd.f32 %v7264_v12, %v14788_v2  ;;  %v7015_v42 = vmul.f32 0.25, %v6791_v45  ;;  %v16078_v0 = vrot.slane %v14858_v43, 2  ;;  %v16080_v49 = vld [vmem:[#allocation63_spill] sm:$0xff] }
 0x6bd   : > { %v7379_v39 = vadd.f32 %v7221_v29, %v14275_v60  ;;  %v10747_v18 = vpack.c.bf16 %v7395_v28, %v7394_v1  ;;  %v16079_v3 = vrot.slane %v14849_v62, 2  ;;  %v7007_v35 = vmul.f32 0.25, %v6767_v5  ;;  %v16085_v12 = vld [vmem:[#allocation67_spill] sm:$0xff]  ;;  %v16090_v29 = vld [vmem:[#allocation37_spill] sm:$0xff] }
 0x6be   : > { %v16081_v2 = vmov %v16072_v34  ;;  %v7225_v47 = vrot.slane %v7006_v33, 2  ;;  %v7270_v45 = vrot.slane %v7015_v42, 2  ;;  %v11306_v50 = vmov 0   ;;  %v16096_v42 = vld [vmem:[#allocation30_spill] sm:$0xff] }
 0x6bf   : > { %v7269_v24 = vsel %vm1350_vm4, %v16079_v3, %v16078_v0  ;;  %v10750_v20 = vpack.c.bf16 %v7379_v39, %v16080_v49  ;;  %v7266_v60 = vsel %vm1350_vm4, %v16081_v2, %v7265_v10  ;;  %11287 = vset.pattern.permute.xlu0 %v11306_v50  ;;  %v7380_v1 = vadd.f32 %v16083_v57, %v16082_v25  ;;  %v16091_v10 = vld [vmem:[#allocation64_spill] sm:$0xff] }
 0x6c0   : > { %v7397_v40 = vadd.f32 %v7266_v60, %v14791_v30  ;;  %v7398_v62 = vadd.f32 %v7269_v24, %v14839_v15  ;;  %v7230_v34 = vrot.slane %v7007_v35, 2  ;;  %7404 = vperm.xlu0 %11287, %v7401_v37   ;;  %v7382_v5 = vadd.f32 %v16085_v12, %v16084_v22  ;;  %v16089_v15 = vld [vmem:[#allocation56_spill] sm:$0xff] }
 0x6c1   : > { %v16086_v54 = vrot.slane %v14325_v6, 2  ;;  %v16087_v36 = vmov %v16078_v0  ;;  %v16088_v28 = vpack.c.bf16 %v15066_v55, %v16023_v26  ;;  %v16092_v33 = vrot.slane %v16091_v10, 2  ;;  %v16095_v26 = vld [vmem:[#allocation59_spill] sm:$0xff] }
 0x6c2   : > { %v7271_v7 = vsel %vm1350_vm4, %v16087_v36, %v7270_v45  ;;  %v10753_v30 = vpack.c.bf16 %v7397_v40, %v7396_v59  ;;  %v16093_v43 = vpack.c.bf16 %v15053_v53, %v16020_v41  ;;  %v16094_v55 = vpack.c.bf16 %v15085_v63, %v15072_v8 }
 0x6c3   : > { %v7226_v27 = vsel %vm1350_vm4, %v16086_v54, %v7225_v47  ;;  %10728 = vmatpush3.bf16.xpose.msk.msra.mxu1 %vm14182_vm7, %v16088_v28  ;;  %v7399_v39 = vadd.f32 %v7271_v7, %v16090_v29  ;;  %v7231_v6 = vsel %vm1350_vm4, %v16092_v33, %v7230_v34  ;;  %v16097_v37 = vpack.c.bf16 %v15077_v13, %v16096_v42 }
 0x6c4   : > { %v7381_v58 = vadd.f32 %v7226_v27, %v16089_v15  ;;  %10704 = vmatpush3.bf16.xpose.msk.msra.mxu0 %vm14182_vm7, %v16093_v43  ;;  %10731 = vmatprep.subr.msk.bf16.mxu1 %vm14182_vm7, %v16094_v55  ;;  %v7383_v59 = vadd.f32 %v7231_v6, %v16095_v26  ;;  %v16098_v17 = vpack.c.bf16 %v15171_v52, %v16061_v51 }
 0x6c5   : > { %10707 = vmatprep.subr.msk.bf16.mxu0 %vm14182_vm7, %v16097_v37  ;;  %v10759_v3 = vpack.c.bf16 %v7399_v39, %v7398_v62 }
 0x6c6   : > { %v10756_v0 = vpack.c.bf16 %v7381_v58, %v7380_v1  ;;  %v10762_v53 = vpack.c.bf16 %v7383_v59, %v7382_v5 }
 0x6cb   : > { %10734 = vmatpush3.bf16.xpose.msk.msra.mxu1 %vm14182_vm7, %v10732_v4 }
 0x6cc   : > { %10710 = vmatpush3.bf16.xpose.msk.msra.mxu0 %vm14182_vm7, %v10708_v38  ;;  %10737 = vmatprep.subr.msk.bf16.mxu1 %vm14182_vm7, %v10735_v48 }
 0x6cd   : > { %10713 = vmatprep.subr.msk.bf16.mxu0 %vm14182_vm7, %v10711_v16 }
 0x6d3   : > { %10740 = vmatpush3.bf16.xpose.msk.msra.mxu1 %vm14182_vm7, %v10738_v46 }
 0x6d4   : > { %10716 = vmatpush3.bf16.xpose.msk.msra.mxu0 %vm14182_vm7, %v16098_v17  ;;  %10743 = vmatprep.subr.msk.bf16.mxu1 %vm14182_vm7, %v10741_v23 }
 0x6db   : > { %10746 = vmatpush3.bf16.xpose.msk.msra.mxu1 %vm14182_vm7, %v10744_v19  ;;  %9638 = vmatmul.mubr.msk.f32.vlgmr.msra.gmra.mrb[34].mxu0 %vm420_vm1, %v14868_v11 }
 0x6dc   : > { %10749 = vmatprep.subr.msk.bf16.mxu1 %vm14182_vm7, %v10747_v18 }
 0x6e3   : > { %10752 = vmatpush3.bf16.xpose.msk.msra.mxu1 %vm14182_vm7, %v10750_v20 }
 0x6e4   : > { %10755 = vmatprep.subr.msk.bf16.mxu1 %vm14182_vm7, %v10753_v30 }
 0x6eb   : > { %10758 = vmatpush3.bf16.xpose.msk.msra.mxu1 %vm14182_vm7, %v10756_v0 }
 0x6ec   : > { %10761 = vmatprep.subr.msk.bf16.mxu1 %vm14182_vm7, %v10759_v3 }
 0x6f3   : > { %10764 = vmatpush3.bf16.xpose.msk.msra.mxu1 %vm14182_vm7, %v10762_v53 }
 0x6fa   : > { %9672 = vmatmul.mubr.msk.f32.vlgmr.msra.gmra.mrb[34].mxu1 %vm420_vm1, %v14868_v11 }
 0x73f   : > { %v7405_v9 = vpop.permute.xlu0 %7404 }
 0x761   : > { %v7668_v8 = vpop.f32.mrb[32].mxu0 }
 0x762   : > { %v7669_v41 = vadd.f32 %v7668_v8, %v7405_v9  ;;  %v7670_v13 = vpop.f32.mrb[33].mxu0 }
 0x763   : > { %v7671_v63 = vadd.f32 %v7670_v13, %v7405_v9 }
 0x764   : > { %v7744_v31 = vmax.f32 %v7669_v41, 0.0 }
 0x765   : > { %v7745_v32 = vmax.f32 %v7671_v63, 0.0 }
 0x766   : > { %7748 = vst [vmem:[%s414_s15] sm:$0xff] %v7744_v31 }
 0x767   : > { %7749 = vst [vmem:[%s414_s15 + $0x8] sm:$0xff] %v7745_v32 }
 0x785   : > { %v7739_v44 = vpop.f32.mrb[32].mxu1 }
 0x786   : > { %v7740_v56 = vadd.f32 %v7739_v44, %v7405_v9  ;;  %v7741_v38 = vpop.f32.mrb[33].mxu1 }
 0x787   : > { %v7742_v21 = vadd.f32 %v7741_v38, %v7405_v9 }
 0x788   : > { %v7746_v61 = vmax.f32 %v7740_v56, 0.0 }
 0x789   : > { %v7747_v11 = vmax.f32 %v7742_v21, 0.0 }
 0x78a   : > { %7750 = vst [vmem:[%s414_s15 + $0x10] sm:$0xff] %v7746_v61 }
 0x78b   : > { %7751 = vst [vmem:[%s414_s15 + $0x18] sm:$0xff] %v7747_v11 }
 0x7ae   : > { %v8010_v4 = vpop.f32.mrb[34].mxu0 }
 0x7af   : > { %v8011_v14 = vadd.f32 %v8010_v4, %v7405_v9  ;;  %v8012_v16 = vpop.f32.mrb[35].mxu0 }
 0x7b0   : > { %v8013_v48 = vadd.f32 %v8012_v16, %v7405_v9 }
 0x7b1   : > { %v8086_v52 = vmax.f32 %v8011_v14, 0.0 }
 0x7b2   : > { %v8087_v51 = vmax.f32 %v8013_v48, 0.0 }
 0x7b3   : > { %8090 = vst [vmem:[%s419_s19] sm:$0xff] %v8086_v52 }
 0x7b4   : > { %8091 = vst [vmem:[%s419_s19 + $0x8] sm:$0xff] %v8087_v51 }
 0x7cd   : > { %v8081_v46 = vpop.f32.mrb[34].mxu1 }
 0x7ce   : > { %v8082_v23 = vadd.f32 %v8081_v46, %v7405_v9  ;;  %v8083_v19 = vpop.f32.mrb[35].mxu1 }
 0x7cf   : > { %v8084_v18 = vadd.f32 %v8083_v19, %v7405_v9 }
 0x7d0   : > { %v8088_v24 = vmax.f32 %v8082_v23, 0.0 }
 0x7d1   : > { %v8089_v35 = vmax.f32 %v8084_v18, 0.0 }
 0x7d2   : > { %8092 = vst [vmem:[%s419_s19 + $0x10] sm:$0xff] %v8088_v24 }
 0x7d3   : > { %8093 = vst [vmem:[%s419_s19 + $0x18] sm:$0xff] %v8089_v35 }
 0x7d4 PF: > { %s22_s17 = sadd.s32 1, %s11303_s17  }
 0x7d5   : > { %p19_p4 = scmp.ge.s32.totalorder %s22_s17, 4  }
 0x7d7   :  { %21 = sbr.rel (!%p19_p4) target bundleno = 1 (0x1), region = 106 }

</bundles_post_ra>
